<compile_context>
chip_gen: v7x
topology: tpu7x:2x2x1
jax: 0.10.0
libtpu: 0.0.40
codegen_flags: <defaults>
</compile_context>

<pallas_src>
import numpy as np
import jax
import jax.numpy as jnp
from jax.experimental import pallas as pl
from jax.experimental.pallas import tpu as pltpu

IM_SIZE = 32                      # (PyTorch default 224; small for the test)
RESIZED = int(IM_SIZE * 1.2)      # kornia Resize target (square input -> square)
PAD = 8                           # Kaug.RandomCrop(padding=8)
C = 3

MEAN = np.array([0.485, 0.456, 0.406], np.float32)
STD = np.array([0.229, 0.224, 0.225], np.float32)
GRAY_W = (0.299, 0.587, 0.114)


# ---------------------------------------------------------------- glue: params
def _bilinear_matrix(out_size, in_size):
    """Row-stochastic bilinear interpolation matrix (align_corners=False)."""
    i = np.arange(out_size, dtype=np.float64)
    src = np.clip((i + 0.5) * in_size / out_size - 0.5, 0.0, in_size - 1)
    i0 = np.floor(src).astype(np.int64)
    i1 = np.minimum(i0 + 1, in_size - 1)
    w1 = (src - i0).astype(np.float32)
    w0 = 1.0 - w1
    m = np.zeros((out_size, in_size), np.float32)
    m[np.arange(out_size), i0] += w0
    m[np.arange(out_size), i1] += w1
    return m


def _crop_select(crop, resized, pad, offset, flip=False):
    """(crop, resized) selection matrix: zero-pad by `pad`, take rows
    offset..offset+crop of the padded axis (all-zero rows model the padding)."""
    m = np.zeros((crop, resized), np.float32)
    for j in range(crop):
        src = offset + j - pad
        if 0 <= src < resized:
            m[j, src] = 1.0
    if flip:                       # horizontal flip folded into the W matrix
        m = m[::-1, :]
    return m


def build_geometry(tops, lefts, flips, H, W):
    # NOTE: for the real IM_SIZE=224 config on v6e/v7x, padding the contracted
    # dims toward multiples of 256 here (host-side) improves MXU tiling.
    rh = _bilinear_matrix(RESIZED, H)   # (Hr, H)
    rw = _bilinear_matrix(RESIZED, W)   # (Wr, W)
    ah = np.stack([_crop_select(IM_SIZE, RESIZED, PAD, int(t)) @ rh
                   for t in tops])                                   # (N, S, H)
    aw = np.stack([(_crop_select(IM_SIZE, RESIZED, PAD, int(l), flip=bool(f)) @ rw).T
                   for l, f in zip(lefts, flips)])                   # (N, W, S)
    return jnp.asarray(ah), jnp.asarray(aw)


# ------------------------------------------------------------------ the kernel
def apply_aug_kernel(x_ref, ah_ref, aw_ref, jit_ref, mean_ref, std_ref, istd_ref,
                     o_ref):
    # x_ref  : (B, C, H, W) bf16 VMEM    ah_ref: (B, S, H) bf16   aw_ref: (B, W, S) bf16
    # jit_ref: (3*N,) f32 SMEM  (brightness, contrast, saturation per sample, flat)
    # mean_ref / std_ref / istd_ref: (3,) f32 SMEM
    # o_ref  : (1, S, B*C*S) f32 VMEM  -- lane-dense packed output
    B = x_ref.shape[0]
    H = x_ref.shape[2]
    f32 = jnp.float32
    n0 = pl.program_id(0) * B            # first global sample index of this block

    cols = []
    for b in range(B):                    # B is small & static -> unrolled
        ah_b = ah_ref[b]                                   # (S, H) bf16
        aw_b = aw_ref[b]                                   # (W, S) bf16
        base = (n0 + b) * 3
        bfac = jit_ref[base + 0]
        cfac = jit_ref[base + 1]
        sfac = jit_ref[base + 2]

        # un-normalize in f32, stack channels along sublanes (H is 8-aligned)
        parts = [x_ref[b, c].astype(f32) * std_ref[c] + mean_ref[c]
                 for c in range(C)]                        # C x (H, W) f32
        x2d = jnp.concatenate(parts, axis=0).astype(jnp.bfloat16)   # (C*H, W)

        # geometry (resize + pad + crop + flip) folded into Aw / Ah:
        # one channel-stacked matmul, then C small Ah matmuls.
        z = jnp.dot(x2d, aw_b, preferred_element_type=f32)          # (C*H, S) f32

        chans = []
        for c in range(C):
            zc = z[c * H:(c + 1) * H, :].astype(jnp.bfloat16)       # (H, S)
            y = jnp.dot(ah_b, zc, preferred_element_type=f32)       # (S, S) f32
            y = jnp.clip(y * bfac, 0.0, 1.0)                        # brightness
            chans.append(y)
        r, g, bl = chans

        # contrast jitter: blend with the grayscale-image mean
        gray = GRAY_W[0] * r + GRAY_W[1] * g + GRAY_W[2] * bl
        gmean = jnp.mean(gray)
        r = jnp.clip(cfac * r + (1.0 - cfac) * gmean, 0.0, 1.0)
        g = jnp.clip(cfac * g + (1.0 - cfac) * gmean, 0.0, 1.0)
        bl = jnp.clip(cfac * bl + (1.0 - cfac) * gmean, 0.0, 1.0)

        # saturation jitter: blend with the grayscale image
        gray = GRAY_W[0] * r + GRAY_W[1] * g + GRAY_W[2] * bl
        r = jnp.clip(sfac * r + (1.0 - sfac) * gray, 0.0, 1.0)
        g = jnp.clip(sfac * g + (1.0 - sfac) * gray, 0.0, 1.0)
        bl = jnp.clip(sfac * bl + (1.0 - sfac) * gray, 0.0, 1.0)

        # final Normalize(mean, std) as a multiply by the precomputed 1/std,
        # channels packed along lanes (-> (S, C*S)).
        outs = [(ch - mean_ref[c]) * istd_ref[c]
                for c, ch in enumerate((r, g, bl))]
        cols.append(jnp.concatenate(outs, axis=1))
        # NOTE: at IM_SIZE=224 the jitter section above should be strip-mined
        # over sublane rows to stay inside the 64-vreg file.

    # single lane-dense store: last dim = B*C*S (multiple of 128 in the test)
    o_ref[0] = jnp.concatenate(cols, axis=1)
    # TODO(synk): kornia's ColorJitter applies its sub-transforms in a random
    # order and its adjust_contrast semantics differ across versions; a fixed
    # torchvision-style order (brightness->contrast->saturation) is used here.


def apply_aug(x, ah, aw, jitf, mean, std, *, block_n=4):
    """x: (N,C,H,W), ah: (N,S,H), aw: (N,W,S), jitf: (N,3). Returns (N,C,S,S) f32."""
    N, _, H, W = x.shape
    S = IM_SIZE
    B = block_n
    assert N % B == 0, "batch must be a multiple of block_n (pad on host if needed)"

    x = x.astype(jnp.bfloat16)                     # bf16 MXU operands, halves HBM bytes
    ah = ah.astype(jnp.bfloat16)
    aw = aw.astype(jnp.bfloat16)
    jit_flat = jnp.asarray(jitf, jnp.float32).reshape(-1)   # 1-D SMEM (no 2-D padding)
    mean = jnp.asarray(mean, jnp.float32)
    std = jnp.asarray(std, jnp.float32)
    inv_std = (1.0 / std).astype(jnp.float32)

    packed = pl.pallas_call(
        apply_aug_kernel,
        out_shape=jax.ShapeDtypeStruct((N // B, S, B * C * S), jnp.float32),
        grid=(N // B,),
        in_specs=[
            pl.BlockSpec((B, C, H, W), lambda i: (i, 0, 0, 0)),
            pl.BlockSpec((B, S, H), lambda i: (i, 0, 0)),
            pl.BlockSpec((B, W, S), lambda i: (i, 0, 0)),
            pl.BlockSpec(memory_space=pltpu.MemorySpace.SMEM),   # jitter (3N,)
            pl.BlockSpec(memory_space=pltpu.MemorySpace.SMEM),   # mean (3,)
            pl.BlockSpec(memory_space=pltpu.MemorySpace.SMEM),   # std (3,)
            pl.BlockSpec(memory_space=pltpu.MemorySpace.SMEM),   # 1/std (3,)
        ],
        out_specs=pl.BlockSpec((1, S, B * C * S), lambda i: (i, 0, 0)),
        compiler_params=pltpu.CompilerParams(
            dimension_semantics=("parallel",),
            # tiny footprint at the test size; set explicitly so the batched
            # IM_SIZE=224 config keeps double-buffering on v5e (16 MiB scoped
            # default) without overshooting v7x's 64 MiB physical VMEM.
            vmem_limit_bytes=32 * 1024 * 1024,
        ),
    )(x, ah, aw, jit_flat, mean, std, inv_std)

    # Unpack (N//B, S, B*C*S) -> (N, C, S, S).  Skip this (consume the packed
    # layout) when possible, or emit NCHW directly at IM_SIZE >= 128 where the
    # natural layout is already lane-dense.
    out = packed.reshape(N // B, S, B, C, S).transpose(0, 2, 3, 1, 4)
    return out.reshape(N, C, S, S)


# ------------------------------------------------------------ pure-JAX reference
def reference(x_in, ah, aw, jitf, mean, std, matmul_dtype=jnp.float32):
    f32 = jnp.float32
    xu = x_in.astype(f32) * std[None, :, None, None] + mean[None, :, None, None]
    md = matmul_dtype
    z = jnp.einsum("nchw,nws->nchs", xu.astype(md), aw.astype(md),
                   preferred_element_type=f32)
    y = jnp.einsum("nsh,ncht->ncst", ah.astype(md), z.astype(md),
                   preferred_element_type=f32)
    bf = jitf[:, 0][:, None, None, None]
    y = jnp.clip(y * bf, 0.0, 1.0)
    gw = jnp.asarray(GRAY_W, f32)
    gray = jnp.einsum("c,ncst->nst", gw, y)
    gmean = gray.mean(axis=(1, 2))[:, None, None, None]
    cf = jitf[:, 1][:, None, None, None]
    y = jnp.clip(cf * y + (1.0 - cf) * gmean, 0.0, 1.0)
    gray = jnp.einsum("c,ncst->nst", gw, y)[:, None]
    sf = jitf[:, 2][:, None, None, None]
    y = jnp.clip(sf * y + (1.0 - sf) * gray, 0.0, 1.0)
    return (y - mean[None, :, None, None]) / std[None, :, None, None]


if __name__ == "__main__":
    N, H, W = 8, 40, 40
    B = 4        # samples per grid step: grid=(2,) keeps both v7x TCs busy and
                 # B*C*IM_SIZE = 384 lanes -> unmasked (multiple-of-128) stores.
    key = jax.random.PRNGKey(0)
    k_img, k_top, k_left, k_jit, k_flip = jax.random.split(key, 5)

    mean = jnp.asarray(MEAN)
    std = jnp.asarray(STD)

    # The module's input is already-normalized image data (forward un-normalizes).
    img01 = jax.random.uniform(k_img, (N, C, H, W), jnp.float32)
    x = (img01 - mean[None, :, None, None]) / std[None, :, None, None]

    # Deterministically sampled augmentation parameters (host-side "randomness").
    max_off = RESIZED + 2 * PAD - IM_SIZE
    tops = np.asarray(jax.random.randint(k_top, (N,), 0, max_off + 1))
    lefts = np.asarray(jax.random.randint(k_left, (N,), 0, max_off + 1))
    flips = np.asarray(jax.random.bernoulli(k_flip, 0.5, (N,)))
    jitf = jax.random.uniform(k_jit, (N, 3), jnp.float32, 0.6, 1.4)

    ah, aw = build_geometry(tops, lefts, flips, H, W)

    # bf16 operands exactly as the kernel consumes them (shared with the reference)
    x_bf = x.astype(jnp.bfloat16)
    ah_bf = ah.astype(jnp.bfloat16)
    aw_bf = aw.astype(jnp.bfloat16)

    out = apply_aug(x_bf, ah_bf, aw_bf, jitf, mean, std, block_n=B)
    out = jax.block_until_ready(out)

    assert out.shape == (N, C, IM_SIZE, IM_SIZE)
    assert bool(jnp.all(jnp.isfinite(out)))
    out_np = np.asarray(out)

    # (1) tight check vs a reference that mirrors the kernel's bf16 cast points
    ref_bf = jax.block_until_ready(
        reference(x_bf, ah_bf, aw_bf, jitf, mean, std, matmul_dtype=jnp.bfloat16))
    assert np.allclose(out_np, np.asarray(ref_bf), atol=2e-3), "mismatch vs matched reference"

    # (2) loose check vs f32 matmuls (same bf16 operands) -- bounds bf16 drift.
    #     Compared in un-normalized image space so 1/std does not amplify rounding.
    ref_f32 = jax.block_until_ready(
        reference(x_bf, ah_bf, aw_bf, jitf, mean, std, matmul_dtype=jnp.float32))
    scale = np.asarray(STD)[None, :, None, None]
    assert np.allclose(out_np * scale, np.asarray(ref_f32) * scale, atol=5e-2), \
        "bf16 drift exceeds bound vs f32 reference"

    print("KERNEL_OK")
</pallas_src>

<mosaic_0001>
module attributes {stable_mosaic.version = 11 : i64} {
  func.func @apply_aug_kernel(%arg0: i32, %arg1: memref<4x3x40x40xbf16, #tpu.memory_space<vmem>>, %arg2: memref<4x32x40xbf16, #tpu.memory_space<vmem>>, %arg3: memref<4x40x32xbf16, #tpu.memory_space<vmem>>, %arg4: memref<24xf32, #tpu.memory_space<smem>>, %arg5: memref<3xf32, #tpu.memory_space<smem>>, %arg6: memref<3xf32, #tpu.memory_space<smem>>, %arg7: memref<3xf32, #tpu.memory_space<smem>>, %arg8: memref<1x32x384xf32, #tpu.memory_space<vmem>>) attributes {dimension_semantics = [#tpu.dimension_semantics<parallel>], iteration_bounds = array<i64: 2>, scalar_prefetch = 0 : i64, scratch_operands = 0 : i64, tpu.core_type = #tpu.core_type<tc>, window_params = [{transform_indices = @transform_0, window_bounds = array<i64: 4, 3, 40, 40>}, {transform_indices = @transform_1, window_bounds = array<i64: 4, 32, 40>}, {transform_indices = @transform_2, window_bounds = array<i64: 4, 40, 32>}, {transform_indices = @transform_3, window_bounds = array<i64: 24>}, {transform_indices = @transform_4, window_bounds = array<i64: 3>}, {transform_indices = @transform_5, window_bounds = array<i64: 3>}, {transform_indices = @transform_6, window_bounds = array<i64: 3>}, {transform_indices = @transform_7, window_bounds = array<i64: 1, 32, 384>}]} {
    %c4_i32 = arith.constant 4 : i32
    %0 = arith.muli %arg0, %c4_i32 : i32
    %c0 = arith.constant 0 : index
    %c0_0 = arith.constant 0 : index
    %c0_1 = arith.constant 0 : index
    %1 = vector.load %arg2[%c0, %c0_0, %c0_1] : memref<4x32x40xbf16, #tpu.memory_space<vmem>>, vector<1x32x40xbf16>
    %2 = vector.shape_cast %1 : vector<1x32x40xbf16> to vector<32x40xbf16>
    %c0_2 = arith.constant 0 : index
    %c0_3 = arith.constant 0 : index
    %c0_4 = arith.constant 0 : index
    %3 = vector.load %arg3[%c0_2, %c0_3, %c0_4] : memref<4x40x32xbf16, #tpu.memory_space<vmem>>, vector<1x40x32xbf16>
    %4 = vector.shape_cast %3 : vector<1x40x32xbf16> to vector<40x32xbf16>
    %c0_i32 = arith.constant 0 : i32
    %5 = arith.addi %0, %c0_i32 : i32
    %c3_i32 = arith.constant 3 : i32
    %6 = arith.muli %5, %c3_i32 : i32
    %c0_i32_5 = arith.constant 0 : i32
    %7 = arith.addi %6, %c0_i32_5 : i32
    %8 = arith.index_cast %7 : i32 to index
    %9 = memref.load %arg4[%8] : memref<24xf32, #tpu.memory_space<smem>>
    %c1_i32 = arith.constant 1 : i32
    %10 = arith.addi %6, %c1_i32 : i32
    %11 = arith.index_cast %10 : i32 to index
    %12 = memref.load %arg4[%11] : memref<24xf32, #tpu.memory_space<smem>>
    %c2_i32 = arith.constant 2 : i32
    %13 = arith.addi %6, %c2_i32 : i32
    %14 = arith.index_cast %13 : i32 to index
    %15 = memref.load %arg4[%14] : memref<24xf32, #tpu.memory_space<smem>>
    %c0_6 = arith.constant 0 : index
    %c0_7 = arith.constant 0 : index
    %c0_8 = arith.constant 0 : index
    %c0_9 = arith.constant 0 : index
    %16 = vector.load %arg1[%c0_6, %c0_7, %c0_8, %c0_9] : memref<4x3x40x40xbf16, #tpu.memory_space<vmem>>, vector<1x1x40x40xbf16>
    %17 = vector.shape_cast %16 : vector<1x1x40x40xbf16> to vector<40x40xbf16>
    %18 = arith.extf %17 : vector<40x40xbf16> to vector<40x40xf32>
    %c0_10 = arith.constant 0 : index
    %19 = memref.load %arg6[%c0_10] : memref<3xf32, #tpu.memory_space<smem>>
    %20 = vector.broadcast %19 : f32 to vector<40x40xf32>
    %21 = arith.mulf %18, %20 : vector<40x40xf32>
    %c0_11 = arith.constant 0 : index
    %22 = memref.load %arg5[%c0_11] : memref<3xf32, #tpu.memory_space<smem>>
    %23 = vector.broadcast %22 : f32 to vector<40x40xf32>
    %24 = arith.addf %21, %23 : vector<40x40xf32>
    %c0_12 = arith.constant 0 : index
    %c1 = arith.constant 1 : index
    %c0_13 = arith.constant 0 : index
    %c0_14 = arith.constant 0 : index
    %25 = vector.load %arg1[%c0_12, %c1, %c0_13, %c0_14] : memref<4x3x40x40xbf16, #tpu.memory_space<vmem>>, vector<1x1x40x40xbf16>
    %26 = vector.shape_cast %25 : vector<1x1x40x40xbf16> to vector<40x40xbf16>
    %27 = arith.extf %26 : vector<40x40xbf16> to vector<40x40xf32>
    %c1_15 = arith.constant 1 : index
    %28 = memref.load %arg6[%c1_15] : memref<3xf32, #tpu.memory_space<smem>>
    %29 = vector.broadcast %28 : f32 to vector<40x40xf32>
    %30 = arith.mulf %27, %29 : vector<40x40xf32>
    %c1_16 = arith.constant 1 : index
    %31 = memref.load %arg5[%c1_16] : memref<3xf32, #tpu.memory_space<smem>>
    %32 = vector.broadcast %31 : f32 to vector<40x40xf32>
    %33 = arith.addf %30, %32 : vector<40x40xf32>
    %c0_17 = arith.constant 0 : index
    %c2 = arith.constant 2 : index
    %c0_18 = arith.constant 0 : index
    %c0_19 = arith.constant 0 : index
    %34 = vector.load %arg1[%c0_17, %c2, %c0_18, %c0_19] : memref<4x3x40x40xbf16, #tpu.memory_space<vmem>>, vector<1x1x40x40xbf16>
    %35 = vector.shape_cast %34 : vector<1x1x40x40xbf16> to vector<40x40xbf16>
    %36 = arith.extf %35 : vector<40x40xbf16> to vector<40x40xf32>
    %c2_20 = arith.constant 2 : index
    %37 = memref.load %arg6[%c2_20] : memref<3xf32, #tpu.memory_space<smem>>
    %38 = vector.broadcast %37 : f32 to vector<40x40xf32>
    %39 = arith.mulf %36, %38 : vector<40x40xf32>
    %c2_21 = arith.constant 2 : index
    %40 = memref.load %arg5[%c2_21] : memref<3xf32, #tpu.memory_space<smem>>
    %41 = vector.broadcast %40 : f32 to vector<40x40xf32>
    %42 = arith.addf %39, %41 : vector<40x40xf32>
    %43 = tpu.concatenate %24, %33, %42 in 0 : vector<40x40xf32>, vector<40x40xf32>, vector<40x40xf32> -> vector<120x40xf32>
    %44 = arith.truncf %43 : vector<120x40xf32> to vector<120x40xbf16>
    %cst = arith.constant dense<0.000000e+00> : vector<120x32xf32>
    %45 = tpu.matmul %44, %4, %cst {dimension_numbers = #tpu.dot_dimension_numbers<[1], [0], [0], [1], [0, 0, 1, 1], [], []>} : vector<120x40xbf16>, vector<40x32xbf16>, vector<120x32xf32> -> vector<120x32xf32>
    %46 = vector.extract_strided_slice %45 {offsets = [0, 0], sizes = [40, 32], strides = [1, 1]} : vector<120x32xf32> to vector<40x32xf32>
    %47 = arith.truncf %46 : vector<40x32xf32> to vector<40x32xbf16>
    %cst_22 = arith.constant dense<0.000000e+00> : vector<32x32xf32>
    %48 = tpu.matmul %2, %47, %cst_22 {dimension_numbers = #tpu.dot_dimension_numbers<[1], [0], [0], [1], [0, 0, 1, 1], [], []>} : vector<32x40xbf16>, vector<40x32xbf16>, vector<32x32xf32> -> vector<32x32xf32>
    %49 = vector.broadcast %9 : f32 to vector<32x32xf32>
    %50 = arith.mulf %48, %49 : vector<32x32xf32>
    %cst_23 = arith.constant 0.000000e+00 : f32
    %cst_24 = arith.constant 1.000000e+00 : f32
    %51 = vector.broadcast %cst_23 : f32 to vector<32x32xf32>
    %52 = arith.maximumf %51, %50 : vector<32x32xf32>
    %53 = vector.broadcast %cst_24 : f32 to vector<32x32xf32>
    %54 = arith.minimumf %53, %52 : vector<32x32xf32>
    %55 = vector.extract_strided_slice %45 {offsets = [40, 0], sizes = [40, 32], strides = [1, 1]} : vector<120x32xf32> to vector<40x32xf32>
    %56 = arith.truncf %55 : vector<40x32xf32> to vector<40x32xbf16>
    %cst_25 = arith.constant dense<0.000000e+00> : vector<32x32xf32>
    %57 = tpu.matmul %2, %56, %cst_25 {dimension_numbers = #tpu.dot_dimension_numbers<[1], [0], [0], [1], [0, 0, 1, 1], [], []>} : vector<32x40xbf16>, vector<40x32xbf16>, vector<32x32xf32> -> vector<32x32xf32>
    %58 = vector.broadcast %9 : f32 to vector<32x32xf32>
    %59 = arith.mulf %57, %58 : vector<32x32xf32>
    %cst_26 = arith.constant 0.000000e+00 : f32
    %cst_27 = arith.constant 1.000000e+00 : f32
    %60 = vector.broadcast %cst_26 : f32 to vector<32x32xf32>
    %61 = arith.maximumf %60, %59 : vector<32x32xf32>
    %62 = vector.broadcast %cst_27 : f32 to vector<32x32xf32>
    %63 = arith.minimumf %62, %61 : vector<32x32xf32>
    %64 = vector.extract_strided_slice %45 {offsets = [80, 0], sizes = [40, 32], strides = [1, 1]} : vector<120x32xf32> to vector<40x32xf32>
    %65 = arith.truncf %64 : vector<40x32xf32> to vector<40x32xbf16>
    %cst_28 = arith.constant dense<0.000000e+00> : vector<32x32xf32>
    %66 = tpu.matmul %2, %65, %cst_28 {dimension_numbers = #tpu.dot_dimension_numbers<[1], [0], [0], [1], [0, 0, 1, 1], [], []>} : vector<32x40xbf16>, vector<40x32xbf16>, vector<32x32xf32> -> vector<32x32xf32>
    %67 = vector.broadcast %9 : f32 to vector<32x32xf32>
    %68 = arith.mulf %66, %67 : vector<32x32xf32>
    %cst_29 = arith.constant 0.000000e+00 : f32
    %cst_30 = arith.constant 1.000000e+00 : f32
    %69 = vector.broadcast %cst_29 : f32 to vector<32x32xf32>
    %70 = arith.maximumf %69, %68 : vector<32x32xf32>
    %71 = vector.broadcast %cst_30 : f32 to vector<32x32xf32>
    %72 = arith.minimumf %71, %70 : vector<32x32xf32>
    %cst_31 = arith.constant 2.990000e-01 : f32
    %73 = vector.broadcast %cst_31 : f32 to vector<32x32xf32>
    %74 = arith.mulf %73, %54 : vector<32x32xf32>
    %cst_32 = arith.constant 5.870000e-01 : f32
    %75 = vector.broadcast %cst_32 : f32 to vector<32x32xf32>
    %76 = arith.mulf %75, %63 : vector<32x32xf32>
    %77 = arith.addf %74, %76 : vector<32x32xf32>
    %cst_33 = arith.constant 1.140000e-01 : f32
    %78 = vector.broadcast %cst_33 : f32 to vector<32x32xf32>
    %79 = arith.mulf %78, %72 : vector<32x32xf32>
    %80 = arith.addf %77, %79 : vector<32x32xf32>
    %81 = vector.shape_cast %80 : vector<32x32xf32> to vector<1x32x32xf32>
    %cst_34 = arith.constant dense<0.000000e+00> : vector<1xf32>
    %82 = vector.multi_reduction <add>, %81, %cst_34 [1, 2] : vector<1x32x32xf32> to vector<1xf32>
    %83 = vector.shape_cast %82 : vector<1xf32> to vector<1x1x1xf32>
    %84 = vector.extract %83[0, 0, 0] : f32 from vector<1x1x1xf32>
    %cst_35 = arith.constant 1.024000e+03 : f32
    %85 = arith.divf %84, %cst_35 : f32
    %86 = vector.broadcast %12 : f32 to vector<32x32xf32>
    %87 = arith.mulf %86, %54 : vector<32x32xf32>
    %cst_36 = arith.constant 1.000000e+00 : f32
    %88 = arith.subf %cst_36, %12 : f32
    %89 = arith.mulf %88, %85 : f32
    %90 = vector.broadcast %89 : f32 to vector<32x32xf32>
    %91 = arith.addf %87, %90 : vector<32x32xf32>
    %cst_37 = arith.constant 0.000000e+00 : f32
    %cst_38 = arith.constant 1.000000e+00 : f32
    %92 = vector.broadcast %cst_37 : f32 to vector<32x32xf32>
    %93 = arith.maximumf %92, %91 : vector<32x32xf32>
    %94 = vector.broadcast %cst_38 : f32 to vector<32x32xf32>
    %95 = arith.minimumf %94, %93 : vector<32x32xf32>
    %96 = vector.broadcast %12 : f32 to vector<32x32xf32>
    %97 = arith.mulf %96, %63 : vector<32x32xf32>
    %cst_39 = arith.constant 1.000000e+00 : f32
    %98 = arith.subf %cst_39, %12 : f32
    %99 = arith.mulf %98, %85 : f32
    %100 = vector.broadcast %99 : f32 to vector<32x32xf32>
    %101 = arith.addf %97, %100 : vector<32x32xf32>
    %cst_40 = arith.constant 0.000000e+00 : f32
    %cst_41 = arith.constant 1.000000e+00 : f32
    %102 = vector.broadcast %cst_40 : f32 to vector<32x32xf32>
    %103 = arith.maximumf %102, %101 : vector<32x32xf32>
    %104 = vector.broadcast %cst_41 : f32 to vector<32x32xf32>
    %105 = arith.minimumf %104, %103 : vector<32x32xf32>
    %106 = vector.broadcast %12 : f32 to vector<32x32xf32>
    %107 = arith.mulf %106, %72 : vector<32x32xf32>
    %cst_42 = arith.constant 1.000000e+00 : f32
    %108 = arith.subf %cst_42, %12 : f32
    %109 = arith.mulf %108, %85 : f32
    %110 = vector.broadcast %109 : f32 to vector<32x32xf32>
    %111 = arith.addf %107, %110 : vector<32x32xf32>
    %cst_43 = arith.constant 0.000000e+00 : f32
    %cst_44 = arith.constant 1.000000e+00 : f32
    %112 = vector.broadcast %cst_43 : f32 to vector<32x32xf32>
    %113 = arith.maximumf %112, %111 : vector<32x32xf32>
    %114 = vector.broadcast %cst_44 : f32 to vector<32x32xf32>
    %115 = arith.minimumf %114, %113 : vector<32x32xf32>
    %cst_45 = arith.constant 2.990000e-01 : f32
    %116 = vector.broadcast %cst_45 : f32 to vector<32x32xf32>
    %117 = arith.mulf %116, %95 : vector<32x32xf32>
    %cst_46 = arith.constant 5.870000e-01 : f32
    %118 = vector.broadcast %cst_46 : f32 to vector<32x32xf32>
    %119 = arith.mulf %118, %105 : vector<32x32xf32>
    %120 = arith.addf %117, %119 : vector<32x32xf32>
    %cst_47 = arith.constant 1.140000e-01 : f32
    %121 = vector.broadcast %cst_47 : f32 to vector<32x32xf32>
    %122 = arith.mulf %121, %115 : vector<32x32xf32>
    %123 = arith.addf %120, %122 : vector<32x32xf32>
    %124 = vector.broadcast %15 : f32 to vector<32x32xf32>
    %125 = arith.mulf %124, %95 : vector<32x32xf32>
    %cst_48 = arith.constant 1.000000e+00 : f32
    %126 = arith.subf %cst_48, %15 : f32
    %127 = vector.broadcast %126 : f32 to vector<32x32xf32>
    %128 = arith.mulf %127, %123 : vector<32x32xf32>
    %129 = arith.addf %125, %128 : vector<32x32xf32>
    %cst_49 = arith.constant 0.000000e+00 : f32
    %cst_50 = arith.constant 1.000000e+00 : f32
    %130 = vector.broadcast %cst_49 : f32 to vector<32x32xf32>
    %131 = arith.maximumf %130, %129 : vector<32x32xf32>
    %132 = vector.broadcast %cst_50 : f32 to vector<32x32xf32>
    %133 = arith.minimumf %132, %131 : vector<32x32xf32>
    %134 = vector.broadcast %15 : f32 to vector<32x32xf32>
    %135 = arith.mulf %134, %105 : vector<32x32xf32>
    %cst_51 = arith.constant 1.000000e+00 : f32
    %136 = arith.subf %cst_51, %15 : f32
    %137 = vector.broadcast %136 : f32 to vector<32x32xf32>
    %138 = arith.mulf %137, %123 : vector<32x32xf32>
    %139 = arith.addf %135, %138 : vector<32x32xf32>
    %cst_52 = arith.constant 0.000000e+00 : f32
    %cst_53 = arith.constant 1.000000e+00 : f32
    %140 = vector.broadcast %cst_52 : f32 to vector<32x32xf32>
    %141 = arith.maximumf %140, %139 : vector<32x32xf32>
    %142 = vector.broadcast %cst_53 : f32 to vector<32x32xf32>
    %143 = arith.minimumf %142, %141 : vector<32x32xf32>
    %144 = vector.broadcast %15 : f32 to vector<32x32xf32>
    %145 = arith.mulf %144, %115 : vector<32x32xf32>
    %cst_54 = arith.constant 1.000000e+00 : f32
    %146 = arith.subf %cst_54, %15 : f32
    %147 = vector.broadcast %146 : f32 to vector<32x32xf32>
    %148 = arith.mulf %147, %123 : vector<32x32xf32>
    %149 = arith.addf %145, %148 : vector<32x32xf32>
    %cst_55 = arith.constant 0.000000e+00 : f32
    %cst_56 = arith.constant 1.000000e+00 : f32
    %150 = vector.broadcast %cst_55 : f32 to vector<32x32xf32>
    %151 = arith.maximumf %150, %149 : vector<32x32xf32>
    %152 = vector.broadcast %cst_56 : f32 to vector<32x32xf32>
    %153 = arith.minimumf %152, %151 : vector<32x32xf32>
    %c0_57 = arith.constant 0 : index
    %154 = memref.load %arg5[%c0_57] : memref<3xf32, #tpu.memory_space<smem>>
    %155 = vector.broadcast %154 : f32 to vector<32x32xf32>
    %156 = arith.subf %133, %155 : vector<32x32xf32>
    %c0_58 = arith.constant 0 : index
    %157 = memref.load %arg7[%c0_58] : memref<3xf32, #tpu.memory_space<smem>>
    %158 = vector.broadcast %157 : f32 to vector<32x32xf32>
    %159 = arith.mulf %156, %158 : vector<32x32xf32>
    %c1_59 = arith.constant 1 : index
    %160 = memref.load %arg5[%c1_59] : memref<3xf32, #tpu.memory_space<smem>>
    %161 = vector.broadcast %160 : f32 to vector<32x32xf32>
    %162 = arith.subf %143, %161 : vector<32x32xf32>
    %c1_60 = arith.constant 1 : index
    %163 = memref.load %arg7[%c1_60] : memref<3xf32, #tpu.memory_space<smem>>
    %164 = vector.broadcast %163 : f32 to vector<32x32xf32>
    %165 = arith.mulf %162, %164 : vector<32x32xf32>
    %c2_61 = arith.constant 2 : index
    %166 = memref.load %arg5[%c2_61] : memref<3xf32, #tpu.memory_space<smem>>
    %167 = vector.broadcast %166 : f32 to vector<32x32xf32>
    %168 = arith.subf %153, %167 : vector<32x32xf32>
    %c2_62 = arith.constant 2 : index
    %169 = memref.load %arg7[%c2_62] : memref<3xf32, #tpu.memory_space<smem>>
    %170 = vector.broadcast %169 : f32 to vector<32x32xf32>
    %171 = arith.mulf %168, %170 : vector<32x32xf32>
    %172 = tpu.concatenate %159, %165, %171 in 1 : vector<32x32xf32>, vector<32x32xf32>, vector<32x32xf32> -> vector<32x96xf32>
    %c1_63 = arith.constant 1 : index
    %c0_64 = arith.constant 0 : index
    %c0_65 = arith.constant 0 : index
    %173 = vector.load %arg2[%c1_63, %c0_64, %c0_65] : memref<4x32x40xbf16, #tpu.memory_space<vmem>>, vector<1x32x40xbf16>
    %174 = vector.shape_cast %173 : vector<1x32x40xbf16> to vector<32x40xbf16>
    %c1_66 = arith.constant 1 : index
    %c0_67 = arith.constant 0 : index
    %c0_68 = arith.constant 0 : index
    %175 = vector.load %arg3[%c1_66, %c0_67, %c0_68] : memref<4x40x32xbf16, #tpu.memory_space<vmem>>, vector<1x40x32xbf16>
    %176 = vector.shape_cast %175 : vector<1x40x32xbf16> to vector<40x32xbf16>
    %c1_i32_69 = arith.constant 1 : i32
    %177 = arith.addi %0, %c1_i32_69 : i32
    %c3_i32_70 = arith.constant 3 : i32
    %178 = arith.muli %177, %c3_i32_70 : i32
    %c0_i32_71 = arith.constant 0 : i32
    %179 = arith.addi %178, %c0_i32_71 : i32
    %180 = arith.index_cast %179 : i32 to index
    %181 = memref.load %arg4[%180] : memref<24xf32, #tpu.memory_space<smem>>
    %c1_i32_72 = arith.constant 1 : i32
    %182 = arith.addi %178, %c1_i32_72 : i32
    %183 = arith.index_cast %182 : i32 to index
    %184 = memref.load %arg4[%183] : memref<24xf32, #tpu.memory_space<smem>>
    %c2_i32_73 = arith.constant 2 : i32
    %185 = arith.addi %178, %c2_i32_73 : i32
    %186 = arith.index_cast %185 : i32 to index
    %187 = memref.load %arg4[%186] : memref<24xf32, #tpu.memory_space<smem>>
    %c1_74 = arith.constant 1 : index
    %c0_75 = arith.constant 0 : index
    %c0_76 = arith.constant 0 : index
    %c0_77 = arith.constant 0 : index
    %188 = vector.load %arg1[%c1_74, %c0_75, %c0_76, %c0_77] : memref<4x3x40x40xbf16, #tpu.memory_space<vmem>>, vector<1x1x40x40xbf16>
    %189 = vector.shape_cast %188 : vector<1x1x40x40xbf16> to vector<40x40xbf16>
    %190 = arith.extf %189 : vector<40x40xbf16> to vector<40x40xf32>
    %c0_78 = arith.constant 0 : index
    %191 = memref.load %arg6[%c0_78] : memref<3xf32, #tpu.memory_space<smem>>
    %192 = vector.broadcast %191 : f32 to vector<40x40xf32>
    %193 = arith.mulf %190, %192 : vector<40x40xf32>
    %c0_79 = arith.constant 0 : index
    %194 = memref.load %arg5[%c0_79] : memref<3xf32, #tpu.memory_space<smem>>
    %195 = vector.broadcast %194 : f32 to vector<40x40xf32>
    %196 = arith.addf %193, %195 : vector<40x40xf32>
    %c1_80 = arith.constant 1 : index
    %c1_81 = arith.constant 1 : index
    %c0_82 = arith.constant 0 : index
    %c0_83 = arith.constant 0 : index
    %197 = vector.load %arg1[%c1_80, %c1_81, %c0_82, %c0_83] : memref<4x3x40x40xbf16, #tpu.memory_space<vmem>>, vector<1x1x40x40xbf16>
    %198 = vector.shape_cast %197 : vector<1x1x40x40xbf16> to vector<40x40xbf16>
    %199 = arith.extf %198 : vector<40x40xbf16> to vector<40x40xf32>
    %c1_84 = arith.constant 1 : index
    %200 = memref.load %arg6[%c1_84] : memref<3xf32, #tpu.memory_space<smem>>
    %201 = vector.broadcast %200 : f32 to vector<40x40xf32>
    %202 = arith.mulf %199, %201 : vector<40x40xf32>
    %c1_85 = arith.constant 1 : index
    %203 = memref.load %arg5[%c1_85] : memref<3xf32, #tpu.memory_space<smem>>
    %204 = vector.broadcast %203 : f32 to vector<40x40xf32>
    %205 = arith.addf %202, %204 : vector<40x40xf32>
    %c1_86 = arith.constant 1 : index
    %c2_87 = arith.constant 2 : index
    %c0_88 = arith.constant 0 : index
    %c0_89 = arith.constant 0 : index
    %206 = vector.load %arg1[%c1_86, %c2_87, %c0_88, %c0_89] : memref<4x3x40x40xbf16, #tpu.memory_space<vmem>>, vector<1x1x40x40xbf16>
    %207 = vector.shape_cast %206 : vector<1x1x40x40xbf16> to vector<40x40xbf16>
    %208 = arith.extf %207 : vector<40x40xbf16> to vector<40x40xf32>
    %c2_90 = arith.constant 2 : index
    %209 = memref.load %arg6[%c2_90] : memref<3xf32, #tpu.memory_space<smem>>
    %210 = vector.broadcast %209 : f32 to vector<40x40xf32>
    %211 = arith.mulf %208, %210 : vector<40x40xf32>
    %c2_91 = arith.constant 2 : index
    %212 = memref.load %arg5[%c2_91] : memref<3xf32, #tpu.memory_space<smem>>
    %213 = vector.broadcast %212 : f32 to vector<40x40xf32>
    %214 = arith.addf %211, %213 : vector<40x40xf32>
    %215 = tpu.concatenate %196, %205, %214 in 0 : vector<40x40xf32>, vector<40x40xf32>, vector<40x40xf32> -> vector<120x40xf32>
    %216 = arith.truncf %215 : vector<120x40xf32> to vector<120x40xbf16>
    %cst_92 = arith.constant dense<0.000000e+00> : vector<120x32xf32>
    %217 = tpu.matmul %216, %176, %cst_92 {dimension_numbers = #tpu.dot_dimension_numbers<[1], [0], [0], [1], [0, 0, 1, 1], [], []>} : vector<120x40xbf16>, vector<40x32xbf16>, vector<120x32xf32> -> vector<120x32xf32>
    %218 = vector.extract_strided_slice %217 {offsets = [0, 0], sizes = [40, 32], strides = [1, 1]} : vector<120x32xf32> to vector<40x32xf32>
    %219 = arith.truncf %218 : vector<40x32xf32> to vector<40x32xbf16>
    %cst_93 = arith.constant dense<0.000000e+00> : vector<32x32xf32>
    %220 = tpu.matmul %174, %219, %cst_93 {dimension_numbers = #tpu.dot_dimension_numbers<[1], [0], [0], [1], [0, 0, 1, 1], [], []>} : vector<32x40xbf16>, vector<40x32xbf16>, vector<32x32xf32> -> vector<32x32xf32>
    %221 = vector.broadcast %181 : f32 to vector<32x32xf32>
    %222 = arith.mulf %220, %221 : vector<32x32xf32>
    %cst_94 = arith.constant 0.000000e+00 : f32
    %cst_95 = arith.constant 1.000000e+00 : f32
    %223 = vector.broadcast %cst_94 : f32 to vector<32x32xf32>
    %224 = arith.maximumf %223, %222 : vector<32x32xf32>
    %225 = vector.broadcast %cst_95 : f32 to vector<32x32xf32>
    %226 = arith.minimumf %225, %224 : vector<32x32xf32>
    %227 = vector.extract_strided_slice %217 {offsets = [40, 0], sizes = [40, 32], strides = [1, 1]} : vector<120x32xf32> to vector<40x32xf32>
    %228 = arith.truncf %227 : vector<40x32xf32> to vector<40x32xbf16>
    %cst_96 = arith.constant dense<0.000000e+00> : vector<32x32xf32>
    %229 = tpu.matmul %174, %228, %cst_96 {dimension_numbers = #tpu.dot_dimension_numbers<[1], [0], [0], [1], [0, 0, 1, 1], [], []>} : vector<32x40xbf16>, vector<40x32xbf16>, vector<32x32xf32> -> vector<32x32xf32>
    %230 = vector.broadcast %181 : f32 to vector<32x32xf32>
    %231 = arith.mulf %229, %230 : vector<32x32xf32>
    %cst_97 = arith.constant 0.000000e+00 : f32
    %cst_98 = arith.constant 1.000000e+00 : f32
    %232 = vector.broadcast %cst_97 : f32 to vector<32x32xf32>
    %233 = arith.maximumf %232, %231 : vector<32x32xf32>
    %234 = vector.broadcast %cst_98 : f32 to vector<32x32xf32>
    %235 = arith.minimumf %234, %233 : vector<32x32xf32>
    %236 = vector.extract_strided_slice %217 {offsets = [80, 0], sizes = [40, 32], strides = [1, 1]} : vector<120x32xf32> to vector<40x32xf32>
    %237 = arith.truncf %236 : vector<40x32xf32> to vector<40x32xbf16>
    %cst_99 = arith.constant dense<0.000000e+00> : vector<32x32xf32>
    %238 = tpu.matmul %174, %237, %cst_99 {dimension_numbers = #tpu.dot_dimension_numbers<[1], [0], [0], [1], [0, 0, 1, 1], [], []>} : vector<32x40xbf16>, vector<40x32xbf16>, vector<32x32xf32> -> vector<32x32xf32>
    %239 = vector.broadcast %181 : f32 to vector<32x32xf32>
    %240 = arith.mulf %238, %239 : vector<32x32xf32>
    %cst_100 = arith.constant 0.000000e+00 : f32
    %cst_101 = arith.constant 1.000000e+00 : f32
    %241 = vector.broadcast %cst_100 : f32 to vector<32x32xf32>
    %242 = arith.maximumf %241, %240 : vector<32x32xf32>
    %243 = vector.broadcast %cst_101 : f32 to vector<32x32xf32>
    %244 = arith.minimumf %243, %242 : vector<32x32xf32>
    %cst_102 = arith.constant 2.990000e-01 : f32
    %245 = vector.broadcast %cst_102 : f32 to vector<32x32xf32>
    %246 = arith.mulf %245, %226 : vector<32x32xf32>
    %cst_103 = arith.constant 5.870000e-01 : f32
    %247 = vector.broadcast %cst_103 : f32 to vector<32x32xf32>
    %248 = arith.mulf %247, %235 : vector<32x32xf32>
    %249 = arith.addf %246, %248 : vector<32x32xf32>
    %cst_104 = arith.constant 1.140000e-01 : f32
    %250 = vector.broadcast %cst_104 : f32 to vector<32x32xf32>
    %251 = arith.mulf %250, %244 : vector<32x32xf32>
    %252 = arith.addf %249, %251 : vector<32x32xf32>
    %253 = vector.shape_cast %252 : vector<32x32xf32> to vector<1x32x32xf32>
    %cst_105 = arith.constant dense<0.000000e+00> : vector<1xf32>
    %254 = vector.multi_reduction <add>, %253, %cst_105 [1, 2] : vector<1x32x32xf32> to vector<1xf32>
    %255 = vector.shape_cast %254 : vector<1xf32> to vector<1x1x1xf32>
    %256 = vector.extract %255[0, 0, 0] : f32 from vector<1x1x1xf32>
    %cst_106 = arith.constant 1.024000e+03 : f32
    %257 = arith.divf %256, %cst_106 : f32
    %258 = vector.broadcast %184 : f32 to vector<32x32xf32>
    %259 = arith.mulf %258, %226 : vector<32x32xf32>
    %cst_107 = arith.constant 1.000000e+00 : f32
    %260 = arith.subf %cst_107, %184 : f32
    %261 = arith.mulf %260, %257 : f32
    %262 = vector.broadcast %261 : f32 to vector<32x32xf32>
    %263 = arith.addf %259, %262 : vector<32x32xf32>
    %cst_108 = arith.constant 0.000000e+00 : f32
    %cst_109 = arith.constant 1.000000e+00 : f32
    %264 = vector.broadcast %cst_108 : f32 to vector<32x32xf32>
    %265 = arith.maximumf %264, %263 : vector<32x32xf32>
    %266 = vector.broadcast %cst_109 : f32 to vector<32x32xf32>
    %267 = arith.minimumf %266, %265 : vector<32x32xf32>
    %268 = vector.broadcast %184 : f32 to vector<32x32xf32>
    %269 = arith.mulf %268, %235 : vector<32x32xf32>
    %cst_110 = arith.constant 1.000000e+00 : f32
    %270 = arith.subf %cst_110, %184 : f32
    %271 = arith.mulf %270, %257 : f32
    %272 = vector.broadcast %271 : f32 to vector<32x32xf32>
    %273 = arith.addf %269, %272 : vector<32x32xf32>
    %cst_111 = arith.constant 0.000000e+00 : f32
    %cst_112 = arith.constant 1.000000e+00 : f32
    %274 = vector.broadcast %cst_111 : f32 to vector<32x32xf32>
    %275 = arith.maximumf %274, %273 : vector<32x32xf32>
    %276 = vector.broadcast %cst_112 : f32 to vector<32x32xf32>
    %277 = arith.minimumf %276, %275 : vector<32x32xf32>
    %278 = vector.broadcast %184 : f32 to vector<32x32xf32>
    %279 = arith.mulf %278, %244 : vector<32x32xf32>
    %cst_113 = arith.constant 1.000000e+00 : f32
    %280 = arith.subf %cst_113, %184 : f32
    %281 = arith.mulf %280, %257 : f32
    %282 = vector.broadcast %281 : f32 to vector<32x32xf32>
    %283 = arith.addf %279, %282 : vector<32x32xf32>
    %cst_114 = arith.constant 0.000000e+00 : f32
    %cst_115 = arith.constant 1.000000e+00 : f32
    %284 = vector.broadcast %cst_114 : f32 to vector<32x32xf32>
    %285 = arith.maximumf %284, %283 : vector<32x32xf32>
    %286 = vector.broadcast %cst_115 : f32 to vector<32x32xf32>
    %287 = arith.minimumf %286, %285 : vector<32x32xf32>
    %cst_116 = arith.constant 2.990000e-01 : f32
    %288 = vector.broadcast %cst_116 : f32 to vector<32x32xf32>
    %289 = arith.mulf %288, %267 : vector<32x32xf32>
    %cst_117 = arith.constant 5.870000e-01 : f32
    %290 = vector.broadcast %cst_117 : f32 to vector<32x32xf32>
    %291 = arith.mulf %290, %277 : vector<32x32xf32>
    %292 = arith.addf %289, %291 : vector<32x32xf32>
    %cst_118 = arith.constant 1.140000e-01 : f32
    %293 = vector.broadcast %cst_118 : f32 to vector<32x32xf32>
    %294 = arith.mulf %293, %287 : vector<32x32xf32>
    %295 = arith.addf %292, %294 : vector<32x32xf32>
    %296 = vector.broadcast %187 : f32 to vector<32x32xf32>
    %297 = arith.mulf %296, %267 : vector<32x32xf32>
    %cst_119 = arith.constant 1.000000e+00 : f32
    %298 = arith.subf %cst_119, %187 : f32
    %299 = vector.broadcast %298 : f32 to vector<32x32xf32>
    %300 = arith.mulf %299, %295 : vector<32x32xf32>
    %301 = arith.addf %297, %300 : vector<32x32xf32>
    %cst_120 = arith.constant 0.000000e+00 : f32
    %cst_121 = arith.constant 1.000000e+00 : f32
    %302 = vector.broadcast %cst_120 : f32 to vector<32x32xf32>
    %303 = arith.maximumf %302, %301 : vector<32x32xf32>
    %304 = vector.broadcast %cst_121 : f32 to vector<32x32xf32>
    %305 = arith.minimumf %304, %303 : vector<32x32xf32>
    %306 = vector.broadcast %187 : f32 to vector<32x32xf32>
    %307 = arith.mulf %306, %277 : vector<32x32xf32>
    %cst_122 = arith.constant 1.000000e+00 : f32
    %308 = arith.subf %cst_122, %187 : f32
    %309 = vector.broadcast %308 : f32 to vector<32x32xf32>
    %310 = arith.mulf %309, %295 : vector<32x32xf32>
    %311 = arith.addf %307, %310 : vector<32x32xf32>
    %cst_123 = arith.constant 0.000000e+00 : f32
    %cst_124 = arith.constant 1.000000e+00 : f32
    %312 = vector.broadcast %cst_123 : f32 to vector<32x32xf32>
    %313 = arith.maximumf %312, %311 : vector<32x32xf32>
    %314 = vector.broadcast %cst_124 : f32 to vector<32x32xf32>
    %315 = arith.minimumf %314, %313 : vector<32x32xf32>
    %316 = vector.broadcast %187 : f32 to vector<32x32xf32>
    %317 = arith.mulf %316, %287 : vector<32x32xf32>
    %cst_125 = arith.constant 1.000000e+00 : f32
    %318 = arith.subf %cst_125, %187 : f32
    %319 = vector.broadcast %318 : f32 to vector<32x32xf32>
    %320 = arith.mulf %319, %295 : vector<32x32xf32>
    %321 = arith.addf %317, %320 : vector<32x32xf32>
    %cst_126 = arith.constant 0.000000e+00 : f32
    %cst_127 = arith.constant 1.000000e+00 : f32
    %322 = vector.broadcast %cst_126 : f32 to vector<32x32xf32>
    %323 = arith.maximumf %322, %321 : vector<32x32xf32>
    %324 = vector.broadcast %cst_127 : f32 to vector<32x32xf32>
    %325 = arith.minimumf %324, %323 : vector<32x32xf32>
    %c0_128 = arith.constant 0 : index
    %326 = memref.load %arg5[%c0_128] : memref<3xf32, #tpu.memory_space<smem>>
    %327 = vector.broadcast %326 : f32 to vector<32x32xf32>
    %328 = arith.subf %305, %327 : vector<32x32xf32>
    %c0_129 = arith.constant 0 : index
    %329 = memref.load %arg7[%c0_129] : memref<3xf32, #tpu.memory_space<smem>>
    %330 = vector.broadcast %329 : f32 to vector<32x32xf32>
    %331 = arith.mulf %328, %330 : vector<32x32xf32>
    %c1_130 = arith.constant 1 : index
    %332 = memref.load %arg5[%c1_130] : memref<3xf32, #tpu.memory_space<smem>>
    %333 = vector.broadcast %332 : f32 to vector<32x32xf32>
    %334 = arith.subf %315, %333 : vector<32x32xf32>
    %c1_131 = arith.constant 1 : index
    %335 = memref.load %arg7[%c1_131] : memref<3xf32, #tpu.memory_space<smem>>
    %336 = vector.broadcast %335 : f32 to vector<32x32xf32>
    %337 = arith.mulf %334, %336 : vector<32x32xf32>
    %c2_132 = arith.constant 2 : index
    %338 = memref.load %arg5[%c2_132] : memref<3xf32, #tpu.memory_space<smem>>
    %339 = vector.broadcast %338 : f32 to vector<32x32xf32>
    %340 = arith.subf %325, %339 : vector<32x32xf32>
    %c2_133 = arith.constant 2 : index
    %341 = memref.load %arg7[%c2_133] : memref<3xf32, #tpu.memory_space<smem>>
    %342 = vector.broadcast %341 : f32 to vector<32x32xf32>
    %343 = arith.mulf %340, %342 : vector<32x32xf32>
    %344 = tpu.concatenate %331, %337, %343 in 1 : vector<32x32xf32>, vector<32x32xf32>, vector<32x32xf32> -> vector<32x96xf32>
    %c2_134 = arith.constant 2 : index
    %c0_135 = arith.constant 0 : index
    %c0_136 = arith.constant 0 : index
    %345 = vector.load %arg2[%c2_134, %c0_135, %c0_136] : memref<4x32x40xbf16, #tpu.memory_space<vmem>>, vector<1x32x40xbf16>
    %346 = vector.shape_cast %345 : vector<1x32x40xbf16> to vector<32x40xbf16>
    %c2_137 = arith.constant 2 : index
    %c0_138 = arith.constant 0 : index
    %c0_139 = arith.constant 0 : index
    %347 = vector.load %arg3[%c2_137, %c0_138, %c0_139] : memref<4x40x32xbf16, #tpu.memory_space<vmem>>, vector<1x40x32xbf16>
    %348 = vector.shape_cast %347 : vector<1x40x32xbf16> to vector<40x32xbf16>
    %c2_i32_140 = arith.constant 2 : i32
    %349 = arith.addi %0, %c2_i32_140 : i32
    %c3_i32_141 = arith.constant 3 : i32
    %350 = arith.muli %349, %c3_i32_141 : i32
    %c0_i32_142 = arith.constant 0 : i32
    %351 = arith.addi %350, %c0_i32_142 : i32
    %352 = arith.index_cast %351 : i32 to index
    %353 = memref.load %arg4[%352] : memref<24xf32, #tpu.memory_space<smem>>
    %c1_i32_143 = arith.constant 1 : i32
    %354 = arith.addi %350, %c1_i32_143 : i32
    %355 = arith.index_cast %354 : i32 to index
    %356 = memref.load %arg4[%355] : memref<24xf32, #tpu.memory_space<smem>>
    %c2_i32_144 = arith.constant 2 : i32
    %357 = arith.addi %350, %c2_i32_144 : i32
    %358 = arith.index_cast %357 : i32 to index
    %359 = memref.load %arg4[%358] : memref<24xf32, #tpu.memory_space<smem>>
    %c2_145 = arith.constant 2 : index
    %c0_146 = arith.constant 0 : index
    %c0_147 = arith.constant 0 : index
    %c0_148 = arith.constant 0 : index
    %360 = vector.load %arg1[%c2_145, %c0_146, %c0_147, %c0_148] : memref<4x3x40x40xbf16, #tpu.memory_space<vmem>>, vector<1x1x40x40xbf16>
    %361 = vector.shape_cast %360 : vector<1x1x40x40xbf16> to vector<40x40xbf16>
    %362 = arith.extf %361 : vector<40x40xbf16> to vector<40x40xf32>
    %c0_149 = arith.constant 0 : index
    %363 = memref.load %arg6[%c0_149] : memref<3xf32, #tpu.memory_space<smem>>
    %364 = vector.broadcast %363 : f32 to vector<40x40xf32>
    %365 = arith.mulf %362, %364 : vector<40x40xf32>
    %c0_150 = arith.constant 0 : index
    %366 = memref.load %arg5[%c0_150] : memref<3xf32, #tpu.memory_space<smem>>
    %367 = vector.broadcast %366 : f32 to vector<40x40xf32>
    %368 = arith.addf %365, %367 : vector<40x40xf32>
    %c2_151 = arith.constant 2 : index
    %c1_152 = arith.constant 1 : index
    %c0_153 = arith.constant 0 : index
    %c0_154 = arith.constant 0 : index
    %369 = vector.load %arg1[%c2_151, %c1_152, %c0_153, %c0_154] : memref<4x3x40x40xbf16, #tpu.memory_space<vmem>>, vector<1x1x40x40xbf16>
    %370 = vector.shape_cast %369 : vector<1x1x40x40xbf16> to vector<40x40xbf16>
    %371 = arith.extf %370 : vector<40x40xbf16> to vector<40x40xf32>
    %c1_155 = arith.constant 1 : index
    %372 = memref.load %arg6[%c1_155] : memref<3xf32, #tpu.memory_space<smem>>
    %373 = vector.broadcast %372 : f32 to vector<40x40xf32>
    %374 = arith.mulf %371, %373 : vector<40x40xf32>
    %c1_156 = arith.constant 1 : index
    %375 = memref.load %arg5[%c1_156] : memref<3xf32, #tpu.memory_space<smem>>
    %376 = vector.broadcast %375 : f32 to vector<40x40xf32>
    %377 = arith.addf %374, %376 : vector<40x40xf32>
    %c2_157 = arith.constant 2 : index
    %c2_158 = arith.constant 2 : index
    %c0_159 = arith.constant 0 : index
    %c0_160 = arith.constant 0 : index
    %378 = vector.load %arg1[%c2_157, %c2_158, %c0_159, %c0_160] : memref<4x3x40x40xbf16, #tpu.memory_space<vmem>>, vector<1x1x40x40xbf16>
    %379 = vector.shape_cast %378 : vector<1x1x40x40xbf16> to vector<40x40xbf16>
    %380 = arith.extf %379 : vector<40x40xbf16> to vector<40x40xf32>
    %c2_161 = arith.constant 2 : index
    %381 = memref.load %arg6[%c2_161] : memref<3xf32, #tpu.memory_space<smem>>
    %382 = vector.broadcast %381 : f32 to vector<40x40xf32>
    %383 = arith.mulf %380, %382 : vector<40x40xf32>
    %c2_162 = arith.constant 2 : index
    %384 = memref.load %arg5[%c2_162] : memref<3xf32, #tpu.memory_space<smem>>
    %385 = vector.broadcast %384 : f32 to vector<40x40xf32>
    %386 = arith.addf %383, %385 : vector<40x40xf32>
    %387 = tpu.concatenate %368, %377, %386 in 0 : vector<40x40xf32>, vector<40x40xf32>, vector<40x40xf32> -> vector<120x40xf32>
    %388 = arith.truncf %387 : vector<120x40xf32> to vector<120x40xbf16>
    %cst_163 = arith.constant dense<0.000000e+00> : vector<120x32xf32>
    %389 = tpu.matmul %388, %348, %cst_163 {dimension_numbers = #tpu.dot_dimension_numbers<[1], [0], [0], [1], [0, 0, 1, 1], [], []>} : vector<120x40xbf16>, vector<40x32xbf16>, vector<120x32xf32> -> vector<120x32xf32>
    %390 = vector.extract_strided_slice %389 {offsets = [0, 0], sizes = [40, 32], strides = [1, 1]} : vector<120x32xf32> to vector<40x32xf32>
    %391 = arith.truncf %390 : vector<40x32xf32> to vector<40x32xbf16>
    %cst_164 = arith.constant dense<0.000000e+00> : vector<32x32xf32>
    %392 = tpu.matmul %346, %391, %cst_164 {dimension_numbers = #tpu.dot_dimension_numbers<[1], [0], [0], [1], [0, 0, 1, 1], [], []>} : vector<32x40xbf16>, vector<40x32xbf16>, vector<32x32xf32> -> vector<32x32xf32>
    %393 = vector.broadcast %353 : f32 to vector<32x32xf32>
    %394 = arith.mulf %392, %393 : vector<32x32xf32>
    %cst_165 = arith.constant 0.000000e+00 : f32
    %cst_166 = arith.constant 1.000000e+00 : f32
    %395 = vector.broadcast %cst_165 : f32 to vector<32x32xf32>
    %396 = arith.maximumf %395, %394 : vector<32x32xf32>
    %397 = vector.broadcast %cst_166 : f32 to vector<32x32xf32>
    %398 = arith.minimumf %397, %396 : vector<32x32xf32>
    %399 = vector.extract_strided_slice %389 {offsets = [40, 0], sizes = [40, 32], strides = [1, 1]} : vector<120x32xf32> to vector<40x32xf32>
    %400 = arith.truncf %399 : vector<40x32xf32> to vector<40x32xbf16>
    %cst_167 = arith.constant dense<0.000000e+00> : vector<32x32xf32>
    %401 = tpu.matmul %346, %400, %cst_167 {dimension_numbers = #tpu.dot_dimension_numbers<[1], [0], [0], [1], [0, 0, 1, 1], [], []>} : vector<32x40xbf16>, vector<40x32xbf16>, vector<32x32xf32> -> vector<32x32xf32>
    %402 = vector.broadcast %353 : f32 to vector<32x32xf32>
    %403 = arith.mulf %401, %402 : vector<32x32xf32>
    %cst_168 = arith.constant 0.000000e+00 : f32
    %cst_169 = arith.constant 1.000000e+00 : f32
    %404 = vector.broadcast %cst_168 : f32 to vector<32x32xf32>
    %405 = arith.maximumf %404, %403 : vector<32x32xf32>
    %406 = vector.broadcast %cst_169 : f32 to vector<32x32xf32>
    %407 = arith.minimumf %406, %405 : vector<32x32xf32>
    %408 = vector.extract_strided_slice %389 {offsets = [80, 0], sizes = [40, 32], strides = [1, 1]} : vector<120x32xf32> to vector<40x32xf32>
    %409 = arith.truncf %408 : vector<40x32xf32> to vector<40x32xbf16>
    %cst_170 = arith.constant dense<0.000000e+00> : vector<32x32xf32>
    %410 = tpu.matmul %346, %409, %cst_170 {dimension_numbers = #tpu.dot_dimension_numbers<[1], [0], [0], [1], [0, 0, 1, 1], [], []>} : vector<32x40xbf16>, vector<40x32xbf16>, vector<32x32xf32> -> vector<32x32xf32>
    %411 = vector.broadcast %353 : f32 to vector<32x32xf32>
    %412 = arith.mulf %410, %411 : vector<32x32xf32>
    %cst_171 = arith.constant 0.000000e+00 : f32
    %cst_172 = arith.constant 1.000000e+00 : f32
    %413 = vector.broadcast %cst_171 : f32 to vector<32x32xf32>
    %414 = arith.maximumf %413, %412 : vector<32x32xf32>
    %415 = vector.broadcast %cst_172 : f32 to vector<32x32xf32>
    %416 = arith.minimumf %415, %414 : vector<32x32xf32>
    %cst_173 = arith.constant 2.990000e-01 : f32
    %417 = vector.broadcast %cst_173 : f32 to vector<32x32xf32>
    %418 = arith.mulf %417, %398 : vector<32x32xf32>
    %cst_174 = arith.constant 5.870000e-01 : f32
    %419 = vector.broadcast %cst_174 : f32 to vector<32x32xf32>
    %420 = arith.mulf %419, %407 : vector<32x32xf32>
    %421 = arith.addf %418, %420 : vector<32x32xf32>
    %cst_175 = arith.constant 1.140000e-01 : f32
    %422 = vector.broadcast %cst_175 : f32 to vector<32x32xf32>
    %423 = arith.mulf %422, %416 : vector<32x32xf32>
    %424 = arith.addf %421, %423 : vector<32x32xf32>
    %425 = vector.shape_cast %424 : vector<32x32xf32> to vector<1x32x32xf32>
    %cst_176 = arith.constant dense<0.000000e+00> : vector<1xf32>
    %426 = vector.multi_reduction <add>, %425, %cst_176 [1, 2] : vector<1x32x32xf32> to vector<1xf32>
    %427 = vector.shape_cast %426 : vector<1xf32> to vector<1x1x1xf32>
    %428 = vector.extract %427[0, 0, 0] : f32 from vector<1x1x1xf32>
    %cst_177 = arith.constant 1.024000e+03 : f32
    %429 = arith.divf %428, %cst_177 : f32
    %430 = vector.broadcast %356 : f32 to vector<32x32xf32>
    %431 = arith.mulf %430, %398 : vector<32x32xf32>
    %cst_178 = arith.constant 1.000000e+00 : f32
    %432 = arith.subf %cst_178, %356 : f32
    %433 = arith.mulf %432, %429 : f32
    %434 = vector.broadcast %433 : f32 to vector<32x32xf32>
    %435 = arith.addf %431, %434 : vector<32x32xf32>
    %cst_179 = arith.constant 0.000000e+00 : f32
    %cst_180 = arith.constant 1.000000e+00 : f32
    %436 = vector.broadcast %cst_179 : f32 to vector<32x32xf32>
    %437 = arith.maximumf %436, %435 : vector<32x32xf32>
    %438 = vector.broadcast %cst_180 : f32 to vector<32x32xf32>
    %439 = arith.minimumf %438, %437 : vector<32x32xf32>
    %440 = vector.broadcast %356 : f32 to vector<32x32xf32>
    %441 = arith.mulf %440, %407 : vector<32x32xf32>
    %cst_181 = arith.constant 1.000000e+00 : f32
    %442 = arith.subf %cst_181, %356 : f32
    %443 = arith.mulf %442, %429 : f32
    %444 = vector.broadcast %443 : f32 to vector<32x32xf32>
    %445 = arith.addf %441, %444 : vector<32x32xf32>
    %cst_182 = arith.constant 0.000000e+00 : f32
    %cst_183 = arith.constant 1.000000e+00 : f32
    %446 = vector.broadcast %cst_182 : f32 to vector<32x32xf32>
    %447 = arith.maximumf %446, %445 : vector<32x32xf32>
    %448 = vector.broadcast %cst_183 : f32 to vector<32x32xf32>
    %449 = arith.minimumf %448, %447 : vector<32x32xf32>
    %450 = vector.broadcast %356 : f32 to vector<32x32xf32>
    %451 = arith.mulf %450, %416 : vector<32x32xf32>
    %cst_184 = arith.constant 1.000000e+00 : f32
    %452 = arith.subf %cst_184, %356 : f32
    %453 = arith.mulf %452, %429 : f32
    %454 = vector.broadcast %453 : f32 to vector<32x32xf32>
    %455 = arith.addf %451, %454 : vector<32x32xf32>
    %cst_185 = arith.constant 0.000000e+00 : f32
    %cst_186 = arith.constant 1.000000e+00 : f32
    %456 = vector.broadcast %cst_185 : f32 to vector<32x32xf32>
    %457 = arith.maximumf %456, %455 : vector<32x32xf32>
    %458 = vector.broadcast %cst_186 : f32 to vector<32x32xf32>
    %459 = arith.minimumf %458, %457 : vector<32x32xf32>
    %cst_187 = arith.constant 2.990000e-01 : f32
    %460 = vector.broadcast %cst_187 : f32 to vector<32x32xf32>
    %461 = arith.mulf %460, %439 : vector<32x32xf32>
    %cst_188 = arith.constant 5.870000e-01 : f32
    %462 = vector.broadcast %cst_188 : f32 to vector<32x32xf32>
    %463 = arith.mulf %462, %449 : vector<32x32xf32>
    %464 = arith.addf %461, %463 : vector<32x32xf32>
    %cst_189 = arith.constant 1.140000e-01 : f32
    %465 = vector.broadcast %cst_189 : f32 to vector<32x32xf32>
    %466 = arith.mulf %465, %459 : vector<32x32xf32>
    %467 = arith.addf %464, %466 : vector<32x32xf32>
    %468 = vector.broadcast %359 : f32 to vector<32x32xf32>
    %469 = arith.mulf %468, %439 : vector<32x32xf32>
    %cst_190 = arith.constant 1.000000e+00 : f32
    %470 = arith.subf %cst_190, %359 : f32
    %471 = vector.broadcast %470 : f32 to vector<32x32xf32>
    %472 = arith.mulf %471, %467 : vector<32x32xf32>
    %473 = arith.addf %469, %472 : vector<32x32xf32>
    %cst_191 = arith.constant 0.000000e+00 : f32
    %cst_192 = arith.constant 1.000000e+00 : f32
    %474 = vector.broadcast %cst_191 : f32 to vector<32x32xf32>
    %475 = arith.maximumf %474, %473 : vector<32x32xf32>
    %476 = vector.broadcast %cst_192 : f32 to vector<32x32xf32>
    %477 = arith.minimumf %476, %475 : vector<32x32xf32>
    %478 = vector.broadcast %359 : f32 to vector<32x32xf32>
    %479 = arith.mulf %478, %449 : vector<32x32xf32>
    %cst_193 = arith.constant 1.000000e+00 : f32
    %480 = arith.subf %cst_193, %359 : f32
    %481 = vector.broadcast %480 : f32 to vector<32x32xf32>
    %482 = arith.mulf %481, %467 : vector<32x32xf32>
    %483 = arith.addf %479, %482 : vector<32x32xf32>
    %cst_194 = arith.constant 0.000000e+00 : f32
    %cst_195 = arith.constant 1.000000e+00 : f32
    %484 = vector.broadcast %cst_194 : f32 to vector<32x32xf32>
    %485 = arith.maximumf %484, %483 : vector<32x32xf32>
    %486 = vector.broadcast %cst_195 : f32 to vector<32x32xf32>
    %487 = arith.minimumf %486, %485 : vector<32x32xf32>
    %488 = vector.broadcast %359 : f32 to vector<32x32xf32>
    %489 = arith.mulf %488, %459 : vector<32x32xf32>
    %cst_196 = arith.constant 1.000000e+00 : f32
    %490 = arith.subf %cst_196, %359 : f32
    %491 = vector.broadcast %490 : f32 to vector<32x32xf32>
    %492 = arith.mulf %491, %467 : vector<32x32xf32>
    %493 = arith.addf %489, %492 : vector<32x32xf32>
    %cst_197 = arith.constant 0.000000e+00 : f32
    %cst_198 = arith.constant 1.000000e+00 : f32
    %494 = vector.broadcast %cst_197 : f32 to vector<32x32xf32>
    %495 = arith.maximumf %494, %493 : vector<32x32xf32>
    %496 = vector.broadcast %cst_198 : f32 to vector<32x32xf32>
    %497 = arith.minimumf %496, %495 : vector<32x32xf32>
    %c0_199 = arith.constant 0 : index
    %498 = memref.load %arg5[%c0_199] : memref<3xf32, #tpu.memory_space<smem>>
    %499 = vector.broadcast %498 : f32 to vector<32x32xf32>
    %500 = arith.subf %477, %499 : vector<32x32xf32>
    %c0_200 = arith.constant 0 : index
    %501 = memref.load %arg7[%c0_200] : memref<3xf32, #tpu.memory_space<smem>>
    %502 = vector.broadcast %501 : f32 to vector<32x32xf32>
    %503 = arith.mulf %500, %502 : vector<32x32xf32>
    %c1_201 = arith.constant 1 : index
    %504 = memref.load %arg5[%c1_201] : memref<3xf32, #tpu.memory_space<smem>>
    %505 = vector.broadcast %504 : f32 to vector<32x32xf32>
    %506 = arith.subf %487, %505 : vector<32x32xf32>
    %c1_202 = arith.constant 1 : index
    %507 = memref.load %arg7[%c1_202] : memref<3xf32, #tpu.memory_space<smem>>
    %508 = vector.broadcast %507 : f32 to vector<32x32xf32>
    %509 = arith.mulf %506, %508 : vector<32x32xf32>
    %c2_203 = arith.constant 2 : index
    %510 = memref.load %arg5[%c2_203] : memref<3xf32, #tpu.memory_space<smem>>
    %511 = vector.broadcast %510 : f32 to vector<32x32xf32>
    %512 = arith.subf %497, %511 : vector<32x32xf32>
    %c2_204 = arith.constant 2 : index
    %513 = memref.load %arg7[%c2_204] : memref<3xf32, #tpu.memory_space<smem>>
    %514 = vector.broadcast %513 : f32 to vector<32x32xf32>
    %515 = arith.mulf %512, %514 : vector<32x32xf32>
    %516 = tpu.concatenate %503, %509, %515 in 1 : vector<32x32xf32>, vector<32x32xf32>, vector<32x32xf32> -> vector<32x96xf32>
    %c3 = arith.constant 3 : index
    %c0_205 = arith.constant 0 : index
    %c0_206 = arith.constant 0 : index
    %517 = vector.load %arg2[%c3, %c0_205, %c0_206] : memref<4x32x40xbf16, #tpu.memory_space<vmem>>, vector<1x32x40xbf16>
    %518 = vector.shape_cast %517 : vector<1x32x40xbf16> to vector<32x40xbf16>
    %c3_207 = arith.constant 3 : index
    %c0_208 = arith.constant 0 : index
    %c0_209 = arith.constant 0 : index
    %519 = vector.load %arg3[%c3_207, %c0_208, %c0_209] : memref<4x40x32xbf16, #tpu.memory_space<vmem>>, vector<1x40x32xbf16>
    %520 = vector.shape_cast %519 : vector<1x40x32xbf16> to vector<40x32xbf16>
    %c3_i32_210 = arith.constant 3 : i32
    %521 = arith.addi %0, %c3_i32_210 : i32
    %c3_i32_211 = arith.constant 3 : i32
    %522 = arith.muli %521, %c3_i32_211 : i32
    %c0_i32_212 = arith.constant 0 : i32
    %523 = arith.addi %522, %c0_i32_212 : i32
    %524 = arith.index_cast %523 : i32 to index
    %525 = memref.load %arg4[%524] : memref<24xf32, #tpu.memory_space<smem>>
    %c1_i32_213 = arith.constant 1 : i32
    %526 = arith.addi %522, %c1_i32_213 : i32
    %527 = arith.index_cast %526 : i32 to index
    %528 = memref.load %arg4[%527] : memref<24xf32, #tpu.memory_space<smem>>
    %c2_i32_214 = arith.constant 2 : i32
    %529 = arith.addi %522, %c2_i32_214 : i32
    %530 = arith.index_cast %529 : i32 to index
    %531 = memref.load %arg4[%530] : memref<24xf32, #tpu.memory_space<smem>>
    %c3_215 = arith.constant 3 : index
    %c0_216 = arith.constant 0 : index
    %c0_217 = arith.constant 0 : index
    %c0_218 = arith.constant 0 : index
    %532 = vector.load %arg1[%c3_215, %c0_216, %c0_217, %c0_218] : memref<4x3x40x40xbf16, #tpu.memory_space<vmem>>, vector<1x1x40x40xbf16>
    %533 = vector.shape_cast %532 : vector<1x1x40x40xbf16> to vector<40x40xbf16>
    %534 = arith.extf %533 : vector<40x40xbf16> to vector<40x40xf32>
    %c0_219 = arith.constant 0 : index
    %535 = memref.load %arg6[%c0_219] : memref<3xf32, #tpu.memory_space<smem>>
    %536 = vector.broadcast %535 : f32 to vector<40x40xf32>
    %537 = arith.mulf %534, %536 : vector<40x40xf32>
    %c0_220 = arith.constant 0 : index
    %538 = memref.load %arg5[%c0_220] : memref<3xf32, #tpu.memory_space<smem>>
    %539 = vector.broadcast %538 : f32 to vector<40x40xf32>
    %540 = arith.addf %537, %539 : vector<40x40xf32>
    %c3_221 = arith.constant 3 : index
    %c1_222 = arith.constant 1 : index
    %c0_223 = arith.constant 0 : index
    %c0_224 = arith.constant 0 : index
    %541 = vector.load %arg1[%c3_221, %c1_222, %c0_223, %c0_224] : memref<4x3x40x40xbf16, #tpu.memory_space<vmem>>, vector<1x1x40x40xbf16>
    %542 = vector.shape_cast %541 : vector<1x1x40x40xbf16> to vector<40x40xbf16>
    %543 = arith.extf %542 : vector<40x40xbf16> to vector<40x40xf32>
    %c1_225 = arith.constant 1 : index
    %544 = memref.load %arg6[%c1_225] : memref<3xf32, #tpu.memory_space<smem>>
    %545 = vector.broadcast %544 : f32 to vector<40x40xf32>
    %546 = arith.mulf %543, %545 : vector<40x40xf32>
    %c1_226 = arith.constant 1 : index
    %547 = memref.load %arg5[%c1_226] : memref<3xf32, #tpu.memory_space<smem>>
    %548 = vector.broadcast %547 : f32 to vector<40x40xf32>
    %549 = arith.addf %546, %548 : vector<40x40xf32>
    %c3_227 = arith.constant 3 : index
    %c2_228 = arith.constant 2 : index
    %c0_229 = arith.constant 0 : index
    %c0_230 = arith.constant 0 : index
    %550 = vector.load %arg1[%c3_227, %c2_228, %c0_229, %c0_230] : memref<4x3x40x40xbf16, #tpu.memory_space<vmem>>, vector<1x1x40x40xbf16>
    %551 = vector.shape_cast %550 : vector<1x1x40x40xbf16> to vector<40x40xbf16>
    %552 = arith.extf %551 : vector<40x40xbf16> to vector<40x40xf32>
    %c2_231 = arith.constant 2 : index
    %553 = memref.load %arg6[%c2_231] : memref<3xf32, #tpu.memory_space<smem>>
    %554 = vector.broadcast %553 : f32 to vector<40x40xf32>
    %555 = arith.mulf %552, %554 : vector<40x40xf32>
    %c2_232 = arith.constant 2 : index
    %556 = memref.load %arg5[%c2_232] : memref<3xf32, #tpu.memory_space<smem>>
    %557 = vector.broadcast %556 : f32 to vector<40x40xf32>
    %558 = arith.addf %555, %557 : vector<40x40xf32>
    %559 = tpu.concatenate %540, %549, %558 in 0 : vector<40x40xf32>, vector<40x40xf32>, vector<40x40xf32> -> vector<120x40xf32>
    %560 = arith.truncf %559 : vector<120x40xf32> to vector<120x40xbf16>
    %cst_233 = arith.constant dense<0.000000e+00> : vector<120x32xf32>
    %561 = tpu.matmul %560, %520, %cst_233 {dimension_numbers = #tpu.dot_dimension_numbers<[1], [0], [0], [1], [0, 0, 1, 1], [], []>} : vector<120x40xbf16>, vector<40x32xbf16>, vector<120x32xf32> -> vector<120x32xf32>
    %562 = vector.extract_strided_slice %561 {offsets = [0, 0], sizes = [40, 32], strides = [1, 1]} : vector<120x32xf32> to vector<40x32xf32>
    %563 = arith.truncf %562 : vector<40x32xf32> to vector<40x32xbf16>
    %cst_234 = arith.constant dense<0.000000e+00> : vector<32x32xf32>
    %564 = tpu.matmul %518, %563, %cst_234 {dimension_numbers = #tpu.dot_dimension_numbers<[1], [0], [0], [1], [0, 0, 1, 1], [], []>} : vector<32x40xbf16>, vector<40x32xbf16>, vector<32x32xf32> -> vector<32x32xf32>
    %565 = vector.broadcast %525 : f32 to vector<32x32xf32>
    %566 = arith.mulf %564, %565 : vector<32x32xf32>
    %cst_235 = arith.constant 0.000000e+00 : f32
    %cst_236 = arith.constant 1.000000e+00 : f32
    %567 = vector.broadcast %cst_235 : f32 to vector<32x32xf32>
    %568 = arith.maximumf %567, %566 : vector<32x32xf32>
    %569 = vector.broadcast %cst_236 : f32 to vector<32x32xf32>
    %570 = arith.minimumf %569, %568 : vector<32x32xf32>
    %571 = vector.extract_strided_slice %561 {offsets = [40, 0], sizes = [40, 32], strides = [1, 1]} : vector<120x32xf32> to vector<40x32xf32>
    %572 = arith.truncf %571 : vector<40x32xf32> to vector<40x32xbf16>
    %cst_237 = arith.constant dense<0.000000e+00> : vector<32x32xf32>
    %573 = tpu.matmul %518, %572, %cst_237 {dimension_numbers = #tpu.dot_dimension_numbers<[1], [0], [0], [1], [0, 0, 1, 1], [], []>} : vector<32x40xbf16>, vector<40x32xbf16>, vector<32x32xf32> -> vector<32x32xf32>
    %574 = vector.broadcast %525 : f32 to vector<32x32xf32>
    %575 = arith.mulf %573, %574 : vector<32x32xf32>
    %cst_238 = arith.constant 0.000000e+00 : f32
    %cst_239 = arith.constant 1.000000e+00 : f32
    %576 = vector.broadcast %cst_238 : f32 to vector<32x32xf32>
    %577 = arith.maximumf %576, %575 : vector<32x32xf32>
    %578 = vector.broadcast %cst_239 : f32 to vector<32x32xf32>
    %579 = arith.minimumf %578, %577 : vector<32x32xf32>
    %580 = vector.extract_strided_slice %561 {offsets = [80, 0], sizes = [40, 32], strides = [1, 1]} : vector<120x32xf32> to vector<40x32xf32>
    %581 = arith.truncf %580 : vector<40x32xf32> to vector<40x32xbf16>
    %cst_240 = arith.constant dense<0.000000e+00> : vector<32x32xf32>
    %582 = tpu.matmul %518, %581, %cst_240 {dimension_numbers = #tpu.dot_dimension_numbers<[1], [0], [0], [1], [0, 0, 1, 1], [], []>} : vector<32x40xbf16>, vector<40x32xbf16>, vector<32x32xf32> -> vector<32x32xf32>
    %583 = vector.broadcast %525 : f32 to vector<32x32xf32>
    %584 = arith.mulf %582, %583 : vector<32x32xf32>
    %cst_241 = arith.constant 0.000000e+00 : f32
    %cst_242 = arith.constant 1.000000e+00 : f32
    %585 = vector.broadcast %cst_241 : f32 to vector<32x32xf32>
    %586 = arith.maximumf %585, %584 : vector<32x32xf32>
    %587 = vector.broadcast %cst_242 : f32 to vector<32x32xf32>
    %588 = arith.minimumf %587, %586 : vector<32x32xf32>
    %cst_243 = arith.constant 2.990000e-01 : f32
    %589 = vector.broadcast %cst_243 : f32 to vector<32x32xf32>
    %590 = arith.mulf %589, %570 : vector<32x32xf32>
    %cst_244 = arith.constant 5.870000e-01 : f32
    %591 = vector.broadcast %cst_244 : f32 to vector<32x32xf32>
    %592 = arith.mulf %591, %579 : vector<32x32xf32>
    %593 = arith.addf %590, %592 : vector<32x32xf32>
    %cst_245 = arith.constant 1.140000e-01 : f32
    %594 = vector.broadcast %cst_245 : f32 to vector<32x32xf32>
    %595 = arith.mulf %594, %588 : vector<32x32xf32>
    %596 = arith.addf %593, %595 : vector<32x32xf32>
    %597 = vector.shape_cast %596 : vector<32x32xf32> to vector<1x32x32xf32>
    %cst_246 = arith.constant dense<0.000000e+00> : vector<1xf32>
    %598 = vector.multi_reduction <add>, %597, %cst_246 [1, 2] : vector<1x32x32xf32> to vector<1xf32>
    %599 = vector.shape_cast %598 : vector<1xf32> to vector<1x1x1xf32>
    %600 = vector.extract %599[0, 0, 0] : f32 from vector<1x1x1xf32>
    %cst_247 = arith.constant 1.024000e+03 : f32
    %601 = arith.divf %600, %cst_247 : f32
    %602 = vector.broadcast %528 : f32 to vector<32x32xf32>
    %603 = arith.mulf %602, %570 : vector<32x32xf32>
    %cst_248 = arith.constant 1.000000e+00 : f32
    %604 = arith.subf %cst_248, %528 : f32
    %605 = arith.mulf %604, %601 : f32
    %606 = vector.broadcast %605 : f32 to vector<32x32xf32>
    %607 = arith.addf %603, %606 : vector<32x32xf32>
    %cst_249 = arith.constant 0.000000e+00 : f32
    %cst_250 = arith.constant 1.000000e+00 : f32
    %608 = vector.broadcast %cst_249 : f32 to vector<32x32xf32>
    %609 = arith.maximumf %608, %607 : vector<32x32xf32>
    %610 = vector.broadcast %cst_250 : f32 to vector<32x32xf32>
    %611 = arith.minimumf %610, %609 : vector<32x32xf32>
    %612 = vector.broadcast %528 : f32 to vector<32x32xf32>
    %613 = arith.mulf %612, %579 : vector<32x32xf32>
    %cst_251 = arith.constant 1.000000e+00 : f32
    %614 = arith.subf %cst_251, %528 : f32
    %615 = arith.mulf %614, %601 : f32
    %616 = vector.broadcast %615 : f32 to vector<32x32xf32>
    %617 = arith.addf %613, %616 : vector<32x32xf32>
    %cst_252 = arith.constant 0.000000e+00 : f32
    %cst_253 = arith.constant 1.000000e+00 : f32
    %618 = vector.broadcast %cst_252 : f32 to vector<32x32xf32>
    %619 = arith.maximumf %618, %617 : vector<32x32xf32>
    %620 = vector.broadcast %cst_253 : f32 to vector<32x32xf32>
    %621 = arith.minimumf %620, %619 : vector<32x32xf32>
    %622 = vector.broadcast %528 : f32 to vector<32x32xf32>
    %623 = arith.mulf %622, %588 : vector<32x32xf32>
    %cst_254 = arith.constant 1.000000e+00 : f32
    %624 = arith.subf %cst_254, %528 : f32
    %625 = arith.mulf %624, %601 : f32
    %626 = vector.broadcast %625 : f32 to vector<32x32xf32>
    %627 = arith.addf %623, %626 : vector<32x32xf32>
    %cst_255 = arith.constant 0.000000e+00 : f32
    %cst_256 = arith.constant 1.000000e+00 : f32
    %628 = vector.broadcast %cst_255 : f32 to vector<32x32xf32>
    %629 = arith.maximumf %628, %627 : vector<32x32xf32>
    %630 = vector.broadcast %cst_256 : f32 to vector<32x32xf32>
    %631 = arith.minimumf %630, %629 : vector<32x32xf32>
    %cst_257 = arith.constant 2.990000e-01 : f32
    %632 = vector.broadcast %cst_257 : f32 to vector<32x32xf32>
    %633 = arith.mulf %632, %611 : vector<32x32xf32>
    %cst_258 = arith.constant 5.870000e-01 : f32
    %634 = vector.broadcast %cst_258 : f32 to vector<32x32xf32>
    %635 = arith.mulf %634, %621 : vector<32x32xf32>
    %636 = arith.addf %633, %635 : vector<32x32xf32>
    %cst_259 = arith.constant 1.140000e-01 : f32
    %637 = vector.broadcast %cst_259 : f32 to vector<32x32xf32>
    %638 = arith.mulf %637, %631 : vector<32x32xf32>
    %639 = arith.addf %636, %638 : vector<32x32xf32>
    %640 = vector.broadcast %531 : f32 to vector<32x32xf32>
    %641 = arith.mulf %640, %611 : vector<32x32xf32>
    %cst_260 = arith.constant 1.000000e+00 : f32
    %642 = arith.subf %cst_260, %531 : f32
    %643 = vector.broadcast %642 : f32 to vector<32x32xf32>
    %644 = arith.mulf %643, %639 : vector<32x32xf32>
    %645 = arith.addf %641, %644 : vector<32x32xf32>
    %cst_261 = arith.constant 0.000000e+00 : f32
    %cst_262 = arith.constant 1.000000e+00 : f32
    %646 = vector.broadcast %cst_261 : f32 to vector<32x32xf32>
    %647 = arith.maximumf %646, %645 : vector<32x32xf32>
    %648 = vector.broadcast %cst_262 : f32 to vector<32x32xf32>
    %649 = arith.minimumf %648, %647 : vector<32x32xf32>
    %650 = vector.broadcast %531 : f32 to vector<32x32xf32>
    %651 = arith.mulf %650, %621 : vector<32x32xf32>
    %cst_263 = arith.constant 1.000000e+00 : f32
    %652 = arith.subf %cst_263, %531 : f32
    %653 = vector.broadcast %652 : f32 to vector<32x32xf32>
    %654 = arith.mulf %653, %639 : vector<32x32xf32>
    %655 = arith.addf %651, %654 : vector<32x32xf32>
    %cst_264 = arith.constant 0.000000e+00 : f32
    %cst_265 = arith.constant 1.000000e+00 : f32
    %656 = vector.broadcast %cst_264 : f32 to vector<32x32xf32>
    %657 = arith.maximumf %656, %655 : vector<32x32xf32>
    %658 = vector.broadcast %cst_265 : f32 to vector<32x32xf32>
    %659 = arith.minimumf %658, %657 : vector<32x32xf32>
    %660 = vector.broadcast %531 : f32 to vector<32x32xf32>
    %661 = arith.mulf %660, %631 : vector<32x32xf32>
    %cst_266 = arith.constant 1.000000e+00 : f32
    %662 = arith.subf %cst_266, %531 : f32
    %663 = vector.broadcast %662 : f32 to vector<32x32xf32>
    %664 = arith.mulf %663, %639 : vector<32x32xf32>
    %665 = arith.addf %661, %664 : vector<32x32xf32>
    %cst_267 = arith.constant 0.000000e+00 : f32
    %cst_268 = arith.constant 1.000000e+00 : f32
    %666 = vector.broadcast %cst_267 : f32 to vector<32x32xf32>
    %667 = arith.maximumf %666, %665 : vector<32x32xf32>
    %668 = vector.broadcast %cst_268 : f32 to vector<32x32xf32>
    %669 = arith.minimumf %668, %667 : vector<32x32xf32>
    %c0_269 = arith.constant 0 : index
    %670 = memref.load %arg5[%c0_269] : memref<3xf32, #tpu.memory_space<smem>>
    %671 = vector.broadcast %670 : f32 to vector<32x32xf32>
    %672 = arith.subf %649, %671 : vector<32x32xf32>
    %c0_270 = arith.constant 0 : index
    %673 = memref.load %arg7[%c0_270] : memref<3xf32, #tpu.memory_space<smem>>
    %674 = vector.broadcast %673 : f32 to vector<32x32xf32>
    %675 = arith.mulf %672, %674 : vector<32x32xf32>
    %c1_271 = arith.constant 1 : index
    %676 = memref.load %arg5[%c1_271] : memref<3xf32, #tpu.memory_space<smem>>
    %677 = vector.broadcast %676 : f32 to vector<32x32xf32>
    %678 = arith.subf %659, %677 : vector<32x32xf32>
    %c1_272 = arith.constant 1 : index
    %679 = memref.load %arg7[%c1_272] : memref<3xf32, #tpu.memory_space<smem>>
    %680 = vector.broadcast %679 : f32 to vector<32x32xf32>
    %681 = arith.mulf %678, %680 : vector<32x32xf32>
    %c2_273 = arith.constant 2 : index
    %682 = memref.load %arg5[%c2_273] : memref<3xf32, #tpu.memory_space<smem>>
    %683 = vector.broadcast %682 : f32 to vector<32x32xf32>
    %684 = arith.subf %669, %683 : vector<32x32xf32>
    %c2_274 = arith.constant 2 : index
    %685 = memref.load %arg7[%c2_274] : memref<3xf32, #tpu.memory_space<smem>>
    %686 = vector.broadcast %685 : f32 to vector<32x32xf32>
    %687 = arith.mulf %684, %686 : vector<32x32xf32>
    %688 = tpu.concatenate %675, %681, %687 in 1 : vector<32x32xf32>, vector<32x32xf32>, vector<32x32xf32> -> vector<32x96xf32>
    %689 = tpu.concatenate %172, %344, %516, %688 in 1 : vector<32x96xf32>, vector<32x96xf32>, vector<32x96xf32>, vector<32x96xf32> -> vector<32x384xf32>
    %c0_275 = arith.constant 0 : index
    %c0_276 = arith.constant 0 : index
    %c0_277 = arith.constant 0 : index
    %690 = vector.load %arg8[%c0_275, %c0_276, %c0_277] : memref<1x32x384xf32, #tpu.memory_space<vmem>>, vector<1x32x384xf32>
    %691 = vector.shape_cast %690 : vector<1x32x384xf32> to vector<32x384xf32>
    %692 = vector.shape_cast %689 : vector<32x384xf32> to vector<1x32x384xf32>
    tpu.vector_store %arg8[%c0_275, %c0_276, %c0_277], %692 {strides = array<i32>} : memref<1x32x384xf32, #tpu.memory_space<vmem>>, vector<1x32x384xf32>,
    return
  }
  func.func @transform_0(%arg0: i32) -> (i32, i32, i32, i32) {
    %c0_i32 = arith.constant 0 : i32
    %c0_i32_0 = arith.constant 0 : i32
    %c0_i32_1 = arith.constant 0 : i32
    %c0_i32_2 = arith.constant 0 : i32
    return %arg0, %c0_i32, %c0_i32_0, %c0_i32_1 : i32, i32, i32, i32
  }
  func.func @transform_1(%arg0: i32) -> (i32, i32, i32) {
    %c0_i32 = arith.constant 0 : i32
    %c0_i32_0 = arith.constant 0 : i32
    %c0_i32_1 = arith.constant 0 : i32
    return %arg0, %c0_i32, %c0_i32_0 : i32, i32, i32
  }
  func.func @transform_2(%arg0: i32) -> (i32, i32, i32) {
    %c0_i32 = arith.constant 0 : i32
    %c0_i32_0 = arith.constant 0 : i32
    %c0_i32_1 = arith.constant 0 : i32
    return %arg0, %c0_i32, %c0_i32_0 : i32, i32, i32
  }
  func.func @transform_3(%arg0: i32) -> i32 {
    %c0_i32 = arith.constant 0 : i32
    %c0_i32_0 = arith.constant 0 : i32
    return %c0_i32 : i32
  }
  func.func @transform_4(%arg0: i32) -> i32 {
    %c0_i32 = arith.constant 0 : i32
    %c0_i32_0 = arith.constant 0 : i32
    return %c0_i32 : i32
  }
  func.func @transform_5(%arg0: i32) -> i32 {
    %c0_i32 = arith.constant 0 : i32
    %c0_i32_0 = arith.constant 0 : i32
    return %c0_i32 : i32
  }
  func.func @transform_6(%arg0: i32) -> i32 {
    %c0_i32 = arith.constant 0 : i32
    %c0_i32_0 = arith.constant 0 : i32
    return %c0_i32 : i32
  }
  func.func @transform_7(%arg0: i32) -> (i32, i32, i32) {
    %c0_i32 = arith.constant 0 : i32
    %c0_i32_0 = arith.constant 0 : i32
    %c0_i32_1 = arith.constant 0 : i32
    return %arg0, %c0_i32, %c0_i32_0 : i32, i32, i32
  }
}

</mosaic_0001>

<bundles_post_ra>
// kernel: tpu_custom_call.1
= control target key start
LH: loop header
LB: loop body
LE: loop exit
PB: predicated region body
PF: predicated region fallthrough
CT: control target
= control target key end

     0   :  { %s5650_s0 = inlined_call_operand.hbm [shape: bf16[8,3,40,40], index: 0, kind: input, shape index: {}]   ;;  %s5651_s1 = inlined_call_operand.vmem [shape: bf16[8,32,40], index: 1, kind: input, shape index: {}]   ;;  %s5652_s2 = inlined_call_operand.vmem [shape: bf16[8,40,32], index: 2, kind: input, shape index: {}]   ;;  %s5653_s3 = inlined_call_operand.vmem [shape: f32[24], index: 3, kind: input, shape index: {}]   ;;  %s5654_s4 = inlined_call_operand.vmem [shape: f32[3], index: 4, kind: input, shape index: {}]   ;;  %s5655_s5 = inlined_call_operand.vmem [shape: f32[3], index: 5, kind: input, shape index: {}]   ;;  %s5656_s6 = inlined_call_operand.vmem [shape: f32[3], index: 6, kind: input, shape index: {}]   ;;  %s5657_s7 = inlined_call_operand.hbm [shape: f32[2,32,384], index: 7, kind: output, shape index: {}]  }
   0x1   :  { %5665 = sst [smem:[#allocation26_spill]] %s5653_s3 }
   0x2   :  { %12 = vsyncpa [#allocation3], 0 }
   0x3   :  { %14 = vsyncpa [#allocation3 + $0x1], 0 }
   0x4   :  { %15 = vsyncpa [#allocation5], 0 }
   0x5   :  { %16 = vsyncpa [#allocation8], 0 }
   0x6   :  { %17 = vsyncpa [#allocation11], 0 }
   0x7   :  { %18 = vsyncpa [#allocation4], 0 }
   0x8   :  { %20 = vsyncpa [#allocation4 + $0x1], 0  ;;  %s4333_s24 = smov 0   ;;  %s4335_s25 = smov 0  }
   0x9   :  { %s4337_s26 = smov 0   ;;  %s4339_s27 = smov 0  }
   0xa LB: > { %s4354_s28 = sadd.s32 4294967295, %s4278_s27   ;;  %s3346_s29 = sadd.s32 4294967294, %s4278_s27   ;;  %s4278_s27 = sphi %s4339_s27, %s5703_s27   ;;  %s4274_s26 = sphi %s4337_s26, %s5702_s26   ;;  %s4270_s25 = sphi %s4335_s25, %s5701_s25   ;;  %s4266_s24 = sphi %s4333_s24, %s5700_s24  }
   0xb   : > { %p46_p0 = scmp.ne.s32.totalorder %s4270_s25, %s4266_s24  ;;  %p5658_p1 = scmp.eq.s32.totalorder %s4354_s28, 0 }
   0xc   : > { %p212_p3 = scmp.eq.s32.totalorder %s3346_s29, 1  ;;  %p3347_p5 = scmp.ge.s32.totalorder %s4278_s27, 1 }
   0xd   : > { %p4363_p4 = por %p5658_p1, %p46_p0  ;;  %p219_p7 = scmp.lt.s32.totalorder %s4278_s27, 3 }
   0xe   : > { %p4368_p6 = por %p212_p3, %p46_p0  ;;  %s243_s11 = sshll.u32 %s5654_s4, 4  ;;  %s244_s11 = int_to_ptr.vmem [resolvable:$true] %s243_s11 }
   0xf   : > { %s5666_s30 = scalar_select %p4363_p4, 1, 0 }
  0x10   : > { %s5667_s8 = scalar_select %p4368_p6, 1, 0 }
  0x11   : > { %p4376_p8 = pnand %p3347_p5, %p219_p7  ;;  %s5669_s3 = sld [smem:[#allocation26_spill]] }
  0x12   : > { %s254_s19 = sshll.u32 %s5655_s5, 4  ;;  %s265_s22 = sshll.u32 %s5656_s6, 4  ;;  %s4395_s19 = int_to_ptr.vmem [resolvable:$true] %s254_s19  ;;  %s266_s22 = int_to_ptr.vmem [resolvable:$true] %s265_s22 }
  0x13   : > { %s5668_s12 = scalar_select %p4376_p8, 1, 0 }
  0x14   : > { %p4016_p10 = pneg %p4376_p8  ;;  %s4110_s23 = scalar_lea.vmem %s244_s11, 16 }
  0x15   : > { %p4111_p12 = scmp.ne.s32.totalorder %s244_s11, %s4110_s23  ;;  %p4118_p5 = scmp.lt.s32.totalorder %s244_s11, %s244_s11 }
  0x16   : > { %p4388_p11 = pnand %p4016_p10, %p5658_p1  ;;  %p4119_p7 = scmp.lt.s32.totalorder %s4110_s23, %s4110_s23 }
  0x17   : > { %s232_s15 = sshll.u32 %s5669_s3, 4  ;;  %s233_s15 = int_to_ptr.vmem [resolvable:$true] %s232_s15 }
  0x18   : > { %p4112_p13 = pneg %p4388_p11  ;;  %p4120_p10 = por %p4119_p7, %p4118_p5 }
  0x1a   : > { %p4113_p0 = pnand %p4112_p13, %p4111_p12 }
  0x1c   : > { %p4114_p3 = pneg %p4113_p0 }
  0x1e   : > { %p4121_p9 = pnand %p4120_p10, %p4114_p3 }
  0x20   : > { %4124 = shalt.err (!%p4121_p9)
}
  0x21   : > { %s4280_s29 = smov [#allocation7]   ;;  %s4125_s9 = scalar_lea.vmem %s233_s15, 16 }
  0x22   : > { %4022 = dma.vmem_to_smem (!%p4388_p11), %s244_s11, 16, %s4280_s29, [#allocation8]  }
  0x23   : > { %p4126_p1 = scmp.ne.s32.totalorder %s233_s15, %s4125_s9  ;;  %p4133_p4 = scmp.lt.s32.totalorder %s233_s15, %s233_s15 }
  0x24   : > { %p4134_p8 = scmp.lt.s32.totalorder %s4125_s9, %s4125_s9 }
  0x25   : > { %p4128_p2 = pnand %p4126_p1, %p4112_p13 }
  0x26   : > { %p4135_p12 = por %p4134_p8, %p4133_p4 }
  0x27   : > { %p4129_p6 = pneg %p4128_p2 }
  0x29   : > { %p4136_p0 = pnand %p4135_p12, %p4129_p6 }
  0x2b   : > { %4139 = shalt.err (!%p4136_p0)
}
  0x2c   : > { %s4281_s10 = smov [#allocation6]   ;;  %s4140_s11 = scalar_lea.vmem %s4395_s19, 16 }
  0x2d   : > { %4019 = dma.vmem_to_smem (!%p4388_p11), %s233_s15, 16, %s4281_s10, [#allocation5]  }
  0x2e   : > { %p4141_p9 = scmp.ne.s32.totalorder %s4395_s19, %s4140_s11  ;;  %p4148_p2 = scmp.lt.s32.totalorder %s4395_s19, %s4395_s19 }
  0x2f   : > { %p4149_p5 = scmp.lt.s32.totalorder %s4140_s11, %s4140_s11 }
  0x30   : > { %p4143_p3 = pnand %p4141_p9, %p4112_p13 }
  0x31   : > { %p4150_p4 = por %p4149_p5, %p4148_p2 }
  0x32   : > { %p4144_p1 = pneg %p4143_p3 }
  0x34   : > { %p4151_p6 = pnand %p4150_p4, %p4144_p1 }
  0x36   : > { %4154 = shalt.err (!%p4151_p6)
}
  0x37   : > { %s4282_s13 = smov [#allocation9]   ;;  %s4155_s17 = scalar_lea.vmem %s266_s22, 16 }
  0x38   : > { %4025 = dma.vmem_to_smem (!%p4388_p11), %s4395_s19, 16, %s4282_s13, [#allocation8]  }
  0x39   : > { %p4156_p8 = scmp.ne.s32.totalorder %s266_s22, %s4155_s17  ;;  %p4163_p12 = scmp.lt.s32.totalorder %s266_s22, %s266_s22 }
  0x3a   : > { %p4164_p0 = scmp.lt.s32.totalorder %s4155_s17, %s4155_s17 }
  0x3b   : > { %p4158_p7 = pnand %p4156_p8, %p4112_p13 }
  0x3c   : > { %p4165_p9 = por %p4164_p0, %p4163_p12 }
  0x3d   : > { %p4159_p10 = pneg %p4158_p7 }
  0x3f   : > { %p4166_p3 = pnand %p4165_p9, %p4159_p10 }
  0x41   : > { %4169 = shalt.err (!%p4166_p3)
}
  0x42   : > { %s4283_s18 = smov [#allocation10]   ;;  %s4432_s19 = sadd.s32 1, %s4278_s27  }
  0x43   : > { %4028 = dma.vmem_to_smem (!%p4388_p11), %s266_s22, 16, %s4283_s18, [#allocation11]  }
  0x44   : > { %s30_s20 = ssub.s32 %s4278_s27, %s4432_s19  ;;  %s33_s21 = sadd.s32 1, %s4274_s26 }
  0x45   : > { %p31_p13 = scmp.eq.s32.totalorder %s30_s20, 0  ;;  %p40_p1 = scmp.ne.s32.totalorder %s4274_s26, %s4270_s25 }
  0x46   : > { %p41_p2 = scmp.eq.s32.totalorder %s4278_s27, 0  ;;  %p5671_p4 = scmp.eq.s32.totalorder %s4354_s28, 1 }
  0x47   : > { %s4441_s16 = scalar_select %p31_p13, %s4274_s26, %s33_s21  }
  0x48   : > { %p42_p5 = por %p41_p2, %p40_p1  ;;  %p4445_p6 = por %p5671_p4, %p40_p1 }
  0x49   : > { %p4041_p8 = scmp.lt.s32.totalorder %s4278_s27, 2  ;;  %s276_s29 = sand.u32 1, %s4274_s26  }
  0x4a   : > { %s3982_s9 = smul.u32 240, %s276_s29  ;;  %s4463_s18 = scalar_lea.sflag [#allocation3], %s276_s29 }
  0x4b   : > { %s3983_s22 = smul.u32 3840, %s4278_s27  ;;  %p4452_p11 = pnand %p4041_p8, %p42_p5 }
  0x4c   : > { %s280_s15 = scalar_lea.vmem [#allocation2], %s3982_s9  ;;  %s4175_s11 = scalar_lea.hbm %s5650_s0, 7680 }
  0x4d   : > { %s4459_s14 = scalar_lea.hbm %s5650_s0, %s3983_s22  ;;  %s288_s17 = sshll.u32 %s280_s15, 4  ;;  %s4461_s17 = int_to_ptr.vmem [resolvable:$true] %s288_s17 }
  0x4e   : > { %s4170_s20 = scalar_lea.hbm %s4459_s14, 3840  ;;  %p4172_p10 = pneg %p4452_p11 }
  0x4f   : > { %p4171_p7 = scmp.ne.s32.totalorder %s4459_s14, %s4170_s20  ;;  %p4176_p9 = scmp.lt.u32.totalorder %s4459_s14, %s5650_s0 }
  0x50   : > { %p4177_p3 = scmp.lt.u32.totalorder %s4175_s11, %s4170_s20  ;;  %p4179_p1 = scmp.lt.u32.totalorder %s4170_s20, %s4459_s14 }
  0x51   : > { %p4173_p12 = pnand %p4172_p10, %p4171_p7 }
  0x52   : > { %p4178_p13 = por %p4177_p3, %p4176_p9 }
  0x53   : > { %p4174_p0 = pneg %p4173_p12 }
  0x54   : > { %p4180_p2 = por %p4179_p1, %p4178_p13 }
  0x56   : > { %p4181_p5 = pnand %p4180_p2, %p4174_p0 }
  0x58   : > { %4184 = shalt.err (!%p4181_p5)
}
  0x59   : > { %s4185_s29 = scalar_lea.vmem %s4461_s17, 3840  ;;  %s4284_s9 = smov [#allocation2]  }
  0x5a   : > { %p4186_p4 = scmp.ne.s32.totalorder %s4461_s17, %s4185_s29  ;;  %s4190_s15 = sshll.u32 %s4284_s9, 4  ;;  %s4191_s15 = int_to_ptr.vmem [resolvable:$false] %s4190_s15 }
  0x5b   : > { %s4192_s3 = scalar_lea.vmem %s4191_s15, 7680  ;;  %p4193_p12 = scmp.lt.s32.totalorder %s4461_s17, %s4191_s15 }
  0x5c   : > { %p4188_p8 = pnand %p4186_p4, %p4172_p10  ;;  %p4194_p9 = scmp.lt.s32.totalorder %s4192_s3, %s4185_s29 }
  0x5e   : > { %p4189_p7 = pneg %p4188_p8  ;;  %p4195_p3 = por %p4194_p9, %p4193_p12 }
  0x60   : > { %p4196_p13 = pnand %p4195_p3, %p4189_p7 }
  0x62   : > { %4199 = shalt.err (!%p4196_p13)
}
  0x63   : > { %s4285_s20 = smov 64   ;;  %s4286_s21 = smov 4  }
  0x64   : > { %4032 = dma.hbm_to_vmem [thread:$0]  (!%p4452_p11), %s4459_s14, 3840, %s4461_s17, %s4463_s18, %s4285_s20, %s4285_s20, %s4286_s21  }
  0x65   : > { %p5674_p10 = scmp.ne.s32.totalorder %s5668_s12, 0 }
  0x67   : > { %320 = sbr.rel (%p5674_p10) target bundleno = 1451 (0x5ab), region = 48 }
  0x6e   : > { %s4494_s22 = sand.u32 1, %s4270_s25   ;;  %p5675_p0 = scmp.ne.s32.totalorder %s5666_s30, 0 }
  0x6f   : > { %s3984_s11 = smul.u32 240, %s4494_s22  ;;  %s323_s13 = scalar_lea.sflag [#allocation3], %s4494_s22 }
  0x71   : > { %s4498_s29 = scalar_lea.vmem [#allocation2], %s3984_s11 }
  0x72   : > { %4245 = dma.done.wait (%p5675_p0), %s323_s13, 3840  }
  0x73   : > { %4247 = vsyncadd (%p5675_p0), %s323_s13, 4294963456  ;;  %p5676_p11 = scmp.eq.s32.totalorder %s4354_s28, 0 }
  0x75   : > { %4249 = dma.done.wait (%p5676_p11), [#allocation5], 16   ;;  %p5677_p1 = pmov %p5676_p11 }
  0x77   : > { %4251 = vsyncadd (%p5677_p1), [#allocation5], 4294967280  ;;  %p5678_p2 = pmov %p5677_p1 }
  0x78   : > { %p5679_p5 = pmov %p5677_p1 }
  0x79   : > { %4253 = dma.done.wait (%p5678_p2), [#allocation8], 32  }
  0x7a   : > { %4255 = vsyncadd (%p5679_p5), [#allocation8], 4294967264  ;;  %p5680_p4 = pmov %p5677_p1 }
  0x7b   : > { %p5681_p8 = pmov %p5677_p1 }
  0x7c   : > { %4257 = dma.done.wait (%p5680_p4), [#allocation11], 16  }
  0x7d   : > { %4259 = vsyncadd (%p5681_p8), [#allocation11], 4294967280 }
  0x7e   : > { %347 = sfence }
  0x7f   : > { %s4517_s30 = sshll.u32 %s4354_s28, 2  ;;  %v3536_v0 = vld [vmem:[%s4498_s29] sm:$0xff]   ;;  %s428_s12 = sld [smem:[#allocation9]]  ;;  %v3631_v3 = vld [vmem:[%s4498_s29 + $0x8] sm:$0xff]   ;;  %v422_v4 = vld [vmem:[%s4498_s29 + $0x10] sm:$0xff]   ;;  %vm515_vm0 = vcmask 326656  }
  0x80   : > { %p388_p7 = scmp.lt.s32.totalorder %s4517_s30, 7  ;;  %s435_s10 = sld [smem:[#allocation7]]  ;;  %v3537_v1 = vunpack.c.l.bf16 %v3536_v0  ;;  %v3538_v2 = vunpack.c.h.bf16 %v3536_v0  ;;  %v3541_v6 = vunpack.c.l.bf16 %v3631_v3  ;;  %v3542_v7 = vunpack.c.h.bf16 %v3631_v3  ;;  %v3632_v20 = vld [vmem:[%s4498_s29 + $0x18] sm:$0xff]   ;;  %v3633_v24 = vld [vmem:[%s4498_s29 + $0x20] sm:$0xff]   ;;  %v3634_v40 = vld [vmem:[%s4498_s29 + $0x28] sm:$0xff]  }
  0x81   : > { %s3372_s14 = sld [smem:[#allocation9 + $0x1]]  ;;  %v427_v8 = vunpack.c.l.bf16 %v422_v4  ;;  %v448_v12 = vunpack.c.h.bf16 %v422_v4  ;;  %vm540_vm1 = vcmask 1043456   ;;  %v3545_v29 = vunpack.c.l.bf16 %v3632_v20  ;;  %s3379_s21 = sld [smem:[#allocation9 + $0x2]]  ;;  %v3635_v44 = vld [vmem:[%s4498_s29 + $0x30] sm:$0xff]   ;;  %v3378_v63 = vld [vmem:[%s4498_s29 + $0x38] sm:$0xff]  }
  0x82   : > { %s4522_s17 = scalar_select %p388_p7, %s4517_s30, 7  ;;  %v3546_v30 = vunpack.c.h.bf16 %v3632_v20  ;;  %v3549_v33 = vunpack.c.l.bf16 %v3633_v24  ;;  %v3550_v34 = vunpack.c.h.bf16 %v3633_v24  ;;  %v3553_v46 = vunpack.c.l.bf16 %v3634_v40 }
  0x83   : > { %s3373_s18 = sld [smem:[#allocation7 + $0x1]]  ;;  %s3380_s11 = sld [smem:[#allocation7 + $0x2]]  ;;  %v3554_v49 = vunpack.c.h.bf16 %v3634_v40  ;;  %v3557_v50 = vunpack.c.l.bf16 %v3635_v44  ;;  %v3558_v54 = vunpack.c.h.bf16 %v3635_v44  ;;  %vm878_vm2 = vcmask 261120  }
  0x84   : > { %s3986_s9 = smul.u32 20, %s4522_s17  ;;  %s3534_s13 = sshll.u32 %s4522_s17, 4  ;;  %vm1091_vm3 = vcmask 523264   ;;  %vm3169_vm4 = vcmask 785408  }
  0x85   : > { %v4527_v5 = vstv %s428_s12  ;;  %s1107_s15 = sadd.s32 1, %s4517_s30 }
  0x86   : > { %s4532_s20 = scalar_lea.vmem %s5652_s2, %s3986_s9  ;;  %v430_v9 = vmul.f32 %v3537_v1, %v4527_v5  ;;  %v431_v10 = vmul.f32 %v3538_v2, %v4527_v5  ;;  %v4536_v11 = vstv %s435_s10  ;;  %v432_v18 = vmul.f32 %v3541_v6, %v4527_v5  ;;  %v3636_v1 = vld [vmem:[%s4498_s29 + $0x40] sm:$0xff]   ;;  %s4846_s3 = smul.u32 3, %s1107_s15 }
  0x87   : > { %5682 = vst [vmem:[#allocation18_spill] sm:$0xff] %v4536_v11  ;;  %v4090_v13 = vld [vmem:[%s4532_s20] sm:$0xff]   ;;  %v4539_v14 = vstv %s3372_s14  ;;  %v4091_v15 = vld [vmem:[%s4532_s20 + $0x8] sm:$0xff]   ;;  %v433_v19 = vmul.f32 %v3542_v7, %v4527_v5  ;;  %v434_v22 = vmul.f32 %v4527_v5, %v427_v8  ;;  %v4092_v25 = vld [vmem:[%s4532_s20 + $0x10] ss:$0 sps:$4 sm:$0xff]   ;;  %v477_v6 = vunpack.c.l.bf16 %v3378_v63  ;;  %s4704_s14 = scalar_lea.vmem %s5651_s1, %s3534_s13  ;;  %s1782_s13 = sadd.s32 2, %s4517_s30 }
  0x88   : > { %v437_v16 = vadd.f32 %v4536_v11, %v430_v9  ;;  %v438_v17 = vadd.f32 %v4536_v11, %v431_v10  ;;  %3758 = vmatprep.subr.bf16.mxu0 %v4090_v13  ;;  %v455_v23 = vmul.f32 %v4539_v14, %v448_v12  ;;  %v439_v27 = vadd.f32 %v4536_v11, %v432_v18  ;;  %v4093_v36 = vld [vmem:[%s4532_s20 + $0x14] sm:$0xff]   ;;  %v4094_v45 = vld [vmem:[%s4532_s20 + $0x1c] sm:$0xff]   ;;  %v4095_v55 = vld [vmem:[%s4532_s20 + $0x24] ss:$0 sps:$4 sm:$0xff]   ;;  %s4906_s12 = smul.u32 3, %s1782_s13 }
  0x89   : > { %3759 = vmatpush3.bf16.msra.mxu0 %v4090_v13  ;;  %v4551_v26 = vstv %s3373_s18  ;;  %v440_v28 = vadd.f32 %v4536_v11, %v433_v19  ;;  %v441_v31 = vadd.f32 %v4536_v11, %v434_v22  ;;  %v542_v35 = vsel %vm540_vm1, %v4092_v25, 0  ;;  %v4588_v2 = vld [vmem:[%s4532_s20 + $0x28] sm:$0xff]   ;;  %v3638_v19 = vld [vmem:[%s4498_s29 + $0x50] sm:$0xff]  }
  0x8a   : > { %v492_v21 = vpack.c.bf16 %v438_v17, %v437_v16  ;;  %3760 = vmatprep.subr.bf16.mxu0 %v4091_v15  ;;  %v462_v32 = vadd.f32 %v4551_v26, %v455_v23  ;;  %v456_v38 = vmul.f32 %v3545_v29, %v4539_v14  ;;  %v457_v39 = vmul.f32 %v3546_v30, %v4539_v14  ;;  %v3637_v18 = vld [vmem:[%s4498_s29 + $0x48] sm:$0xff]   ;;  %s1784_s10 = sld [smem:[#allocation6 + %s4906_s12]] }
  0x8b   : > { %v493_v37 = vpack.c.bf16 %v440_v28, %v439_v27  ;;  %v458_v42 = vmul.f32 %v3549_v33, %v4539_v14  ;;  %v459_v43 = vmul.f32 %v3550_v34, %v4539_v14  ;;  %v4574_v53 = vstv %s3379_s21  ;;  %v3639_v34 = vld [vmem:[%s4498_s29 + $0x58] sm:$0xff]   ;;  %s1110_s21 = sadd.s32 1, %s4846_s3 }
  0x8c   : > { %3764 = vmatprep.mubr.msk.bf16.mxu0 %vm515_vm0, %v492_v21  ;;  %v494_v41 = vpack.c.bf16 %v462_v32, %v441_v31  ;;  %v463_v47 = vadd.f32 %v4551_v26, %v456_v38  ;;  %v464_v48 = vadd.f32 %v4551_v26, %v457_v39  ;;  %v480_v57 = vmul.f32 %v3553_v46, %v4574_v53 }
  0x8d   : > { %3761 = vmatpush3.bf16.msra.mxu0 %v4091_v15  ;;  %v465_v51 = vadd.f32 %v4551_v26, %v458_v42  ;;  %v466_v52 = vadd.f32 %v4551_v26, %v459_v43  ;;  %v481_v58 = vmul.f32 %v3554_v49, %v4574_v53  ;;  %v4579_v60 = vstv %s3380_s11  ;;  %s4862_s11 = sld [smem:[#allocation6 + %s1110_s21]] }
  0x8e   : > { %3966 = vmatprep.subr.msk.bf16.mxu0 %vm540_vm1, %v4092_v25  ;;  %v495_v56 = vpack.c.bf16 %v464_v48, %v463_v47  ;;  %v482_v61 = vmul.f32 %v3557_v50, %v4574_v53  ;;  %v483_v62 = vmul.f32 %v3558_v54, %v4574_v53  ;;  %v1225_v0 = vsel %vm540_vm1, %v4095_v55, 0  ;;  %v3640_v50 = vld [vmem:[%s4498_s29 + $0x68] sm:$0xff]  }
  0x8f   : > { %v496_v59 = vpack.c.bf16 %v466_v52, %v465_v51  ;;  %v487_v3 = vadd.f32 %v4579_v60, %v480_v57  ;;  %v488_v4 = vadd.f32 %v4579_v60, %v481_v58  ;;  %v3561_v9 = vunpack.c.l.bf16 %v3636_v1  ;;  %v3641_v51 = vld [vmem:[%s4498_s29 + $0x70] sm:$0xff]  }
  0x90   : > { %v489_v7 = vadd.f32 %v4579_v60, %v482_v61  ;;  %v490_v8 = vadd.f32 %v4579_v60, %v483_v62  ;;  %v1120_v10 = vunpack.c.h.bf16 %v3378_v63  ;;  %v484_v13 = vmul.f32 %v4574_v53, %v477_v6  ;;  %v4097_v52 = vld [vmem:[%s4532_s20 + $0x30] sm:$0xff]   ;;  %v4098_v63 = vld [vmem:[%s4532_s20 + $0x38] ss:$0 sps:$4 sm:$0xff]  }
  0x91   : > { %3763 = vmatpush3.bf16.msra.mxu0 %v542_v35  ;;  %v497_v12 = vpack.c.bf16 %v488_v4, %v487_v3  ;;  %v1126_v17 = vmul.f32 %v3561_v9, %v4527_v5  ;;  %v3562_v21 = vunpack.c.h.bf16 %v3636_v1  ;;  %v3565_v22 = vunpack.c.l.bf16 %v3637_v18  ;;  %v3420_v35 = vld [vmem:[%s4498_s29 + $0x60] sm:$0xff]  }
  0x92   : > { %3810 = vmatprep.subr.bf16.mxu0 %v4093_v36  ;;  %v498_v15 = vpack.c.bf16 %v490_v8, %v489_v7  ;;  %v1125_v16 = vmul.f32 %v1120_v10, %v4527_v5  ;;  %v491_v20 = vadd.f32 %v4579_v60, %v484_v13  ;;  %v3566_v25 = vunpack.c.h.bf16 %v3637_v18 }
  0x93   : > { %v1131_v24 = vadd.f32 %v1126_v17, %v4536_v11  ;;  %v3569_v27 = vunpack.c.l.bf16 %v3638_v19  ;;  %v1127_v29 = vmul.f32 %v3562_v21, %v4527_v5  ;;  %v1128_v30 = vmul.f32 %v3565_v22, %v4527_v5 }
  0x94   : > { %3765 = vmatmul.mubr.msk.bf16.vlgmr.msra.gmra.mrb[0].mxu0 %vm515_vm0, %v493_v37  ;;  %v1130_v23 = vadd.f32 %v1125_v16, %v4536_v11  ;;  %v499_v28 = vpack.c.bf16 %v491_v20, %v491_v20  ;;  %v1129_v32 = vmul.f32 %v3566_v25, %v4527_v5  ;;  %v3570_v38 = vunpack.c.h.bf16 %v3638_v19 }
  0x95   : > { %3768 = vmatprep.mubr.msk.bf16.mxu0 %vm515_vm0, %v494_v41  ;;  %3811 = vmatpush3.bf16.msra.mxu0 %v4093_v36  ;;  %v1146_v33 = vmul.f32 %v3569_v27, %v4539_v14  ;;  %v1132_v36 = vadd.f32 %v1127_v29, %v4536_v11  ;;  %v1133_v37 = vadd.f32 %v1128_v30, %v4536_v11  ;;  %v3573_v39 = vunpack.c.l.bf16 %v3639_v34 }
  0x96   : > { %3812 = vmatprep.subr.bf16.mxu0 %v4094_v45  ;;  %v1177_v31 = vpack.c.bf16 %v1131_v24, %v1130_v23  ;;  %v1134_v40 = vadd.f32 %v1129_v32, %v4536_v11  ;;  %v3574_v42 = vunpack.c.h.bf16 %v3639_v34  ;;  %v1145_v43 = vunpack.c.l.bf16 %v3420_v35  ;;  %v3643_v23 = vld [vmem:[%s4498_s29 + $0x80] sm:$0xff]   ;;  %v3458_v24 = vld [vmem:[%s4498_s29 + $0x88] sm:$0xff]  }
  0x97   : > { %v1151_v41 = vadd.f32 %v1146_v33, %v4551_v26  ;;  %v1178_v44 = vpack.c.bf16 %v1133_v37, %v1132_v36  ;;  %v1148_v46 = vmul.f32 %v3573_v39, %v4539_v14  ;;  %v1162_v57 = vunpack.c.h.bf16 %v3420_v35  ;;  %v3644_v39 = vld [vmem:[%s4498_s29 + $0x90] sm:$0xff]  }
  0x98   : > { %v1149_v48 = vmul.f32 %v3574_v42, %v4539_v14  ;;  %v1150_v49 = vmul.f32 %v1145_v43, %v4539_v14  ;;  %v3578_v61 = vunpack.c.h.bf16 %v3640_v50  ;;  %v3581_v62 = vunpack.c.l.bf16 %v3641_v51 }
  0x99   : > { %3813 = vmatpush3.bf16.msra.mxu0 %v4094_v45  ;;  %v1147_v45 = vmul.f32 %v3570_v38, %v4539_v14  ;;  %v1179_v47 = vpack.c.bf16 %v1151_v41, %v1134_v40  ;;  %v1167_v1 = vmul.f32 %v1162_v57, %v4574_v53  ;;  %v1900_v8 = vsel %vm540_vm1, %v4098_v63, 0  ;;  %v3645_v40 = vld [vmem:[%s4498_s29 + $0x98] sm:$0xff]   ;;  %v3647_v57 = vld [vmem:[%s4498_s29 + $0xa8] sm:$0xff]  }
  0x9a   : > { %3970 = vmatprep.subr.msk.bf16.mxu0 %vm540_vm1, %v4095_v55  ;;  %v1153_v55 = vadd.f32 %v1148_v46, %v4551_v26  ;;  %v1154_v58 = vadd.f32 %v1149_v48, %v4551_v26  ;;  %v1169_v6 = vmul.f32 %v3578_v61, %v4574_v53  ;;  %v1170_v7 = vmul.f32 %v3581_v62, %v4574_v53 }
  0x9b   : > { %v1152_v54 = vadd.f32 %v1147_v45, %v4551_v26  ;;  %v1172_v9 = vadd.f32 %v1167_v1, %v4579_v60  ;;  %v3589_v27 = vunpack.c.l.bf16 %v3643_v23  ;;  %v1816_v32 = vunpack.c.h.bf16 %v3458_v24 }
  0x9c   : > { %3769 = vmatmul.mubr.msk.bf16.gmra.mrb[4].mxu0 %vm515_vm0, %v495_v56  ;;  %v3577_v56 = vunpack.c.l.bf16 %v3640_v50  ;;  %v1174_v13 = vadd.f32 %v1169_v6, %v4579_v60  ;;  %v3593_v43 = vunpack.c.l.bf16 %v3644_v39  ;;  %v3598_v48 = vunpack.c.h.bf16 %v3645_v40 }
  0x9d   : > { %3772 = vmatprep.mubr.msk.bf16.mxu0 %vm515_vm0, %v496_v59  ;;  %3815 = vmatpush3.bf16.msra.mxu0 %v1225_v0  ;;  %v1155_v59 = vadd.f32 %v1150_v49, %v4551_v26  ;;  %v1180_v0 = vpack.c.bf16 %v1153_v55, %v1152_v54  ;;  %v1802_v34 = vmul.f32 %v3589_v27, %v4527_v5  ;;  %v3605_v1 = vunpack.c.l.bf16 %v3647_v57 }
  0x9e   : > { %3862 = vmatprep.subr.bf16.mxu0 %v4588_v2  ;;  %v1168_v3 = vmul.f32 %v3577_v56, %v4574_v53  ;;  %v1821_v38 = vmul.f32 %v1816_v32, %v4539_v14  ;;  %v1822_v50 = vmul.f32 %v3593_v43, %v4539_v14  ;;  %v1825_v55 = vmul.f32 %v3598_v48, %v4539_v14  ;;  %v3646_v56 = vld [vmem:[%s4498_s29 + $0xa0] sm:$0xff]  }
  0x9f   : > { %v1181_v4 = vpack.c.bf16 %v1155_v59, %v1154_v58  ;;  %v1807_v41 = vadd.f32 %v1802_v34, %v4536_v11  ;;  %v3601_v61 = vunpack.c.l.bf16 %v3646_v56  ;;  %v3602_v62 = vunpack.c.h.bf16 %v3646_v56 }
  0xa0   : > { %v1173_v10 = vadd.f32 %v1168_v3, %v4579_v60  ;;  %v1826_v46 = vadd.f32 %v1821_v38, %v4551_v26  ;;  %v1827_v58 = vadd.f32 %v1822_v50, %v4551_v26  ;;  %v3606_v3 = vunpack.c.h.bf16 %v3647_v57 }
  0xa1   : > { %v1842_v6 = vmul.f32 %v3601_v61, %v4574_v53 }
  0xa2   : > { %v1182_v18 = vpack.c.bf16 %v1173_v10, %v1172_v9  ;;  %v1845_v9 = vmul.f32 %v3606_v3, %v4574_v53  ;;  %v4686_v10 = vld [vmem:[%s4498_s29 + $0xb0] sm:$0xff]  }
  0xa4   : > { %3773 = vmatmul.mubr.msk.bf16.gmra.mrb[8].mxu0 %vm515_vm0, %v497_v12  ;;  %v3582_v12 = vunpack.c.h.bf16 %v3641_v51 }
  0xa5   : > { %3776 = vmatprep.mubr.msk.bf16.mxu0 %vm515_vm0, %v498_v15  ;;  %v1175_v15 = vadd.f32 %v1170_v7, %v4579_v60  ;;  %v1843_v7 = vmul.f32 %v3602_v62, %v4574_v53 }
  0xa6   : > { %v1171_v19 = vmul.f32 %v3582_v12, %v4574_v53  ;;  %v1847_v12 = vadd.f32 %v1842_v6, %v4579_v60 }
  0xa7   : > { %v1183_v20 = vpack.c.bf16 %v1175_v15, %v1174_v13  ;;  %v1848_v13 = vadd.f32 %v1843_v7, %v4579_v60  ;;  %v1841_v15 = vunpack.c.l.bf16 %v4686_v10 }
  0xa8   : > { %v1176_v25 = vadd.f32 %v1171_v19, %v4579_v60 }
  0xa9   : > { %v1846_v19 = vmul.f32 %v1841_v15, %v4574_v53  ;;  %v4102_v15 = vld [vmem:[%s4704_s14 + $0x18] sm:$0xff]  }
  0xaa   : > { %v1184_v33 = vpack.c.bf16 %v1176_v25, %v1176_v25 }
  0xac   : > { %3777 = vmatmul.mubr.msk.bf16.gmra.mrb[12].mxu0 %vm515_vm0, %v499_v28  ;;  %v3590_v28 = vunpack.c.h.bf16 %v3643_v23  ;;  %v4099_v23 = vld [vmem:[%s4704_s14] sm:$0xff]  }
  0xad   : > { %3816 = vmatprep.mubr.msk.bf16.mxu0 %vm515_vm0, %v1177_v31  ;;  %v1799_v31 = vunpack.c.l.bf16 %v3458_v24  ;;  %3786 = vmatprep.mubr.msk.bf16.mxu1 %vm515_vm0, %v4099_v23  ;;  %v4709_v24 = vld [vmem:[%s4704_s14 + $0x20] sm:$0xff]  }
  0xae   : > { %v1803_v35 = vmul.f32 %v3590_v28, %v4527_v5 }
  0xaf   : > { %v1804_v37 = vmul.f32 %v1799_v31, %v4527_v5 }
  0xb0   : > { %v1808_v42 = vadd.f32 %v1803_v35, %v4536_v11 }
  0xb1   : > { %v1809_v45 = vadd.f32 %v1804_v37, %v4536_v11 }
  0xb2   : > { %v1853_v49 = vpack.c.bf16 %v1808_v42, %v1807_v41 }
  0xb4   : > { %3817 = vmatmul.mubr.msk.bf16.vlgmr.msra.gmra.mrb[16].mxu0 %vm515_vm0, %v1178_v44  ;;  %v3594_v44 = vunpack.c.h.bf16 %v3644_v39  ;;  %v4100_v39 = vld [vmem:[%s4704_s14 + $0x8] sm:$0xff]  }
  0xb5   : > { %3820 = vmatprep.mubr.msk.bf16.mxu0 %vm515_vm0, %v1179_v47  ;;  %3863 = vmatpush3.bf16.msra.mxu0 %v4588_v2  ;;  %v3642_v2 = vld [vmem:[%s4498_s29 + $0x78] sm:$0xff]   ;;  %v3597_v47 = vunpack.c.l.bf16 %v3645_v40 }
  0xb6   : > { %3864 = vmatprep.subr.bf16.mxu0 %v4097_v52  ;;  %v3585_v16 = vunpack.c.l.bf16 %v3642_v2  ;;  %v3586_v17 = vunpack.c.h.bf16 %v3642_v2  ;;  %v1823_v51 = vmul.f32 %v3594_v44, %v4539_v14  ;;  %v1844_v2 = vmul.f32 %v3605_v1, %v4574_v53 }
  0xb7   : > { %v1824_v54 = vmul.f32 %v3597_v47, %v4539_v14 }
  0xb8   : > { %v1800_v21 = vmul.f32 %v3585_v16, %v4527_v5  ;;  %v1801_v22 = vmul.f32 %v3586_v17, %v4527_v5  ;;  %v1828_v59 = vadd.f32 %v1823_v51, %v4551_v26  ;;  %v1849_v16 = vadd.f32 %v1844_v2, %v4579_v60 }
  0xb9   : > { %3865 = vmatpush3.bf16.msra.mxu0 %v4097_v52  ;;  %v1854_v52 = vpack.c.bf16 %v1826_v46, %v1809_v45  ;;  %v1850_v17 = vadd.f32 %v1845_v9, %v4579_v60 }
  0xba   : > { %3974 = vmatprep.subr.msk.bf16.mxu0 %vm540_vm1, %v4098_v63  ;;  %v1805_v29 = vadd.f32 %v1800_v21, %v4536_v11  ;;  %v1806_v30 = vadd.f32 %v1801_v22, %v4536_v11  ;;  %v1829_v63 = vadd.f32 %v1824_v54, %v4551_v26  ;;  %v1851_v21 = vadd.f32 %v1846_v19, %v4579_v60 }
  0xbc   : > { %3821 = vmatmul.mubr.msk.bf16.gmra.mrb[20].mxu0 %vm515_vm0, %v1180_v0  ;;  %v1852_v36 = vpack.c.bf16 %v1806_v30, %v1805_v29  ;;  %v1830_v0 = vadd.f32 %v1825_v55, %v4551_v26  ;;  %v1859_v22 = vpack.c.bf16 %v1851_v21, %v1851_v21 }
  0xbd   : > { %3824 = vmatprep.mubr.msk.bf16.mxu0 %vm515_vm0, %v1181_v4  ;;  %3867 = vmatpush3.bf16.msra.mxu0 %v1900_v8  ;;  %v1855_v4 = vpack.c.bf16 %v1828_v59, %v1827_v58 }
  0xbe   : > { %v1856_v8 = vpack.c.bf16 %v1830_v0, %v1829_v63  ;;  %v4101_v63 = vld [vmem:[%s4704_s14 + $0x10] sm:$0xff]  }
  0xc4   : > { %3825 = vmatmul.mubr.msk.bf16.gmra.mrb[24].mxu0 %vm515_vm0, %v1182_v18  ;;  %v1857_v18 = vpack.c.bf16 %v1848_v13, %v1847_v12 }
  0xc5   : > { %3828 = vmatprep.mubr.msk.bf16.mxu0 %vm515_vm0, %v1183_v20  ;;  %v1858_v20 = vpack.c.bf16 %v1850_v17, %v1849_v16 }
  0xcc   : > { %3829 = vmatmul.mubr.msk.bf16.gmra.mrb[28].mxu0 %vm515_vm0, %v1184_v33 }
  0xcd   : > { %3868 = vmatprep.mubr.msk.bf16.mxu0 %vm515_vm0, %v1852_v36 }
  0xd4   : > { %3869 = vmatmul.mubr.msk.bf16.vlgmr.msra.gmra.mrb[32].mxu0 %vm515_vm0, %v1853_v49 }
  0xd5   : > { %3872 = vmatprep.mubr.msk.bf16.mxu0 %vm515_vm0, %v1854_v52 }
  0xdc   : > { %3873 = vmatmul.mubr.msk.bf16.gmra.mrb[36].mxu0 %vm515_vm0, %v1855_v4 }
  0xdd   : > { %3876 = vmatprep.mubr.msk.bf16.mxu0 %vm515_vm0, %v1856_v8 }
  0xe4   : > { %3877 = vmatmul.mubr.msk.bf16.gmra.mrb[40].mxu0 %vm515_vm0, %v1857_v18 }
  0xe5   : > { %3880 = vmatprep.mubr.msk.bf16.mxu0 %vm515_vm0, %v1858_v20 }
  0xec   : > { %3881 = vmatmul.mubr.msk.bf16.gmra.mrb[44].mxu0 %vm515_vm0, %v1859_v22 }
  0xed   : > { %3910 = vmatprep.mubr.msk.bf16.mxu0 %vm515_vm0, %v4709_v24 }
 0x167   : > { %v3766_v25 = vpop.f32.mrb[0].mxu0 }
 0x168   : > { %v578_v27 = vpop.f32.mrb[1].mxu0 }
 0x169   : > { %v3767_v28 = vpop.f32.mrb[2].mxu0 }
 0x16a   : > { %v641_v29 = vpack.c.bf16 %v3767_v28, %v3766_v25  ;;  %v581_v30 = vpop.f32.mrb[3].mxu0 }
 0x16b   : > { %v640_v31 = vpack.c.bf16 %v581_v30, %v578_v27 }
 0x16d   : > { %3780 = vmatprep.subr.bf16.mxu1 %v640_v31 }
 0x16e   : > { %3781 = vmatpush3.bf16.msra.mxu1 %v640_v31 }
 0x16f   : > { %v3770_v32 = vpop.f32.mrb[4].mxu0  ;;  %3782 = vmatprep.subr.bf16.mxu1 %v641_v29 }
 0x170   : > { %v594_v33 = vpop.f32.mrb[5].mxu0 }
 0x171   : > { %v642_v34 = vpack.c.bf16 %v594_v33, %v594_v33  ;;  %v3771_v35 = vpop.f32.mrb[6].mxu0 }
 0x172   : > { %v597_v36 = vpop.f32.mrb[7].mxu0  ;;  %3783 = vmatpush3.bf16.msra.mxu1 %v641_v29 }
 0x173   : > { %v724_v37 = vpack.c.bf16 %v3770_v32, %v597_v36  ;;  %3967 = vmatprep.subr.msk.bf16.mxu1 %vm540_vm1, %v642_v34  ;;  %v660_v38 = vsel %vm540_vm1, %v642_v34, 0 }
 0x176   : > { %3785 = vmatpush3.bf16.msra.mxu1 %v660_v38 }
 0x177   : > { %v3774_v40 = vpop.f32.mrb[8].mxu0  ;;  %3790 = vmatprep.subr.bf16.mxu1 %v724_v37 }
 0x178   : > { %v610_v41 = vpop.f32.mrb[9].mxu0 }
 0x179   : > { %v725_v42 = vpack.c.bf16 %v610_v41, %v3771_v35  ;;  %v3775_v43 = vpop.f32.mrb[10].mxu0  ;;  %3787 = vmatmul.mubr.msk.bf16.vlgmr.msra.gmra.mrb[0].mxu1 %vm515_vm0, %v4100_v39 }
 0x17a   : > { %v791_v44 = vpack.c.bf16 %v3775_v43, %v3774_v40  ;;  %v613_v45 = vpop.f32.mrb[11].mxu0  ;;  %3791 = vmatpush3.bf16.msra.mxu1 %v724_v37  ;;  %3796 = vmatprep.mubr.msk.bf16.mxu1 %vm515_vm0, %v4099_v23 }
 0x17b   : > { %3792 = vmatprep.subr.bf16.mxu1 %v725_v42  ;;  %v726_v46 = vpack.c.bf16 %v613_v45, %v613_v45 }
 0x17d   : > { %v728_v49 = vsel %vm540_vm1, %v726_v46, 0 }
 0x17e   : > { %3793 = vmatpush3.bf16.msra.mxu1 %v725_v42 }
 0x17f   : > { %3968 = vmatprep.subr.msk.bf16.mxu1 %vm540_vm1, %v726_v46  ;;  %v3778_v47 = vpop.f32.mrb[12].mxu0 }
 0x180   : > { %v626_v48 = vpop.f32.mrb[13].mxu0  ;;  %v793_v56 = vpack.c.bf16 %v3778_v47, %v3778_v47 }
 0x181   : > { %v3779_v50 = vpop.f32.mrb[14].mxu0 }
 0x182   : > { %3795 = vmatpush3.bf16.msra.mxu1 %v728_v49  ;;  %v629_v51 = vpop.f32.mrb[15].mxu0  ;;  %v795_v62 = vsel %vm540_vm1, %v793_v56, 0  ;;  %v4104_v49 = vld [vmem:[%s4704_s14 + $0x28] sm:$0xff]  }
 0x183   : > { %v792_v52 = vpack.c.bf16 %v629_v51, %v626_v48  ;;  %3800 = vmatprep.subr.bf16.mxu1 %v791_v44  ;;  %v3648_v48 = vld [vmem:[%s4498_s29 + $0xb8] sm:$0xff]   ;;  %v2470_v51 = vunpack.c.h.bf16 %v4686_v10 }
 0x184   : > { %v3609_v50 = vunpack.c.l.bf16 %v3648_v48 }
 0x185   : > { %3797 = vmatmul.mubr.msk.bf16.vlgmr.msra.gmra.mrb[4].mxu1 %vm515_vm0, %v4100_v39 }
 0x186   : > { %3801 = vmatpush3.bf16.msra.mxu1 %v791_v44  ;;  %3806 = vmatprep.mubr.msk.bf16.mxu1 %vm515_vm0, %v4099_v23 }
 0x187   : > { %3802 = vmatprep.subr.bf16.mxu1 %v792_v52  ;;  %v3818_v54 = vpop.f32.mrb[16].mxu0 }
 0x188   : > { %v1261_v55 = vpop.f32.mrb[17].mxu0 }
 0x189   : > { %v3819_v57 = vpop.f32.mrb[18].mxu0 }
 0x18a   : > { %3803 = vmatpush3.bf16.msra.mxu1 %v792_v52  ;;  %v1324_v58 = vpack.c.bf16 %v3819_v57, %v3818_v54  ;;  %v1264_v59 = vpop.f32.mrb[19].mxu0  ;;  %v2475_v57 = vmul.f32 %v2470_v51, %v4527_v5 }
 0x18b   : > { %3969 = vmatprep.subr.msk.bf16.mxu1 %vm540_vm1, %v793_v56  ;;  %v1323_v61 = vpack.c.bf16 %v1264_v59, %v1261_v55 }
 0x18e   : > { %3805 = vmatpush3.bf16.msra.mxu1 %v795_v62  ;;  %v2480_v62 = vadd.f32 %v2475_v57, %v4536_v11 }
 0x18f   : > { %3832 = vmatprep.subr.bf16.mxu1 %v1323_v61  ;;  %v3822_v0 = vpop.f32.mrb[20].mxu0 }
 0x190   : > { %v1277_v1 = vpop.f32.mrb[21].mxu0 }
 0x191   : > { %3807 = vmatmul.mubr.msk.bf16.vlgmr.msra.gmra.mrb[8].mxu1 %vm515_vm0, %v4100_v39  ;;  %v3823_v3 = vpop.f32.mrb[22].mxu0  ;;  %v1325_v6 = vpack.c.bf16 %v1277_v1, %v1277_v1  ;;  %v4105_v1 = vld [vmem:[%s4532_s20 + $0x3c] sm:$0xff]  }
 0x192   : > { %3833 = vmatpush3.bf16.msra.mxu1 %v1323_v61  ;;  %v1280_v4 = vpop.f32.mrb[23].mxu0  ;;  %3838 = vmatprep.mubr.msk.bf16.mxu1 %vm515_vm0, %v4101_v63 }
 0x193   : > { %3834 = vmatprep.subr.bf16.mxu1 %v1324_v58  ;;  %v1407_v7 = vpack.c.bf16 %v3822_v0, %v1280_v4  ;;  %v1343_v8 = vsel %vm540_vm1, %v1325_v6, 0  ;;  %v3649_v0 = vld [vmem:[%s4498_s29 + $0xc0] sm:$0xff]  }
 0x196   : > { %3835 = vmatpush3.bf16.msra.mxu1 %v1324_v58  ;;  %v2476_v58 = vmul.f32 %v3609_v50, %v4527_v5 }
 0x197   : > { %v3826_v2 = vpop.f32.mrb[24].mxu0  ;;  %3971 = vmatprep.subr.msk.bf16.mxu1 %vm540_vm1, %v1325_v6  ;;  %v3610_v6 = vunpack.c.h.bf16 %v3648_v48 }
 0x198   : > { %v1293_v9 = vpop.f32.mrb[25].mxu0 }
 0x199   : > { %v1408_v12 = vpack.c.bf16 %v1293_v9, %v3823_v3  ;;  %v3827_v13 = vpop.f32.mrb[26].mxu0  ;;  %v3650_v3 = vld [vmem:[%s4498_s29 + $0xc8] sm:$0xff]  }
 0x19a   : > { %3837 = vmatpush3.bf16.msra.mxu1 %v1343_v8  ;;  %v1474_v16 = vpack.c.bf16 %v3827_v13, %v3826_v2  ;;  %v1296_v17 = vpop.f32.mrb[27].mxu0  ;;  %v3614_v2 = vunpack.c.h.bf16 %v3649_v0  ;;  %v3617_v9 = vunpack.c.l.bf16 %v3650_v3  ;;  %v2477_v13 = vmul.f32 %v3610_v6, %v4527_v5 }
 0x19b   : > { %3842 = vmatprep.subr.bf16.mxu1 %v1407_v7  ;;  %v1409_v20 = vpack.c.bf16 %v1296_v17, %v1296_v17 }
 0x19c   : > { %v2496_v17 = vmul.f32 %v3617_v9, %v4539_v14 }
 0x19d   : > { %3839 = vmatmul.mubr.msk.bf16.vlgmr.msra.gmra.mrb[12].mxu1 %vm515_vm0, %v4102_v15  ;;  %v1411_v25 = vsel %vm540_vm1, %v1409_v20, 0 }
 0x19e   : > { %3843 = vmatpush3.bf16.msra.mxu1 %v1407_v7  ;;  %3848 = vmatprep.mubr.msk.bf16.mxu1 %vm515_vm0, %v4101_v63  ;;  %v3613_v7 = vunpack.c.l.bf16 %v3649_v0 }
 0x19f   : > { %3844 = vmatprep.subr.bf16.mxu1 %v1408_v12  ;;  %v3830_v18 = vpop.f32.mrb[28].mxu0 }
 0x1a0   : > { %v1309_v19 = vpop.f32.mrb[29].mxu0  ;;  %v1476_v33 = vpack.c.bf16 %v3830_v18, %v3830_v18  ;;  %v3651_v18 = vld [vmem:[%s4498_s29 + $0xd0] sm:$0xff]  }
 0x1a1   : > { %v3831_v21 = vpop.f32.mrb[30].mxu0 }
 0x1a2   : > { %3845 = vmatpush3.bf16.msra.mxu1 %v1408_v12  ;;  %v1312_v22 = vpop.f32.mrb[31].mxu0  ;;  %v1478_v36 = vsel %vm540_vm1, %v1476_v33, 0  ;;  %v4106_v12 = vld [vmem:[%s4532_s20 + $0x44] sm:$0xff]   ;;  %v2482_v21 = vadd.f32 %v2477_v13, %v4536_v11 }
 0x1a3   : > { %3972 = vmatprep.subr.msk.bf16.mxu1 %vm540_vm1, %v1409_v20  ;;  %v1475_v23 = vpack.c.bf16 %v1312_v22, %v1309_v19  ;;  %v4107_v19 = vld [vmem:[%s4532_s20 + $0x4c] ss:$0 sps:$4 sm:$0xff]   ;;  %s1109_s20 = sld [smem:[#allocation6 + %s4846_s3]] }
 0x1a4   : > { %v3506_v20 = vld [vmem:[%s4498_s29 + $0xd8] sm:$0xff]  }
 0x1a6   : > { %3847 = vmatpush3.bf16.msra.mxu1 %v1411_v25  ;;  %v3621_v25 = vunpack.c.l.bf16 %v3651_v18 }
 0x1a7   : > { %3852 = vmatprep.subr.bf16.mxu1 %v1474_v16  ;;  %v3870_v27 = vpop.f32.mrb[32].mxu0 }
 0x1a8   : > { %v1936_v28 = vpop.f32.mrb[33].mxu0 }
 0x1a9   : > { %3849 = vmatmul.mubr.msk.bf16.vlgmr.msra.gmra.mrb[16].mxu1 %vm515_vm0, %v4102_v15  ;;  %v3871_v29 = vpop.f32.mrb[34].mxu0 }
 0x1aa   : > { %3853 = vmatpush3.bf16.msra.mxu1 %v1474_v16  ;;  %v1999_v30 = vpack.c.bf16 %v3871_v29, %v3870_v27  ;;  %v1939_v31 = vpop.f32.mrb[35].mxu0  ;;  %3858 = vmatprep.mubr.msk.bf16.mxu1 %vm515_vm0, %v4101_v63  ;;  %v2481_v63 = vadd.f32 %v2476_v58, %v4536_v11  ;;  %v2479_v16 = vmul.f32 %v3614_v2, %v4527_v5  ;;  %v2495_v29 = vunpack.c.l.bf16 %v3506_v20 }
 0x1ab   : > { %3854 = vmatprep.subr.bf16.mxu1 %v1475_v23  ;;  %v1998_v32 = vpack.c.bf16 %v1939_v31, %v1936_v28  ;;  %v2501_v28 = vadd.f32 %v2496_v17, %v4551_v26 }
 0x1ac   : > { %v2527_v8 = vpack.c.bf16 %v2481_v63, %v2480_v62  ;;  %v2484_v27 = vadd.f32 %v2479_v16, %v4536_v11  ;;  %v4805_v63 = vld [vmem:[%s4704_s14 + $0x30] sm:$0xff]  }
 0x1ae   : > { %3855 = vmatpush3.bf16.msra.mxu1 %v1475_v23  ;;  %v3618_v23 = vunpack.c.h.bf16 %v3650_v3 }
 0x1af   : > { %3973 = vmatprep.subr.msk.bf16.mxu1 %vm540_vm1, %v1476_v33  ;;  %v3874_v34 = vpop.f32.mrb[36].mxu0  ;;  %v2498_v33 = vmul.f32 %v3621_v25, %v4539_v14 }
 0x1b0   : > { %v1952_v35 = vpop.f32.mrb[37].mxu0 }
 0x1b1   : > { %v3875_v37 = vpop.f32.mrb[38].mxu0  ;;  %v2000_v40 = vpack.c.bf16 %v1952_v35, %v1952_v35 }
 0x1b2   : > { %3857 = vmatpush3.bf16.msra.mxu1 %v1478_v36  ;;  %v1955_v38 = vpop.f32.mrb[39].mxu0  ;;  %v2500_v36 = vmul.f32 %v2495_v29, %v4539_v14 }
 0x1b3   : > { %3884 = vmatprep.subr.bf16.mxu1 %v1998_v32  ;;  %v2082_v39 = vpack.c.bf16 %v3874_v34, %v1955_v38  ;;  %v2018_v47 = vsel %vm540_vm1, %v2000_v40, 0  ;;  %v2529_v34 = vpack.c.bf16 %v2501_v28, %v2484_v27  ;;  %v3653_v38 = vld [vmem:[%s4498_s29 + $0xe8] sm:$0xff]  }
 0x1b5   : > { %3859 = vmatmul.mubr.msk.bf16.vlgmr.msra.gmra.mrb[20].mxu1 %vm515_vm0, %v4102_v15  ;;  %v2478_v15 = vmul.f32 %v3613_v7, %v4527_v5  ;;  %v3622_v5 = vunpack.c.h.bf16 %v3651_v18 }
 0x1b6   : > { %3885 = vmatpush3.bf16.msra.mxu1 %v1998_v32  ;;  %3890 = vmatprep.mubr.msk.bf16.mxu1 %vm515_vm0, %v4709_v24  ;;  %v2497_v32 = vmul.f32 %v3618_v23, %v4539_v14 }
 0x1b7   : > { %3886 = vmatprep.subr.bf16.mxu1 %v1999_v30  ;;  %v3878_v41 = vpop.f32.mrb[40].mxu0  ;;  %v2483_v22 = vadd.f32 %v2478_v15, %v4536_v11  ;;  %v2499_v35 = vmul.f32 %v3622_v5, %v4539_v14 }
 0x1b8   : > { %v1968_v42 = vpop.f32.mrb[41].mxu0 }
 0x1b9   : > { %v2083_v43 = vpack.c.bf16 %v1968_v42, %v3875_v37  ;;  %v3879_v44 = vpop.f32.mrb[42].mxu0  ;;  %v2528_v31 = vpack.c.bf16 %v2483_v22, %v2482_v21  ;;  %v3652_v37 = vld [vmem:[%s4498_s29 + $0xe0] sm:$0xff]   ;;  %v2512_v42 = vunpack.c.h.bf16 %v3506_v20  ;;  %s4808_s29 = smul.u32 12, %s4354_s28 }
 0x1ba   : > { %3887 = vmatpush3.bf16.msra.mxu1 %v1999_v30  ;;  %v2149_v45 = vpack.c.bf16 %v3879_v44, %v3878_v41  ;;  %v1971_v46 = vpop.f32.mrb[43].mxu0  ;;  %v2575_v30 = vsel %vm540_vm1, %v4107_v19, 0  ;;  %v3625_v41 = vunpack.c.l.bf16 %v3652_v37  ;;  %v2505_v44 = vadd.f32 %v2500_v36, %v4551_v26 }
 0x1bb   : > { %3975 = vmatprep.subr.msk.bf16.mxu1 %vm540_vm1, %v2000_v40  ;;  %v2084_v61 = vpack.c.bf16 %v1971_v46, %v1971_v46  ;;  %v2503_v40 = vadd.f32 %v2498_v33, %v4551_v26  ;;  %v3629_v46 = vunpack.c.l.bf16 %v3653_v38  ;;  %v2517_v14 = vmul.f32 %v2512_v42, %v4574_v53  ;;  %s413_s17 = sld [smem:[#allocation6 + %s4808_s29]]  ;;  %s414_s18 = sadd.s32 1, %s4808_s29 }
 0x1bc   : > { %3904 = vmatprep.subr.bf16.mxu0 %v2149_v45  ;;  %v2518_v48 = vmul.f32 %v3625_v41, %v4574_v53  ;;  %s4816_s9 = sld [smem:[#allocation6 + %s414_s18]] }
 0x1bd   : > { %3905 = vmatpush3.bf16.msra.mxu0 %v2149_v45  ;;  %v2086_v4 = vsel %vm540_vm1, %v2084_v61, 0  ;;  %v3626_v45 = vunpack.c.h.bf16 %v3652_v37  ;;  %v2520_v51 = vmul.f32 %v3629_v46, %v4574_v53 }
 0x1be   : > { %3889 = vmatpush3.bf16.msra.mxu1 %v2018_v47 }
 0x1bf   : > { %3894 = vmatprep.subr.bf16.mxu1 %v2082_v39  ;;  %v3882_v52 = vpop.f32.mrb[44].mxu0  ;;  %v2519_v50 = vmul.f32 %v3626_v45, %v4574_v53  ;;  %v2525_v57 = vadd.f32 %v2520_v51, %v4579_v60 }
 0x1c0   : > { %v1984_v54 = vpop.f32.mrb[45].mxu0  ;;  %v2151_v59 = vpack.c.bf16 %v3882_v52, %v3882_v52  ;;  %v2522_v52 = vadd.f32 %v2517_v14, %v4579_v60 }
 0x1c1   : > { %3891 = vmatmul.mubr.msk.bf16.vlgmr.msra.gmra.mrb[24].mxu1 %vm515_vm0, %v4104_v49  ;;  %v3883_v55 = vpop.f32.mrb[46].mxu0  ;;  %v711_v0 = vstv %s413_s17  ;;  %s1785_s17 = sadd.s32 1, %s4906_s12 }
 0x1c2   : > { %3895 = vmatpush3.bf16.msra.mxu1 %v2082_v39  ;;  %v1987_v56 = vpop.f32.mrb[47].mxu0  ;;  %3900 = vmatprep.mubr.msk.bf16.mxu1 %vm515_vm0, %v4709_v24  ;;  %v2153_v24 = vsel %vm540_vm1, %v2151_v59, 0  ;;  %v2502_v39 = vadd.f32 %v2497_v32, %v4551_v26  ;;  %v3630_v55 = vunpack.c.h.bf16 %v3653_v38  ;;  %s4926_s18 = sld [smem:[#allocation6 + %s1785_s17]] }
 0x1c3   : > { %3896 = vmatprep.subr.bf16.mxu1 %v2083_v43  ;;  %v2150_v10 = vpack.c.bf16 %v1987_v56, %v1984_v54  ;;  %v2523_v54 = vadd.f32 %v2518_v48, %v4579_v60  ;;  %v2524_v56 = vadd.f32 %v2519_v50, %v4579_v60  ;;  %s3401_s17 = sld [smem:[#allocation10 + $0x2]] }
 0x1c4   : > { %v2530_v47 = vpack.c.bf16 %v2503_v40, %v2502_v39 }
 0x1c5   : > { %3906 = vmatprep.subr.bf16.mxu0 %v2150_v10  ;;  %v2532_v58 = vpack.c.bf16 %v2523_v54, %v2522_v52 }
 0x1c6   : > { %3897 = vmatpush3.bf16.msra.mxu1 %v2083_v43  ;;  %3907 = vmatpush3.bf16.msra.mxu0 %v2150_v10  ;;  %v2504_v43 = vadd.f32 %v2499_v35, %v4551_v26  ;;  %v2533_v10 = vpack.c.bf16 %v2525_v57, %v2524_v56 }
 0x1c7   : > { %3976 = vmatprep.subr.msk.bf16.mxu1 %vm540_vm1, %v2084_v61  ;;  %3977 = vmatprep.subr.msk.bf16.mxu0 %vm540_vm1, %v2151_v59  ;;  %v2521_v59 = vmul.f32 %v3630_v55, %v4574_v53 }
 0x1c9   : > { %v2526_v61 = vadd.f32 %v2521_v59, %v4579_v60 }
 0x1ca   : > { %3899 = vmatpush3.bf16.msra.mxu1 %v2086_v4  ;;  %3909 = vmatpush3.bf16.msra.mxu0 %v2153_v24 }
 0x1cb   : > { %3914 = vmatprep.subr.bf16.mxu1 %v4105_v1  ;;  %v2534_v62 = vpack.c.bf16 %v2526_v61, %v2526_v61 }
 0x1cd   : > { %3901 = vmatmul.mubr.msk.bf16.vlgmr.msra.gmra.mrb[28].mxu1 %vm515_vm0, %v4104_v49  ;;  %3911 = vmatmul.mubr.msk.bf16.vlgmr.msra.gmra.mrb[48].mxu0 %vm515_vm0, %v4104_v49  ;;  %v2531_v49 = vpack.c.bf16 %v2505_v44, %v2504_v43 }
 0x1ce   : > { %3915 = vmatpush3.bf16.msra.mxu1 %v4105_v1  ;;  %3920 = vmatprep.mubr.msk.bf16.mxu1 %vm515_vm0, %v2527_v8  ;;  %v4819_v8 = vstv %s4816_s9 }
 0x1cf   : > { %3916 = vmatprep.subr.bf16.mxu1 %v4106_v12  ;;  %3942 = vmatprep.mubr.msk.bf16.mxu0 %vm515_vm0, %v4805_v63 }
 0x1d2   : > { %3917 = vmatpush3.bf16.msra.mxu1 %v4106_v12 }
 0x1d3   : > { %3978 = vmatprep.subr.msk.bf16.mxu1 %vm540_vm1, %v4107_v19 }
 0x1d6   : > { %3919 = vmatpush3.bf16.msra.mxu1 %v2575_v30 }
 0x1d9   : > { %3921 = vmatmul.mubr.msk.bf16.vlgmr.msra.gmra.mrb[32].mxu1 %vm515_vm0, %v2528_v31 }
 0x1da   : > { %3924 = vmatprep.mubr.msk.bf16.mxu1 %vm515_vm0, %v2529_v34 }
 0x1e1   : > { %3925 = vmatmul.mubr.msk.bf16.gmra.mrb[36].mxu1 %vm515_vm0, %v2530_v47 }
 0x1e2   : > { %3928 = vmatprep.mubr.msk.bf16.mxu1 %vm515_vm0, %v2531_v49 }
 0x1e9   : > { %3929 = vmatmul.mubr.msk.bf16.gmra.mrb[40].mxu1 %vm515_vm0, %v2532_v58 }
 0x1ea   : > { %3932 = vmatprep.mubr.msk.bf16.mxu1 %vm515_vm0, %v2533_v10 }
 0x1f1   : > { %3933 = vmatmul.mubr.msk.bf16.gmra.mrb[44].mxu1 %vm515_vm0, %v2534_v62 }
 0x1f2   : > { %3962 = vmatprep.mubr.msk.bf16.mxu1 %vm515_vm0, %v4805_v63 }
 0x24c   : > { %v3788_v53 = vpop.f32.mrb[0].mxu1 }
 0x24d   : > { %v696_v24 = vpop.f32.mrb[1].mxu1  ;;  %v714_v9 = vmul.f32 %v3788_v53, %v711_v0 }
 0x24e   : > { %v3789_v1 = vpop.f32.mrb[2].mxu1  ;;  %v712_v13 = vmul.f32 %v711_v0, %v696_v24 }
 0x24f   : > { %v715_v3 = vmul.f32 %v3789_v1, %v711_v0  ;;  %v699_v4 = vpop.f32.mrb[3].mxu1  ;;  %v718_v18 = vmax.f32 %v714_v9, 0.0 }
 0x250   : > { %v713_v6 = vmul.f32 %v711_v0, %v699_v4  ;;  %v716_v19 = vmax.f32 %v712_v13, 0.0 }
 0x251   : > { %v719_v7 = vmax.f32 %v715_v3, 0.0  ;;  %v4827_v27 = vmin.f32 %v718_v18, 1.0 }
 0x252   : > { %v717_v2 = vmax.f32 %v713_v6, 0.0  ;;  %v4829_v30 = vmin.f32 %v716_v19, 1.0 }
 0x253   : > { %v723_v12 = vmin.f32 %v719_v7, 1.0  ;;  %v860_v37 = vmul.f32 0.299, %v4827_v27 }
 0x254   : > { %v721_v15 = vmin.f32 %v717_v2, 1.0  ;;  %v858_v40 = vmul.f32 0.299, %v4829_v30 }
 0x255   : > { %v4822_v16 = vmul.f32 %v4819_v8, %v723_v12  ;;  %v861_v43 = vmul.f32 0.299, %v723_v12 }
 0x256   : > { %v4825_v17 = vmul.f32 %v4819_v8, %v721_v15  ;;  %v859_v47 = vmul.f32 0.299, %v721_v15 }
 0x258   : > { %v3798_v20 = vpop.f32.mrb[4].mxu1 }
 0x259   : > { %v781_v21 = vmul.f32 %v3798_v20, %v711_v0  ;;  %v764_v22 = vpop.f32.mrb[5].mxu1 }
 0x25a   : > { %v779_v23 = vmul.f32 %v764_v22, %v711_v0  ;;  %v3799_v25 = vpop.f32.mrb[6].mxu1  ;;  %v4864_v22 = vstv %s1109_s20  ;;  %s903_s20 = ssub.f32 1.0, %s4816_s9  ;;  %s5023_s9 = sld [smem:[#allocation10 + $0x1]] }
 0x25b   : > { %v785_v28 = vmax.f32 %v781_v21, 0.0  ;;  %v782_v5 = vmul.f32 %v3799_v25, %v711_v0  ;;  %v767_v29 = vpop.f32.mrb[7].mxu1 }
 0x25c   : > { %v783_v31 = vmax.f32 %v779_v23, 0.0  ;;  %v780_v32 = vmul.f32 %v767_v29, %v711_v0 }
 0x25d   : > { %v4831_v33 = vmin.f32 %v785_v28, 1.0  ;;  %v786_v34 = vmax.f32 %v782_v5, 0.0 }
 0x25e   : > { %v4833_v35 = vmin.f32 %v783_v31, 1.0  ;;  %v784_v36 = vmax.f32 %v780_v32, 0.0 }
 0x25f   : > { %v864_v38 = vmul.f32 0.587, %v4831_v33  ;;  %v790_v39 = vmin.f32 %v786_v34, 1.0 }
 0x260   : > { %v862_v41 = vmul.f32 0.587, %v4833_v35  ;;  %v788_v42 = vmin.f32 %v784_v36, 1.0 }
 0x261   : > { %v868_v44 = vadd.f32 %v864_v38, %v860_v37  ;;  %v865_v45 = vmul.f32 0.587, %v790_v39  ;;  %v4840_v46 = vmul.f32 %v4819_v8, %v790_v39  ;;  %v4872_v39 = vstv %s4862_s11 }
 0x262   : > { %v866_v14 = vadd.f32 %v862_v41, %v858_v40  ;;  %v863_v48 = vmul.f32 0.587, %v788_v42  ;;  %v4844_v49 = vmul.f32 %v4819_v8, %v788_v42 }
 0x263   : > { %v869_v50 = vadd.f32 %v865_v45, %v861_v43 }
 0x264   : > { %v867_v51 = vadd.f32 %v863_v48, %v859_v47  ;;  %v3808_v52 = vpop.f32.mrb[8].mxu1 }
 0x265   : > { %v848_v54 = vmul.f32 %v3808_v52, %v711_v0  ;;  %v831_v55 = vpop.f32.mrb[9].mxu1 }
 0x266   : > { %v846_v56 = vmul.f32 %v831_v55, %v711_v0  ;;  %v3809_v57 = vpop.f32.mrb[10].mxu1 }
 0x267   : > { %v852_v58 = vmax.f32 %v848_v54, 0.0  ;;  %v849_v59 = vmul.f32 %v3809_v57, %v711_v0  ;;  %v834_v10 = vpop.f32.mrb[11].mxu1 }
 0x268   : > { %v850_v61 = vmax.f32 %v846_v56, 0.0  ;;  %v847_v62 = vmul.f32 %v834_v10, %v711_v0 }
 0x269   : > { %v4849_v53 = vmin.f32 %v852_v58, 1.0  ;;  %v853_v24 = vmax.f32 %v849_v59, 0.0 }
 0x26a   : > { %v4851_v1 = vmin.f32 %v850_v61, 1.0  ;;  %v851_v3 = vmax.f32 %v847_v62, 0.0 }
 0x26b   : > { %v872_v4 = vmul.f32 0.114, %v4849_v53  ;;  %v857_v6 = vmin.f32 %v853_v24, 1.0 }
 0x26c   : > { %v870_v7 = vmul.f32 0.114, %v4851_v1  ;;  %v855_v2 = vmin.f32 %v851_v3, 1.0 }
 0x26d   : > { %v873_v9 = vmul.f32 0.114, %v857_v6  ;;  %v4857_v12 = vmul.f32 %v4819_v8, %v857_v6  ;;  %v876_v13 = vadd.f32 %v872_v4, %v868_v44 }
 0x26e   : > { %v874_v0 = vadd.f32 %v870_v7, %v866_v14  ;;  %v871_v15 = vmul.f32 0.114, %v855_v2  ;;  %v4860_v18 = vmul.f32 %v4819_v8, %v855_v2 }
 0x26f   : > { %v877_v19 = vadd.f32 %v873_v9, %v869_v50  ;;  %v882_v36 = vsel %vm878_vm2, %v876_v13, 0.0 }
 0x270   : > { %v875_v20 = vadd.f32 %v871_v15, %v867_v51  ;;  %v3840_v21 = vpop.f32.mrb[12].mxu1  ;;  %v879_v28 = vsel %vm878_vm2, %v874_v0, 0.0 }
 0x271   : > { %v1379_v23 = vpop.f32.mrb[13].mxu1  ;;  %v884_v41 = vsel %vm878_vm2, %v877_v19, 0.0  ;;  %v1397_v42 = vmul.f32 %v3840_v21, %v4864_v22 }
 0x272   : > { %v3841_v25 = vpop.f32.mrb[14].mxu1  ;;  %v880_v5 = vsel %vm878_vm2, %v875_v20, 0.0  ;;  %v1395_v45 = vmul.f32 %v4864_v22, %v1379_v23 }
 0x273   : > { %v1398_v29 = vmul.f32 %v3841_v25, %v4864_v22  ;;  %v1382_v31 = vpop.f32.mrb[15].mxu1  ;;  %v881_v32 = vadd.f32 %v880_v5, %v879_v28  ;;  %v1401_v50 = vmax.f32 %v1397_v42, 0.0 }
 0x274   : > { %v1396_v34 = vmul.f32 %v4864_v22, %v1382_v31  ;;  %v1399_v51 = vmax.f32 %v1395_v45, 0.0 }
 0x275   : > { %v1402_v37 = vmax.f32 %v1398_v29, 0.0  ;;  %v883_v38 = vadd.f32 %v882_v36, %v881_v32  ;;  %v4885_v58 = vmin.f32 %v1401_v50, 1.0 }
 0x276   : > { %v1400_v40 = vmax.f32 %v1396_v34, 0.0  ;;  %v4888_v62 = vmin.f32 %v1399_v51, 1.0 }
 0x277   : > { %v1406_v43 = vmin.f32 %v1402_v37, 1.0  ;;  %v885_v44 = vadd.f32 %v884_v41, %v883_v38  ;;  %v1543_v9 = vmul.f32 0.299, %v4885_v58 }
 0x278   : > { %v1404_v47 = vmin.f32 %v1400_v40, 1.0  ;;  %v1541_v15 = vmul.f32 0.299, %v4888_v62 }
 0x279   : > { %v4878_v14 = vmul.f32 %v4872_v39, %v1406_v43  ;;  %886 = vadd.xlane.f32.xlu0 %v885_v44  ;;  %v1544_v21 = vmul.f32 0.299, %v1406_v43 }
 0x27a   : > { %v4881_v48 = vmul.f32 %v4872_v39, %v1404_v47  ;;  %v1542_v5 = vmul.f32 0.299, %v1404_v47 }
 0x27c   : > { %v3850_v52 = vpop.f32.mrb[16].mxu1 }
 0x27d   : > { %v1464_v54 = vmul.f32 %v3850_v52, %v4864_v22  ;;  %v1447_v55 = vpop.f32.mrb[17].mxu1 }
 0x27e   : > { %v1462_v56 = vmul.f32 %v1447_v55, %v4864_v22  ;;  %v3851_v57 = vpop.f32.mrb[18].mxu1 }
 0x27f   : > { %v1468_v59 = vmax.f32 %v1464_v54, 0.0  ;;  %v1465_v10 = vmul.f32 %v3851_v57, %v4864_v22  ;;  %v1450_v61 = vpop.f32.mrb[19].mxu1 }
 0x280   : > { %v1466_v24 = vmax.f32 %v1462_v56, 0.0  ;;  %v1463_v3 = vmul.f32 %v1450_v61, %v4864_v22 }
 0x281   : > { %v4891_v4 = vmin.f32 %v1468_v59, 1.0  ;;  %v1469_v6 = vmax.f32 %v1465_v10, 0.0 }
 0x282   : > { %v4893_v7 = vmin.f32 %v1466_v24, 1.0  ;;  %v1467_v2 = vmax.f32 %v1463_v3, 0.0 }
 0x283   : > { %v1547_v13 = vmul.f32 0.587, %v4891_v4  ;;  %v1473_v0 = vmin.f32 %v1469_v6, 1.0 }
 0x284   : > { %v1545_v19 = vmul.f32 0.587, %v4893_v7  ;;  %v1471_v20 = vmin.f32 %v1467_v2, 1.0 }
 0x285   : > { %v1551_v23 = vadd.f32 %v1547_v13, %v1543_v9  ;;  %v1548_v25 = vmul.f32 0.587, %v1473_v0  ;;  %v4901_v28 = vmul.f32 %v4872_v39, %v1473_v0  ;;  %v2069_v9 = vstv %s1784_s10 }
 0x286   : > { %v1549_v29 = vadd.f32 %v1545_v19, %v1541_v15  ;;  %v1546_v31 = vmul.f32 0.587, %v1471_v20  ;;  %v4904_v32 = vmul.f32 %v4872_v39, %v1471_v20 }
 0x287   : > { %v1552_v34 = vadd.f32 %v1548_v25, %v1544_v21 }
 0x288   : > { %v1550_v36 = vadd.f32 %v1546_v31, %v1542_v5  ;;  %v3860_v37 = vpop.f32.mrb[20].mxu1 }
 0x289   : > { %v1531_v38 = vmul.f32 %v3860_v37, %v4864_v22  ;;  %v1514_v40 = vpop.f32.mrb[21].mxu1 }
 0x28a   : > { %v1529_v41 = vmul.f32 %v1514_v40, %v4864_v22  ;;  %v3861_v42 = vpop.f32.mrb[22].mxu1 }
 0x28b   : > { %v1535_v43 = vmax.f32 %v1531_v38, 0.0  ;;  %v1532_v44 = vmul.f32 %v3861_v42, %v4864_v22  ;;  %v1517_v45 = vpop.f32.mrb[23].mxu1 }
 0x28c   : > { %v1533_v47 = vmax.f32 %v1529_v41, 0.0  ;;  %v1530_v50 = vmul.f32 %v1517_v45, %v4864_v22 }
 0x28d   : > { %v4913_v51 = vmin.f32 %v1535_v43, 1.0  ;;  %v1536_v52 = vmax.f32 %v1532_v44, 0.0 }
 0x28e   : > { %v4915_v54 = vmin.f32 %v1533_v47, 1.0  ;;  %v1534_v55 = vmax.f32 %v1530_v50, 0.0 }
 0x28f   : > { %v1555_v56 = vmul.f32 0.114, %v4913_v51  ;;  %v1540_v57 = vmin.f32 %v1536_v52, 1.0 }
 0x290   : > { %v1553_v59 = vmul.f32 0.114, %v4915_v54  ;;  %v1538_v10 = vmin.f32 %v1534_v55, 1.0 }
 0x291   : > { %v1559_v61 = vadd.f32 %v1555_v56, %v1551_v23  ;;  %v1556_v24 = vmul.f32 0.114, %v1540_v57  ;;  %v4921_v3 = vmul.f32 %v4872_v39, %v1540_v57 }
 0x292   : > { %v1557_v6 = vadd.f32 %v1553_v59, %v1549_v29  ;;  %v1554_v22 = vmul.f32 0.114, %v1538_v10  ;;  %v4924_v2 = vmul.f32 %v4872_v39, %v1538_v10 }
 0x293   : > { %v1560_v13 = vadd.f32 %v1556_v24, %v1552_v34  ;;  %v1564_v38 = vsel %vm878_vm2, %v1559_v61, 0.0 }
 0x294   : > { %v1558_v0 = vadd.f32 %v1554_v22, %v1550_v36  ;;  %v3892_v15 = vpop.f32.mrb[24].mxu1  ;;  %v1561_v23 = vsel %vm878_vm2, %v1557_v6, 0.0  ;;  %v4932_v36 = vstv %s4926_s18 }
 0x295   : > { %v2054_v19 = vpop.f32.mrb[25].mxu1  ;;  %v2072_v20 = vmul.f32 %v3892_v15, %v2069_v9  ;;  %v1566_v44 = vsel %vm878_vm2, %v1560_v13, 0.0 }
 0x296   : > { %v3893_v21 = vpop.f32.mrb[26].mxu1  ;;  %v1562_v25 = vsel %vm878_vm2, %v1558_v0, 0.0  ;;  %v2070_v40 = vmul.f32 %v2069_v9, %v2054_v19 }
 0x297   : > { %v2073_v5 = vmul.f32 %v3893_v21, %v2069_v9  ;;  %v2057_v29 = vpop.f32.mrb[27].mxu1  ;;  %v1563_v31 = vadd.f32 %v1562_v25, %v1561_v23  ;;  %v2076_v34 = vmax.f32 %v2072_v20, 0.0 }
 0x298   : > { %v2071_v37 = vmul.f32 %v2069_v9, %v2057_v29  ;;  %v2074_v52 = vmax.f32 %v2070_v40, 0.0 }
 0x299   : > { %v2077_v41 = vmax.f32 %v2073_v5, 0.0  ;;  %v1565_v42 = vadd.f32 %v1564_v38, %v1563_v31  ;;  %v4938_v56 = vmin.f32 %v2076_v34, 1.0 }
 0x29a   : > { %v2075_v43 = vmax.f32 %v2071_v37, 0.0  ;;  %v4943_v61 = vmin.f32 %v2074_v52, 1.0 }
 0x29b   : > { %v2081_v45 = vmin.f32 %v2077_v41, 1.0  ;;  %v1567_v47 = vadd.f32 %v1566_v44, %v1565_v42  ;;  %v2218_v0 = vmul.f32 0.299, %v4938_v56 }
 0x29c   : > { %v2079_v50 = vmin.f32 %v2075_v43, 1.0  ;;  %v2216_v34 = vmul.f32 0.299, %v4943_v61 }
 0x29d   : > { %v4936_v55 = vmul.f32 %v4932_v36, %v2081_v45  ;;  %1568 = vadd.xlane.f32.xlu0 %v1567_v47 }
 0x29e   : > { %v4941_v57 = vmul.f32 %v4932_v36, %v2079_v50 }
 0x29f   : > { %5683 = vst [vmem:[#allocation19_spill] sm:$0xff] %v4936_v55 }
 0x2a0   : > { %v3902_v59 = vpop.f32.mrb[28].mxu1  ;;  %v3912_v10 = vpop.f32.mrb[48].mxu0 }
 0x2a1   : > { %v2139_v24 = vmul.f32 %v3902_v59, %v2069_v9  ;;  %v2122_v6 = vpop.f32.mrb[29].mxu1  ;;  %v2206_v22 = vmul.f32 %v3912_v10, %v2069_v9  ;;  %v2189_v13 = vpop.f32.mrb[49].mxu0 }
 0x2a2   : > { %v2137_v15 = vmul.f32 %v2122_v6, %v2069_v9  ;;  %v3903_v19 = vpop.f32.mrb[30].mxu1  ;;  %v2204_v20 = vmul.f32 %v2189_v13, %v2069_v9  ;;  %v3913_v21 = vpop.f32.mrb[50].mxu0 }
 0x2a3   : > { %v2143_v23 = vmax.f32 %v2139_v24, 0.0  ;;  %v2140_v25 = vmul.f32 %v3903_v19, %v2069_v9  ;;  %v2210_v5 = vmax.f32 %v2206_v22, 0.0  ;;  %v2125_v29 = vpop.f32.mrb[31].mxu1  ;;  %v2207_v31 = vmul.f32 %v3913_v21, %v2069_v9  ;;  %v2192_v37 = vpop.f32.mrb[51].mxu0 }
 0x2a4   : > { %v2141_v38 = vmax.f32 %v2137_v15, 0.0  ;;  %v2138_v40 = vmul.f32 %v2125_v29, %v2069_v9  ;;  %v2208_v41 = vmax.f32 %v2204_v20, 0.0  ;;  %v2205_v42 = vmul.f32 %v2192_v37, %v2069_v9 }
 0x2a5   : > { %v4947_v43 = vmin.f32 %v2143_v23, 1.0  ;;  %v2144_v44 = vmax.f32 %v2140_v25, 0.0  ;;  %v4949_v47 = vmin.f32 %v2210_v5, 1.0  ;;  %v2211_v24 = vmax.f32 %v2207_v31, 0.0 }
 0x2a6   : > { %v4951_v52 = vmin.f32 %v2141_v38, 1.0  ;;  %v2142_v59 = vmax.f32 %v2138_v40, 0.0  ;;  %v4953_v10 = vmin.f32 %v2208_v41, 1.0  ;;  %v2209_v15 = vmax.f32 %v2205_v42, 0.0 }
 0x2a7   : > { %v2222_v6 = vmul.f32 0.587, %v4947_v43  ;;  %v2148_v22 = vmin.f32 %v2144_v44, 1.0  ;;  %v2230_v13 = vmul.f32 0.114, %v4949_v47  ;;  %v2215_v40 = vmin.f32 %v2211_v24, 1.0 }
 0x2a8   : > { %v2219_v9 = vmul.f32 0.299, %v2081_v45  ;;  %v2220_v19 = vmul.f32 0.587, %v4951_v52  ;;  %v2146_v20 = vmin.f32 %v2142_v59, 1.0  ;;  %v2213_v41 = vmin.f32 %v2209_v15, 1.0 }
 0x2a9   : > { %v2226_v21 = vadd.f32 %v2222_v6, %v2218_v0  ;;  %v2223_v23 = vmul.f32 0.587, %v2148_v22  ;;  %v4959_v25 = vmul.f32 %v4932_v36, %v2148_v22  ;;  %v2228_v5 = vmul.f32 0.114, %v4953_v10 }
 0x2aa   : > { %v2217_v29 = vmul.f32 0.299, %v2079_v50  ;;  %v2224_v37 = vadd.f32 %v2220_v19, %v2216_v34  ;;  %v2221_v31 = vmul.f32 0.587, %v2146_v20  ;;  %v4963_v38 = vmul.f32 %v4932_v36, %v2146_v20 }
 0x2ab   : > { %5684 = vst [vmem:[#allocation20_spill] sm:$0xff] %v4959_v25  ;;  %v2227_v42 = vadd.f32 %v2223_v23, %v2219_v9  ;;  %v2234_v45 = vadd.f32 %v2230_v13, %v2226_v21  ;;  %v2231_v0 = vmul.f32 0.114, %v2215_v40  ;;  %v4966_v6 = vmul.f32 %v4932_v36, %v2215_v40 }
 0x2ac   : > { %v2225_v44 = vadd.f32 %v2221_v31, %v2217_v29  ;;  %v2232_v11 = vadd.f32 %v2228_v5, %v2224_v37  ;;  %v3922_v59 = vpop.f32.mrb[32].mxu1  ;;  %v2229_v22 = vmul.f32 0.114, %v2213_v41  ;;  %v4969_v25 = vmul.f32 %v4932_v36, %v2213_v41 }
 0x2ad   : > { %v2611_v50 = vpop.f32.mrb[33].mxu1  ;;  %v2235_v24 = vadd.f32 %v2231_v0, %v2227_v42  ;;  %v2239_v23 = vsel %vm878_vm2, %v2234_v45, 0.0 }
 0x2ae   : > { %v3923_v34 = vpop.f32.mrb[34].mxu1  ;;  %v2233_v19 = vadd.f32 %v2229_v22, %v2225_v44  ;;  %v2236_v13 = vsel %vm878_vm2, %v2232_v11, 0.0 }
 0x2af   : > { %v2674_v20 = vpack.c.bf16 %v3923_v34, %v3922_v59  ;;  %v2614_v55 = vpop.f32.mrb[35].mxu1  ;;  %v2241_v31 = vsel %vm878_vm2, %v2235_v24, 0.0  ;;  %v4109_v59 = vld [vmem:[%s4704_s14 + $0x38] sm:$0xff]   ;;  %s416_s14 = sadd.s32 2, %s4808_s29 }
 0x2b0   : > { %v2673_v15 = vpack.c.bf16 %v2614_v55, %v2611_v50  ;;  %v2237_v9 = vsel %vm878_vm2, %v2233_v19, 0.0  ;;  %s4988_s15 = sld [smem:[#allocation6 + %s416_s14]]  ;;  %s1112_s14 = sadd.s32 2, %s4846_s3 }
 0x2b1   : > { %v2238_v21 = vadd.f32 %v2237_v9, %v2236_v13  ;;  %s1113_s3 = sld [smem:[#allocation6 + %s1112_s14]] }
 0x2b2   : > { %3936 = vmatprep.subr.bf16.mxu0 %v2673_v15 }
 0x2b3   : > { %3937 = vmatpush3.bf16.msra.mxu0 %v2673_v15  ;;  %v2240_v29 = vadd.f32 %v2239_v23, %v2238_v21 }
 0x2b4   : > { %v3926_v5 = vpop.f32.mrb[36].mxu1  ;;  %3938 = vmatprep.subr.bf16.mxu0 %v2674_v20 }
 0x2b5   : > { %v2627_v37 = vpop.f32.mrb[37].mxu1  ;;  %v2242_v42 = vadd.f32 %v2241_v31, %v2240_v29 }
 0x2b6   : > { %v2675_v40 = vpack.c.bf16 %v2627_v37, %v2627_v37  ;;  %v3927_v41 = vpop.f32.mrb[38].mxu1  ;;  %s975_s29 = ssub.f32 1.0, %s4988_s15 }
 0x2b7   : > { %v2630_v55 = vpop.f32.mrb[39].mxu1  ;;  %3939 = vmatpush3.bf16.msra.mxu0 %v2674_v20  ;;  %2243 = vadd.xlane.f32.xlu1 %v2242_v42 }
 0x2b8   : > { %v2757_v11 = vpack.c.bf16 %v3926_v5, %v2630_v55  ;;  %3979 = vmatprep.subr.msk.bf16.mxu0 %vm540_vm1, %v2675_v40  ;;  %v2693_v44 = vsel %vm540_vm1, %v2675_v40, 0 }
 0x2bb   : > { %3941 = vmatpush3.bf16.msra.mxu0 %v2693_v44 }
 0x2bc   : > { %v3930_v45 = vpop.f32.mrb[40].mxu1  ;;  %3946 = vmatprep.subr.bf16.mxu0 %v2757_v11 }
 0x2bd   : > { %v2643_v0 = vpop.f32.mrb[41].mxu1 }
 0x2be   : > { %v2758_v22 = vpack.c.bf16 %v2643_v0, %v3927_v41  ;;  %v3931_v50 = vpop.f32.mrb[42].mxu1  ;;  %3943 = vmatmul.mubr.msk.bf16.vlgmr.msra.gmra.mrb[52].mxu0 %vm515_vm0, %v4109_v59 }
 0x2bf   : > { %v2824_v34 = vpack.c.bf16 %v3931_v50, %v3930_v45  ;;  %v2646_v19 = vpop.f32.mrb[43].mxu1  ;;  %3947 = vmatpush3.bf16.msra.mxu0 %v2757_v11  ;;  %3952 = vmatprep.mubr.msk.bf16.mxu0 %vm515_vm0, %v4805_v63 }
 0x2c0   : > { %3948 = vmatprep.subr.bf16.mxu0 %v2758_v22  ;;  %v2759_v20 = vpack.c.bf16 %v2646_v19, %v2646_v19 }
 0x2c1   : > { %3956 = vmatprep.subr.bf16.mxu1 %v2824_v34 }
 0x2c2   : > { %3957 = vmatpush3.bf16.msra.mxu1 %v2824_v34  ;;  %v2761_v13 = vsel %vm540_vm1, %v2759_v20, 0 }
 0x2c3   : > { %3949 = vmatpush3.bf16.msra.mxu0 %v2758_v22 }
 0x2c4   : > { %v3934_v24 = vpop.f32.mrb[44].mxu1  ;;  %3980 = vmatprep.subr.msk.bf16.mxu0 %vm540_vm1, %v2759_v20  ;;  %v901_v20 = vmul.f32 %v4819_v8, %v4827_v27  ;;  %v5004_v27 = vstv %s4988_s15  ;;  %s4287_s15 = smov 32  }
 0x2c5   : > { %v2659_v15 = vpop.f32.mrb[45].mxu1  ;;  %v2826_v5 = vpack.c.bf16 %v3934_v24, %v3934_v24  ;;  %v899_v24 = vmul.f32 %v4819_v8, %v4829_v30 }
 0x2c6   : > { %v3935_v9 = vpop.f32.mrb[46].mxu1 }
 0x2c7   : > { %v2662_v21 = vpop.f32.mrb[47].mxu1  ;;  %3951 = vmatpush3.bf16.msra.mxu0 %v2761_v13  ;;  %v2828_v63 = vsel %vm540_vm1, %v2826_v5, 0  ;;  %v934_v13 = vmul.f32 %v4819_v8, %v4851_v1 }
 0x2c8   : > { %v2825_v23 = vpack.c.bf16 %v2662_v21, %v2659_v15  ;;  %v918_v15 = vmul.f32 %v4819_v8, %v4833_v35  ;;  %v920_v21 = vmul.f32 %v4819_v8, %v4831_v33 }
 0x2ca   : > { %3958 = vmatprep.subr.bf16.mxu1 %v2825_v23  ;;  %3953 = vmatmul.mubr.msk.bf16.vlgmr.msra.gmra.mrb[56].mxu0 %vm515_vm0, %v4109_v59 }
 0x2cb   : > { %3959 = vmatpush3.bf16.msra.mxu1 %v2825_v23  ;;  %v936_v23 = vmul.f32 %v4819_v8, %v4849_v53 }
 0x2cc   : > { %3981 = vmatprep.subr.msk.bf16.mxu1 %vm540_vm1, %v2826_v5 }
 0x2cf   : > { %3961 = vmatpush3.bf16.msra.mxu1 %v2828_v63 }
 0x2d2   : > { %3963 = vmatmul.mubr.msk.bf16.vlgmr.msra.gmra.mrb[48].mxu1 %vm515_vm0, %v4109_v59 }
 0x306   : > { %v887_v29 = vpop.xlane.xlu0 %886 }
 0x307   : > { %v888_v37 = vrot.slane %v887_v29, 4 }
 0x309   : > { %v889_v31 = vadd.f32 %v888_v37, %v887_v29 }
 0x30b   : > { %v890_v40 = vrot.slane %v889_v31, 2 }
 0x30d   : > { %v891_v41 = vadd.f32 %v890_v40, %v889_v31 }
 0x30f   : > { %v892_v42 = vrot.slane %v891_v41, 1 }
 0x311   : > { %v893_v55 = vadd.f32 %v892_v42, %v891_v41 }
 0x313   : > { %3987 = vpush %v893_v55 }
 0x32a   : > { %v1569_v11 = vpop.xlane.xlu0 %1568 }
 0x32b   : > { %v1570_v44 = vrot.slane %v1569_v11, 4 }
 0x32d   : > { %v1571_v45 = vadd.f32 %v1570_v44, %v1569_v11 }
 0x32f   : > { %v1572_v0 = vrot.slane %v1571_v45, 2 }
 0x331   : > { %v1573_v22 = vadd.f32 %v1572_v0, %v1571_v45 }
 0x333   : > { %v1574_v50 = vrot.slane %v1573_v22, 1 }
 0x335   : > { %v1575_v34 = vadd.f32 %v1574_v50, %v1573_v22 }
 0x337   : > { %3989 = vpush %v1575_v34 }
 0x344   : > { %s3988_s21 = spop %3987  ;;  %v2244_v59 = vpop.xlane.xlu1 %2243 }
 0x345   : > { %s897_s13 = smul.f32 0.0009765625, %s3988_s21  ;;  %v2245_v19 = vrot.slane %v2244_v59, 4  ;;  %s1585_s21 = ssub.f32 1.0, %s4862_s11 }
 0x346   : > { %s2457_s11 = sadd.s32 3, %s4517_s30 }
 0x347   : > { %s904_s10 = smul.f32 %s903_s20, %s897_s13  ;;  %v2246_v9 = vadd.f32 %v2245_v19, %v2244_v59  ;;  %s4288_s20 = smov 64  }
 0x348   : > { %s5116_s30 = smul.u32 3, %s2457_s11 }
 0x349   : > { %v905_v5 = vstv %s904_s10  ;;  %v2247_v63 = vrot.slane %v2246_v9, 2 }
 0x34a   : > { %v906_v29 = vadd.f32 %v905_v5, %v899_v24  ;;  %v922_v30 = vadd.f32 %v918_v15, %v905_v5  ;;  %v938_v37 = vadd.f32 %v934_v13, %v905_v5  ;;  %v908_v31 = vadd.f32 %v905_v5, %v901_v20 }
 0x34b   : > { %v924_v35 = vadd.f32 %v920_v21, %v905_v5  ;;  %v940_v40 = vadd.f32 %v936_v23, %v905_v5  ;;  %v907_v1 = vadd.f32 %v905_v5, %v4825_v17  ;;  %v2248_v41 = vadd.f32 %v2247_v63, %v2246_v9 }
 0x34c   : > { %v910_v42 = vmax.f32 %v906_v29, 0.0  ;;  %v926_v55 = vmax.f32 %v922_v30, 0.0  ;;  %v942_v33 = vmax.f32 %v938_v37, 0.0  ;;  %v912_v11 = vmax.f32 %v908_v31, 0.0 }
 0x34d   : > { %v928_v44 = vmax.f32 %v924_v35, 0.0  ;;  %v944_v8 = vmax.f32 %v940_v40, 0.0  ;;  %v911_v53 = vmax.f32 %v907_v1, 0.0  ;;  %v2249_v45 = vrot.slane %v2248_v41, 1 }
 0x34e   : > { %v914_v0 = vmin.f32 %v910_v42, 1.0  ;;  %v930_v22 = vmin.f32 %v926_v55, 1.0  ;;  %v946_v50 = vmin.f32 %v942_v33, 1.0  ;;  %v5008_v34 = vmin.f32 %v912_v11, 1.0 }
 0x34f   : > { %v932_v59 = vmin.f32 %v928_v44, 1.0  ;;  %v948_v19 = vmin.f32 %v944_v8, 1.0  ;;  %v5010_v20 = vmin.f32 %v911_v53, 1.0  ;;  %v2250_v17 = vadd.f32 %v2249_v45, %v2248_v41 }
 0x350   : > { %v950_v24 = vmul.f32 0.299, %v914_v0  ;;  %v954_v15 = vmul.f32 0.587, %v930_v22  ;;  %v5012_v13 = vstv %s975_s29  ;;  %v962_v9 = vmul.f32 0.114, %v946_v50 }
 0x351   : > { %v993_v21 = vmul.f32 %v5004_v27, %v930_v22  ;;  %v952_v23 = vmul.f32 0.299, %v5008_v34  ;;  %v956_v63 = vmul.f32 0.587, %v932_v59  ;;  %3991 = vpush %v2250_v17  ;;  %v1009_v30 = vmul.f32 %v5004_v27, %v946_v50  ;;  %s1657_s29 = ssub.f32 1.0, %s1113_s3 }
 0x352   : > { %v958_v29 = vadd.f32 %v954_v15, %v950_v24  ;;  %v964_v37 = vmul.f32 0.114, %v948_v19  ;;  %v923_v31 = vadd.f32 %v4844_v49, %v905_v5  ;;  %v939_v40 = vadd.f32 %v4860_v18, %v905_v5 }
 0x353   : > { %v960_v35 = vadd.f32 %v956_v63, %v952_v23  ;;  %v951_v1 = vmul.f32 0.299, %v5010_v20  ;;  %v995_v41 = vmul.f32 %v5004_v27, %v932_v59  ;;  %v909_v33 = vadd.f32 %v905_v5, %v4822_v16 }
 0x354   : > { %v966_v42 = vadd.f32 %v962_v9, %v958_v29  ;;  %v927_v55 = vmax.f32 %v923_v31, 0.0  ;;  %v925_v11 = vadd.f32 %v4840_v46, %v905_v5  ;;  %v943_v8 = vmax.f32 %v939_v40, 0.0 }
 0x355   : > { %v968_v44 = vadd.f32 %v964_v37, %v960_v35  ;;  %v941_v53 = vadd.f32 %v4857_v12, %v905_v5  ;;  %v971_v49 = vmul.f32 %v5004_v27, %v914_v0  ;;  %v913_v22 = vmax.f32 %v909_v33, 0.0 }
 0x356   : > { %v977_v18 = vmul.f32 %v5012_v13, %v966_v42  ;;  %v931_v45 = vmin.f32 %v927_v55, 1.0  ;;  %v929_v50 = vmax.f32 %v925_v11, 0.0  ;;  %v1011_v17 = vmul.f32 %v5004_v27, %v948_v19 }
 0x357   : > { %v979_v59 = vmul.f32 %v5012_v13, %v968_v44  ;;  %v947_v16 = vmin.f32 %v943_v8, 1.0  ;;  %v945_v24 = vmax.f32 %v941_v53, 0.0  ;;  %v917_v63 = vmin.f32 %v913_v22, 1.0 }
 0x358   : > { %v997_v46 = vadd.f32 %v993_v21, %v977_v18  ;;  %v1013_v15 = vadd.f32 %v1009_v30, %v977_v18  ;;  %v955_v9 = vmul.f32 0.587, %v931_v45  ;;  %v994_v23 = vmul.f32 %v5004_v27, %v931_v45 }
 0x359   : > { %v1015_v12 = vadd.f32 %v1011_v17, %v979_v59  ;;  %v963_v5 = vmul.f32 0.114, %v947_v16  ;;  %v5031_v0 = vadd.f32 %v995_v41, %v979_v59  ;;  %v933_v35 = vmin.f32 %v929_v50, 1.0 }
 0x35a   : > { %v1001_v29 = vmax.f32 %v997_v46, 0.0  ;;  %v1017_v37 = vmax.f32 %v1013_v15, 0.0  ;;  %v959_v31 = vadd.f32 %v955_v9, %v951_v1  ;;  %v949_v19 = vmin.f32 %v945_v24, 1.0 }
 0x35b   : > { %v1019_v40 = vmax.f32 %v1015_v12, 0.0  ;;  %v953_v42 = vmul.f32 0.299, %v917_v63  ;;  %v957_v33 = vmul.f32 0.587, %v933_v35  ;;  %v5034_v11 = vstv %s5023_s9 }
 0x35c   : > { %v1005_v21 = vmin.f32 %v1001_v29, 1.0  ;;  %v1021_v30 = vmin.f32 %v1017_v37, 1.0  ;;  %v967_v55 = vadd.f32 %v963_v5, %v959_v31  ;;  %v996_v44 = vmul.f32 %v5004_v27, %v933_v35 }
 0x35d   : > { %v961_v53 = vadd.f32 %v957_v33, %v953_v42  ;;  %v965_v45 = vmul.f32 0.114, %v949_v19  ;;  %v1023_v1 = vmin.f32 %v1019_v40, 1.0  ;;  %v5039_v22 = vadd.f32 %v977_v18, %v971_v49 }
 0x35e   : > { %v1035_v41 = vsub.f32 %v1005_v21, %v4551_v26  ;;  %v978_v8 = vmul.f32 %v5012_v13, %v967_v55  ;;  %v1010_v50 = vmul.f32 %v5004_v27, %v947_v16  ;;  %v1045_v24 = vsub.f32 %v1021_v30, %v4579_v60 }
 0x35f   : > { %v969_v15 = vadd.f32 %v965_v45, %v961_v53  ;;  %v5047_v9 = vstv %s3401_s17  ;;  %v1012_v18 = vmul.f32 %v5004_v27, %v949_v19  ;;  %v972_v16 = vmul.f32 %v5004_v27, %v5010_v20  ;;  %s2260_s17 = ssub.f32 1.0, %s4926_s18  ;;  %s1787_s18 = sadd.s32 2, %s4906_s12 }
 0x360   : > { %v1041_v17 = vmul.f32 %v5034_v11, %v1035_v41  ;;  %v5045_v46 = vadd.f32 %v994_v23, %v978_v8  ;;  %v5049_v12 = vadd.f32 %v1010_v50, %v978_v8  ;;  %v1047_v5 = vsub.f32 %v1023_v1, %v4579_v60 }
 0x361   : > { %v980_v49 = vmul.f32 %v5012_v13, %v969_v15  ;;  %v973_v23 = vmul.f32 %v5004_v27, %v5008_v34  ;;  %v974_v29 = vmul.f32 %v5004_v27, %v917_v63  ;;  %v1051_v37 = vmul.f32 %v5047_v9, %v1045_v24 }
 0x362   : > { %1059 = vrot.lane.b32.xlu0 %v1041_v17, %s4287_s15  ;;  %v5065_v13 = vadd.f32 %v978_v8, %v972_v16  ;;  %v1053_v34 = vmul.f32 %v5047_v9, %v1047_v5  ;;  %v1583_v27 = vmul.f32 %v4872_v39, %v4885_v58  ;;  %v1581_v20 = vmul.f32 %v4872_v39, %v4888_v62 }
 0x363   : > { %v5061_v31 = vadd.f32 %v996_v44, %v980_v49  ;;  %v5063_v35 = vadd.f32 %v1012_v18, %v980_v49  ;;  %v5067_v40 = vadd.f32 %v979_v59, %v973_v23  ;;  %v5069_v19 = vadd.f32 %v980_v49, %v974_v29 }
 0x364   : > { %v1602_v59 = vmul.f32 %v4872_v39, %v4891_v4  ;;  %v1600_v63 = vmul.f32 %v4872_v39, %v4893_v7  ;;  %v1616_v42 = vmul.f32 %v4872_v39, %v4915_v54  ;;  %v1618_v21 = vmul.f32 %v4872_v39, %v4913_v51 }
 0x365   : > { %v5087_v55 = vstv %s1113_s3  ;;  %v5089_v58 = vstv %s1657_s29  ;;  %s1029_s29 = sld [smem:[#allocation10]] }
 0x366   : > { %1075 = vrot.lane.b32.xlu0 %v1051_v37, %s4288_s20 }
 0x368   : > { %s3990_s13 = spop %3989 }
 0x369   : > { %s1579_s10 = smul.f32 0.0009765625, %s3990_s13  ;;  %s5148_s13 = sld [smem:[#allocation6 + %s1787_s18]] }
 0x36a   : > { %1079 = vrot.lane.b32.xlu0 %v1053_v34, %s4288_s20 }
 0x36b   : > { %s1586_s9 = smul.f32 %s1585_s21, %s1579_s10  ;;  %s5146_s21 = sld [smem:[#allocation6 + %s5116_s30]] }
 0x36d   : > { %v1587_v30 = vstv %s1586_s9  ;;  %s2460_s9 = sadd.s32 1, %s5116_s30 }
 0x36e   : > { %v1588_v33 = vadd.f32 %v1587_v30, %v1581_v20  ;;  %v1604_v44 = vadd.f32 %v1600_v63, %v1587_v30  ;;  %v1620_v62 = vadd.f32 %v1616_v42, %v1587_v30  ;;  %v1590_v41 = vadd.f32 %v1587_v30, %v1583_v27  ;;  %s2461_s11 = sld [smem:[#allocation6 + %s2460_s9]] }
 0x36f   : > { %v1606_v8 = vadd.f32 %v1602_v59, %v1587_v30  ;;  %v1622_v4 = vadd.f32 %v1618_v21, %v1587_v30  ;;  %v1589_v53 = vadd.f32 %v1587_v30, %v4881_v48  ;;  %v1605_v7 = vadd.f32 %v4904_v32, %v1587_v30  ;;  %s2332_s10 = ssub.f32 1.0, %s5148_s13 }
 0x370   : > { %v1592_v45 = vmax.f32 %v1588_v33, 0.0  ;;  %v1608_v54 = vmax.f32 %v1604_v44, 0.0  ;;  %v1624_v1 = vmax.f32 %v1620_v62, 0.0  ;;  %v1594_v50 = vmax.f32 %v1590_v41, 0.0 }
 0x371   : > { %v1610_v39 = vmax.f32 %v1606_v8, 0.0  ;;  %v1626_v51 = vmax.f32 %v1622_v4, 0.0  ;;  %v1593_v17 = vmax.f32 %v1589_v53, 0.0  ;;  %v1609_v24 = vmax.f32 %v1605_v7, 0.0 }
 0x372   : > { %v1596_v15 = vmin.f32 %v1592_v45, 1.0  ;;  %v1612_v49 = vmin.f32 %v1608_v54, 1.0  ;;  %v1628_v18 = vmin.f32 %v1624_v1, 1.0  ;;  %v1598_v16 = vmin.f32 %v1594_v50, 1.0 }
 0x373   : > { %v1614_v5 = vmin.f32 %v1610_v39, 1.0  ;;  %v1630_v23 = vmin.f32 %v1626_v51, 1.0  ;;  %v1597_v29 = vmin.f32 %v1593_v17, 1.0  ;;  %v1613_v37 = vmin.f32 %v1609_v24, 1.0 }
 0x374   : > { %v1632_v34 = vmul.f32 0.299, %v1596_v15  ;;  %v1636_v48 = vmul.f32 0.587, %v1612_v49  ;;  %v1644_v27 = vmul.f32 0.114, %v1628_v18  ;;  %v1675_v32 = vmul.f32 %v5087_v55, %v1612_v49 }
 0x375   : > { %v1634_v20 = vmul.f32 0.299, %v1598_v16  ;;  %v1638_v59 = vmul.f32 0.587, %v1614_v5  ;;  %v1646_v63 = vmul.f32 0.114, %v1630_v23  ;;  %v1677_v42 = vmul.f32 %v5087_v55, %v1614_v5 }
 0x376   : > { %v1640_v21 = vadd.f32 %v1636_v48, %v1632_v34  ;;  %v1691_v33 = vmul.f32 %v5087_v55, %v1628_v18  ;;  %v1693_v44 = vmul.f32 %v5087_v55, %v1630_v23  ;;  %v1621_v62 = vadd.f32 %v4924_v2, %v1587_v30 }
 0x377   : > { %v1642_v41 = vadd.f32 %v1638_v59, %v1634_v20  ;;  %v1633_v8 = vmul.f32 0.299, %v1597_v29  ;;  %v1637_v4 = vmul.f32 0.587, %v1613_v37  ;;  %v1676_v53 = vmul.f32 %v5087_v55, %v1613_v37 }
 0x378   : > { %v1648_v7 = vadd.f32 %v1644_v27, %v1640_v21  ;;  %v1625_v45 = vmax.f32 %v1621_v62, 0.0  ;;  %v1591_v54 = vadd.f32 %v1587_v30, %v4878_v14  ;;  %v1607_v1 = vadd.f32 %v4901_v28, %v1587_v30 }
 0x379   : > { %v1650_v50 = vadd.f32 %v1646_v63, %v1642_v41  ;;  %v1641_v39 = vadd.f32 %v1637_v4, %v1633_v8  ;;  %v1623_v51 = vadd.f32 %v4921_v3, %v1587_v30  ;;  %v1653_v17 = vmul.f32 %v5087_v55, %v1596_v15 }
 0x37a   : > { %v1659_v24 = vmul.f32 %v5089_v58, %v1648_v7  ;;  %v1629_v2 = vmin.f32 %v1625_v45, 1.0  ;;  %v1595_v49 = vmax.f32 %v1591_v54, 0.0  ;;  %v1611_v18 = vmax.f32 %v1607_v1, 0.0 }
 0x37b   : > { %v1661_v5 = vmul.f32 %v5089_v58, %v1650_v50  ;;  %v1627_v23 = vmax.f32 %v1623_v51, 0.0  ;;  %v1655_v37 = vmul.f32 %v5087_v55, %v1598_v16  ;;  %v1654_v14 = vmul.f32 %v5087_v55, %v1597_v29 }
 0x37c   : > { %v1679_v28 = vadd.f32 %v1675_v32, %v1659_v24  ;;  %v1695_v34 = vadd.f32 %v1691_v33, %v1659_v24  ;;  %v1645_v48 = vmul.f32 0.114, %v1629_v2  ;;  %v1599_v27 = vmin.f32 %v1595_v49, 1.0 }
 0x37d   : > { %v1681_v3 = vadd.f32 %v1677_v42, %v1661_v5  ;;  %v1697_v30 = vadd.f32 %v1693_v44, %v1661_v5  ;;  %v1615_v15 = vmin.f32 %v1611_v18, 1.0  ;;  %v1631_v20 = vmin.f32 %v1627_v23, 1.0 }
 0x37e   : > { %v1683_v59 = vmax.f32 %v1679_v28, 0.0  ;;  %v1649_v63 = vadd.f32 %v1645_v48, %v1641_v39  ;;  %v1635_v21 = vmul.f32 0.299, %v1599_v27  ;;  %v1699_v4 = vmax.f32 %v1695_v34, 0.0 }
 0x37f   : > { %v1685_v62 = vmax.f32 %v1681_v3, 0.0  ;;  %v1639_v41 = vmul.f32 0.587, %v1615_v15  ;;  %v1678_v29 = vmul.f32 %v5087_v55, %v1615_v15  ;;  %v1647_v42 = vmul.f32 0.114, %v1631_v20 }
 0x380   : > { %v1687_v8 = vmin.f32 %v1683_v59, 1.0  ;;  %v1660_v16 = vmul.f32 %v5089_v58, %v1649_v63  ;;  %v1692_v44 = vmul.f32 %v5087_v55, %v1629_v2  ;;  %v1694_v54 = vmul.f32 %v5087_v55, %v1631_v20 }
 0x381   : > { %v1689_v32 = vmin.f32 %v1685_v62, 1.0  ;;  %v1643_v33 = vadd.f32 %v1639_v41, %v1635_v21  ;;  %v1701_v1 = vmax.f32 %v1697_v30, 0.0  ;;  %v1703_v49 = vmin.f32 %v1699_v4, 1.0 }
 0x382   : > { %v1715_v7 = vsub.f32 %v1687_v8, %v4551_v26  ;;  %v5113_v45 = vadd.f32 %v1676_v53, %v1660_v16  ;;  %s3992_s14 = spop %3991  ;;  %v5118_v39 = vadd.f32 %v1692_v44, %v1660_v16  ;;  %v5123_v18 = vadd.f32 %v1659_v24, %v1653_v17 }
 0x383   : > { %v1651_v50 = vadd.f32 %v1647_v42, %v1643_v33  ;;  %s2254_s3 = smul.f32 0.0009765625, %s3992_s14  ;;  %v1717_v2 = vsub.f32 %v1689_v32, %v4551_v26  ;;  %v2258_v53 = vmul.f32 %v4932_v36, %v4938_v56  ;;  %v2256_v23 = vmul.f32 %v4932_v36, %v4943_v61 }
 0x384   : > { %v1719_v51 = vmul.f32 %v1715_v7, %v5034_v11  ;;  %5685 = vst [vmem:[#allocation21_spill] sm:$0xff] %v5123_v18  ;;  %v2291_v28 = vmul.f32 %v4932_v36, %v4953_v10  ;;  %v2277_v48 = vmul.f32 %v4932_v36, %v4947_v43  ;;  %v2293_v3 = vmul.f32 %v4932_v36, %v4949_v47 }
 0x385   : > { %v5132_v34 = vmul.f32 %v5089_v58, %v1651_v50  ;;  %s2261_s12 = smul.f32 %s2260_s17, %s2254_s3  ;;  %v5139_v17 = vadd.f32 %v1661_v5, %v1655_v37  ;;  %v5141_v56 = vadd.f32 %v1660_v16, %v1654_v14  ;;  %v2275_v61 = vmul.f32 %v4932_v36, %v4951_v52  ;;  %s2462_s17 = sadd.s32 2, %s5116_s30 }
 0x386   : > { %1735 = vrot.lane.b32.xlu0 %v1719_v51, %s4287_s15  ;;  %v5157_v47 = vmul.f32 %v5087_v55, %v1599_v27  ;;  %v1721_v24 = vmul.f32 %v1717_v2, %v5034_v11  ;;  %v1723_v5 = vsub.f32 %v1703_v49, %v4579_v60  ;;  %v1705_v36 = vmin.f32 %v1701_v1, 1.0  ;;  %s5405_s14 = sld [smem:[#allocation6 + %s2462_s17]]  ;;  %s2935_s3 = ssub.f32 1.0, %s2461_s11 }
 0x387   : > { %5686 = vst [vmem:[#allocation22_spill] sm:$0xff] %v5139_v17  ;;  %5687 = vst [vmem:[#allocation23_spill] sm:$0xff] %v5141_v56  ;;  %v5151_v10 = vadd.f32 %v1678_v29, %v5132_v34  ;;  %v5154_v43 = vadd.f32 %v1694_v54, %v5132_v34  ;;  %v5159_v58 = vstv %s2261_s12  ;;  %v5179_v44 = vstv %s5146_s21 }
 0x388   : > { %v2263_v52 = vadd.f32 %v5159_v58, %v2256_v23  ;;  %v2279_v37 = vadd.f32 %v2275_v61, %v5159_v58  ;;  %v2295_v14 = vadd.f32 %v2291_v28, %v5159_v58  ;;  %v2265_v30 = vadd.f32 %v5159_v58, %v2258_v53 }
 0x389   : > { %v2281_v55 = vadd.f32 %v2277_v48, %v5159_v58  ;;  %v2297_v27 = vadd.f32 %v2293_v3, %v5159_v58  ;;  %v1727_v21 = vmul.f32 %v1723_v5, %v5047_v9  ;;  %v1725_v62 = vsub.f32 %v1705_v36, %v4579_v60 }
 0x38a   : > { %1739 = vrot.lane.b32.xlu0 %v1721_v24, %s4287_s15  ;;  %v2267_v15 = vmax.f32 %v2263_v52, 0.0  ;;  %v2283_v20 = vmax.f32 %v2279_v37, 0.0  ;;  %v2299_v59 = vmax.f32 %v2295_v14, 0.0  ;;  %v2269_v63 = vmax.f32 %v2265_v30, 0.0 }
 0x38b   : > { %v2285_v41 = vmax.f32 %v2281_v55, 0.0  ;;  %v2301_v8 = vmax.f32 %v2297_v27, 0.0  ;;  %v1729_v1 = vmul.f32 %v1725_v62, %v5047_v9  ;;  %v5185_v23 = vstv %s5148_s13  ;;  %s4289_s13 = smov 96  }
 0x38c   : > { %v5172_v4 = vmin.f32 %v2267_v15, 1.0  ;;  %v2287_v16 = vmin.f32 %v2283_v20, 1.0  ;;  %v2303_v29 = vmin.f32 %v2299_v59, 1.0  ;;  %v5175_v32 = vmin.f32 %v2269_v63, 1.0  ;;  %s3007_s30 = ssub.f32 1.0, %s5405_s14 }
 0x38d   : > { %v2289_v33 = vmin.f32 %v2285_v41, 1.0  ;;  %v2305_v42 = vmin.f32 %v2301_v8, 1.0  ;;  %v5187_v28 = vstv %s2332_s10  ;;  %v2264_v5 = vadd.f32 %v5159_v58, %v4941_v57 }
 0x38e   : > { %1751 = vrot.lane.b32.xlu0 %v1727_v21, %s4288_s20  ;;  %v2307_v7 = vmul.f32 0.299, %v5172_v4  ;;  %v2311_v54 = vmul.f32 0.587, %v2287_v16  ;;  %v2309_v50 = vmul.f32 0.299, %v5175_v32  ;;  %v2280_v14 = vadd.f32 %v4963_v38, %v5159_v58 }
 0x38f   : > { %v2313_v51 = vmul.f32 0.587, %v2289_v33  ;;  %v2319_v53 = vmul.f32 0.114, %v2303_v29  ;;  %v2321_v24 = vmul.f32 0.114, %v2305_v42  ;;  %v2296_v30 = vadd.f32 %v4969_v25, %v5159_v58 }
 0x390   : > { %v2315_v49 = vadd.f32 %v2311_v54, %v2307_v7  ;;  %v2350_v57 = vmul.f32 %v5185_v23, %v2287_v16  ;;  %v2366_v63 = vmul.f32 %v5185_v23, %v2303_v29  ;;  %v2352_v25 = vmul.f32 %v5185_v23, %v2289_v33 }
 0x391   : > { %v3944_v2 = vpop.f32.mrb[52].mxu0  ;;  %v2317_v61 = vadd.f32 %v2313_v51, %v2309_v50  ;;  %v2268_v16 = vmax.f32 %v2264_v5, 0.0  ;;  %v2368_v29 = vmul.f32 %v5185_v23, %v2305_v42  ;;  %v2284_v42 = vmax.f32 %v2280_v14, 0.0 }
 0x392   : > { %1755 = vrot.lane.b32.xlu0 %v1729_v1, %s4288_s20  ;;  %v2747_v48 = vmul.f32 %v3944_v2, %v5179_v44  ;;  %v2729_v3 = vpop.f32.mrb[53].mxu0  ;;  %v2323_v52 = vadd.f32 %v2319_v53, %v2315_v49 }
 0x393   : > { %v2745_v36 = vmul.f32 %v5179_v44, %v2729_v3  ;;  %v3945_v37 = vpop.f32.mrb[54].mxu0  ;;  %v2325_v20 = vadd.f32 %v2321_v24, %v2317_v61 }
 0x394   : > { %v2751_v55 = vmax.f32 %v2747_v48, 0.0  ;;  %v2748_v27 = vmul.f32 %v3945_v37, %v5179_v44  ;;  %v2732_v15 = vpop.f32.mrb[55].mxu0  ;;  %v5200_v59 = vmul.f32 %v5187_v28, %v2323_v52 }
 0x395   : > { %v2749_v21 = vmax.f32 %v2745_v36, 0.0  ;;  %v2746_v62 = vmul.f32 %v5179_v44, %v2732_v15  ;;  %v5206_v38 = vmul.f32 %v5187_v28, %v2325_v20  ;;  %v5221_v36 = vmin.f32 %v2268_v16, 1.0 }
 0x396   : > { %v2354_v41 = vadd.f32 %v2350_v57, %v5200_v59  ;;  %v2370_v8 = vadd.f32 %v2366_v63, %v5200_v59  ;;  %v5211_v7 = vmin.f32 %v2751_v55, 1.0  ;;  %v2752_v54 = vmax.f32 %v2748_v27, 0.0 }
 0x397   : > { %v2356_v1 = vadd.f32 %v2352_v25, %v5206_v38  ;;  %v5215_v51 = vmin.f32 %v2749_v21, 1.0  ;;  %v2750_v2 = vmax.f32 %v2746_v62, 0.0  ;;  %v2372_v33 = vadd.f32 %v2368_v29, %v5206_v38 }
 0x398   : > { %v2358_v50 = vmax.f32 %v2354_v41, 0.0  ;;  %v2374_v53 = vmax.f32 %v2370_v8, 0.0  ;;  %v2893_v3 = vmul.f32 0.299, %v5211_v7  ;;  %v5219_v61 = vmin.f32 %v2752_v54, 1.0 }
 0x399   : > { %v2360_v49 = vmax.f32 %v2356_v1, 0.0  ;;  %v2300_v55 = vmax.f32 %v2296_v30, 0.0  ;;  %v2891_v27 = vmul.f32 0.299, %v5215_v51  ;;  %v5225_v15 = vmin.f32 %v2750_v2, 1.0 }
 0x39a   : > { %v2362_v48 = vmin.f32 %v2358_v50, 1.0  ;;  %v2378_v37 = vmin.f32 %v2374_v53, 1.0  ;;  %v2376_v63 = vmax.f32 %v2372_v33, 0.0  ;;  %v2288_v8 = vmin.f32 %v2284_v42, 1.0 }
 0x39b   : > { %v2364_v24 = vmin.f32 %v2360_v49, 1.0  ;;  %v2894_v54 = vmul.f32 0.299, %v5219_v61  ;;  %v2308_v16 = vmul.f32 0.299, %v5221_v36  ;;  %v5237_v49 = vmin.f32 %v2300_v55, 1.0 }
 0x39c   : > { %v2390_v5 = vsub.f32 %v2362_v48, %v4551_v26  ;;  %v2398_v2 = vsub.f32 %v2378_v37, %v4579_v60  ;;  %v2312_v33 = vmul.f32 0.587, %v2288_v8 }
 0x39d   : > { %v3954_v52 = vpop.f32.mrb[56].mxu0  ;;  %v2392_v25 = vsub.f32 %v2364_v24, %v4551_v26  ;;  %v2351_v24 = vmul.f32 %v5185_v23, %v2288_v8 }
 0x39e   : > { %v2814_v20 = vmul.f32 %v3954_v52, %v5179_v44  ;;  %v2797_v57 = vpop.f32.mrb[57].mxu0  ;;  %v2394_v21 = vmul.f32 %v2390_v5, %v5034_v11  ;;  %v2316_v37 = vadd.f32 %v2312_v33, %v2308_v16  ;;  %v2402_v8 = vmul.f32 %v2398_v2, %v5047_v9 }
 0x39f   : > { %v2812_v62 = vmul.f32 %v2797_v57, %v5179_v44  ;;  %v3955_v41 = vpop.f32.mrb[58].mxu0  ;;  %v2396_v52 = vmul.f32 %v2392_v25, %v5034_v11  ;;  %v2892_v57 = vmul.f32 0.299, %v5225_v15  ;;  %v2320_v16 = vmul.f32 0.114, %v5237_v49 }
 0x3a0   : > { %v2818_v14 = vmax.f32 %v2814_v20, 0.0  ;;  %v2815_v30 = vmul.f32 %v3955_v41, %v5179_v44  ;;  %v2800_v1 = vpop.f32.mrb[59].mxu0  ;;  %2410 = vrot.lane.b32.xlu0 %v2394_v21, %s4287_s15  ;;  %v2380_v20 = vmin.f32 %v2376_v63, 1.0 }
 0x3a1   : > { %v2816_v50 = vmax.f32 %v2812_v62, 0.0  ;;  %v2813_v29 = vmul.f32 %v2800_v1, %v5179_v44 }
 0x3a2   : > { %v5239_v53 = vmin.f32 %v2818_v14, 1.0  ;;  %v2819_v48 = vmax.f32 %v2815_v30, 0.0  ;;  %v5690_v30 = vld [vmem:[#allocation19_spill] sm:$0xff]  ;;  %v2400_v17 = vsub.f32 %v2380_v20, %v4579_v60  ;;  %v5691_v20 = vld [vmem:[#allocation20_spill] sm:$0xff] }
 0x3a3   : > { %v5242_v5 = vmin.f32 %v2816_v50, 1.0  ;;  %v2817_v42 = vmax.f32 %v2813_v29, 0.0  ;;  %v2266_v25 = vadd.f32 %v5159_v58, %v5690_v30 }
 0x3a4   : > { %v2897_v21 = vmul.f32 0.587, %v5239_v53  ;;  %v5247_v62 = vmin.f32 %v2819_v48, 1.0  ;;  %2414 = vrot.lane.b32.xlu0 %v2396_v52, %s4287_s15 }
 0x3a5   : > { %v2895_v55 = vmul.f32 0.587, %v5242_v5  ;;  %v3964_v41 = vpop.f32.mrb[48].mxu1  ;;  %v5251_v14 = vmin.f32 %v2817_v42, 1.0 }
 0x3a6   : > { %5688 = vst [vmem:[#allocation24_spill] sm:$0xff] %v5247_v62  ;;  %v2901_v63 = vadd.f32 %v2897_v21, %v2893_v3  ;;  %v2898_v1 = vmul.f32 0.587, %v5247_v62  ;;  %v2881_v50 = vmul.f32 %v3964_v41, %v5179_v44  ;;  %v2864_v29 = vpop.f32.mrb[49].mxu1  ;;  %v2324_v21 = vadd.f32 %v2320_v16, %v2316_v37 }
 0x3a7   : > { %5689 = vst [vmem:[#allocation25_spill] sm:$0xff] %v5251_v14  ;;  %v2899_v48 = vadd.f32 %v2895_v55, %v2891_v27  ;;  %v2896_v33 = vmul.f32 0.587, %v5251_v14  ;;  %v2879_v52 = vmul.f32 %v2864_v29, %v5179_v44  ;;  %v3965_v42 = vpop.f32.mrb[50].mxu1  ;;  %v2270_v27 = vmax.f32 %v2266_v25, 0.0 }
 0x3a8   : > { %v2902_v2 = vadd.f32 %v2898_v1, %v2894_v54  ;;  %v2885_v18 = vmax.f32 %v2881_v50, 0.0  ;;  %v2882_v30 = vmul.f32 %v3965_v42, %v5179_v44  ;;  %v2867_v3 = vpop.f32.mrb[51].mxu1  ;;  %2426 = vrot.lane.b32.xlu0 %v2402_v8, %s4288_s20  ;;  %v2335_v29 = vmul.f32 %v5187_v28, %v2324_v21 }
 0x3a9   : > { %v2900_v56 = vadd.f32 %v2896_v33, %v2892_v57  ;;  %v2883_v62 = vmax.f32 %v2879_v52, 0.0  ;;  %v2880_v41 = vmul.f32 %v2867_v3, %v5179_v44  ;;  %v2282_v54 = vadd.f32 %v5691_v20, %v5159_v58 }
 0x3aa   : > { %v5265_v55 = vmin.f32 %v2885_v18, 1.0  ;;  %v2886_v14 = vmax.f32 %v2882_v30, 0.0  ;;  %v2404_v37 = vmul.f32 %v2400_v17, %v5047_v9  ;;  %v2298_v57 = vadd.f32 %v4966_v6, %v5159_v58 }
 0x3ab   : > { %v5270_v1 = vmin.f32 %v2883_v62, 1.0  ;;  %v2884_v50 = vmax.f32 %v2880_v41, 0.0  ;;  %v5278_v18 = vadd.f32 %v2351_v24, %v2335_v29  ;;  %v2274_v62 = vmin.f32 %v2270_v27, 1.0 }
 0x3ac   : > { %v2905_v44 = vmul.f32 0.114, %v5265_v55  ;;  %v5276_v8 = vmin.f32 %v2886_v14, 1.0  ;;  %2430 = vrot.lane.b32.xlu0 %v2404_v37, %s4288_s20  ;;  %v2286_v33 = vmax.f32 %v2282_v54, 0.0  ;;  %v2302_v14 = vmax.f32 %v2298_v57, 0.0 }
 0x3ad   : > { %v2903_v25 = vmul.f32 0.114, %v5270_v1  ;;  %v5281_v16 = vmin.f32 %v2884_v50, 1.0  ;;  %v2310_v24 = vmul.f32 0.299, %v2274_v62  ;;  %v2328_v57 = vmul.f32 %v5185_v23, %v5172_v4 }
 0x3ae   : > { %v2909_v52 = vadd.f32 %v2905_v44, %v2901_v63  ;;  %v2906_v17 = vmul.f32 0.114, %v5276_v8  ;;  %v2290_v58 = vmin.f32 %v2286_v33, 1.0  ;;  %v2306_v41 = vmin.f32 %v2302_v14, 1.0 }
 0x3af   : > { %v2907_v42 = vadd.f32 %v2903_v25, %v2899_v48  ;;  %v2904_v6 = vmul.f32 0.114, %v5281_v16  ;;  %v2367_v63 = vmul.f32 %v5185_v23, %v5237_v49  ;;  %v5301_v49 = vadd.f32 %v5200_v59, %v2328_v57 }
 0x3b0   : > { %v2910_v30 = vadd.f32 %v2906_v17, %v2902_v2  ;;  %v2314_v21 = vmul.f32 0.587, %v2290_v58  ;;  %v2353_v20 = vmul.f32 %v5185_v23, %v2290_v58  ;;  %v2322_v37 = vmul.f32 0.114, %v2306_v41 }
 0x3b1   : > { %v2908_v3 = vadd.f32 %v2904_v6, %v2900_v56  ;;  %v2911_v50 = vsel %vm878_vm2, %v2907_v42, 0.0  ;;  %v2369_v44 = vmul.f32 %v5185_v23, %v2306_v41  ;;  %v2914_v2 = vsel %vm878_vm2, %v2909_v52, 0.0 }
 0x3b2   : > { %v2318_v54 = vadd.f32 %v2314_v21, %v2310_v24  ;;  %v5293_v56 = vadd.f32 %v2367_v63, %v2335_v29  ;;  %v2330_v17 = vmul.f32 %v5185_v23, %v5175_v32  ;;  %v2916_v42 = vsel %vm878_vm2, %v2910_v30, 0.0 }
 0x3b3   : > { %v2912_v27 = vsel %vm878_vm2, %v2908_v3, 0.0  ;;  %v5305_v6 = vadd.f32 %v5132_v34, %v5157_v47  ;;  %v2329_v32 = vmul.f32 %v5185_v23, %v5221_v36  ;;  %v1002_v59 = vmax.f32 %v5045_v46, 0.0 }
 0x3b4   : > { %v2913_v48 = vadd.f32 %v2912_v27, %v2911_v50  ;;  %v2326_v33 = vadd.f32 %v2322_v37, %v2318_v54  ;;  %v5309_v14 = vadd.f32 %v5206_v38, %v2330_v17  ;;  %v2331_v34 = vmul.f32 %v5185_v23, %v2274_v62 }
 0x3b5   : > { %v5318_v30 = vadd.f32 %v2335_v29, %v2329_v32  ;;  %v1003_v38 = vmax.f32 %v5031_v0, 0.0  ;;  %v1004_v41 = vmax.f32 %v5061_v31, 0.0  ;;  %v1018_v23 = vmax.f32 %v5049_v12, 0.0 }
 0x3b6   : > { %v2915_v25 = vadd.f32 %v2914_v2, %v2913_v48  ;;  %v2337_v58 = vmul.f32 %v5187_v28, %v2326_v33  ;;  %v1006_v28 = vmin.f32 %v1002_v59, 1.0  ;;  %v1020_v0 = vmax.f32 %v5063_v35, 0.0 }
 0x3b7   : > { %v1007_v21 = vmin.f32 %v1003_v38, 1.0  ;;  %v1008_v29 = vmin.f32 %v1004_v41, 1.0  ;;  %v1022_v31 = vmin.f32 %v1018_v23, 1.0  ;;  %v5336_v63 = vstv %s1029_s29 }
 0x3b8   : > { %v2917_v52 = vadd.f32 %v2916_v42, %v2915_v25  ;;  %v5311_v4 = vadd.f32 %v2353_v20, %v2337_v58  ;;  %v5313_v3 = vadd.f32 %v2369_v44, %v2337_v58  ;;  %v5321_v47 = vadd.f32 %v2337_v58, %v2331_v34 }
 0x3b9   : > { %v1036_v24 = vsub.f32 %v1006_v28, %v4551_v26  ;;  %v985_v20 = vmax.f32 %v5039_v22, 0.0  ;;  %v1037_v46 = vsub.f32 %v1007_v21, %v4551_v26  ;;  %v1038_v27 = vsub.f32 %v1008_v29, %v4551_v26  ;;  %v5692_v22 = vld [vmem:[#allocation18_spill] sm:$0xff] }
 0x3ba   : > { %2918 = vadd.xlane.f32.xlu1 %v2917_v52  ;;  %v1024_v48 = vmin.f32 %v1020_v0, 1.0  ;;  %v1046_v12 = vsub.f32 %v1022_v31, %v4579_v60  ;;  %v1684_v44 = vmax.f32 %v5113_v45, 0.0  ;;  %v1686_v42 = vmax.f32 %v5151_v10, 0.0 }
 0x3bb   : > { %v1042_v36 = vmul.f32 %v5034_v11, %v1036_v24  ;;  %v989_v62 = vmin.f32 %v985_v20, 1.0  ;;  %v1043_v50 = vmul.f32 %v5034_v11, %v1037_v46  ;;  %v1044_v37 = vmul.f32 %v5034_v11, %v1038_v27 }
 0x3bc   : > { %v1048_v57 = vsub.f32 %v1024_v48, %v4579_v60  ;;  %v1052_v33 = vmul.f32 %v5047_v9, %v1046_v12  ;;  %v1688_v17 = vmin.f32 %v1684_v44, 1.0  ;;  %v1690_v59 = vmin.f32 %v1686_v42, 1.0 }
 0x3bd   : > { %v1025_v54 = vsub.f32 %v989_v62, %v5692_v22  ;;  %v1700_v34 = vmax.f32 %v5118_v39, 0.0  ;;  %v1702_v24 = vmax.f32 %v5154_v43, 0.0  ;;  %v2361_v23 = vmax.f32 %v5311_v4, 0.0 }
 0x3be   : > { %v1054_v45 = vmul.f32 %v5047_v9, %v1048_v57  ;;  %v1716_v32 = vsub.f32 %v1688_v17, %v4551_v26  ;;  %v1718_v10 = vsub.f32 %v1690_v59, %v4551_v26 }
 0x3bf   : > { %v1031_v35 = vmul.f32 %v5336_v63, %v1025_v54  ;;  %v1704_v38 = vmin.f32 %v1700_v34, 1.0  ;;  %v1706_v20 = vmin.f32 %v1702_v24, 1.0  ;;  %v2365_v0 = vmin.f32 %v2361_v23, 1.0 }
 0x3c0   : > { %v1720_v28 = vmul.f32 %v1716_v32, %v5034_v11  ;;  %v1722_v21 = vmul.f32 %v1718_v10, %v5034_v11  ;;  %v2377_v54 = vmax.f32 %v5313_v3, 0.0  ;;  %v986_v3 = vmax.f32 %v5065_v13, 0.0 }
 0x3c1   : > { %v1724_v41 = vsub.f32 %v1704_v38, %v4579_v60  ;;  %v1726_v46 = vsub.f32 %v1706_v20, %v4579_v60  ;;  %v2393_v27 = vsub.f32 %v2365_v0, %v4551_v26 }
 0x3c3   : > { %v1728_v39 = vmul.f32 %v1724_v41, %v5047_v9  ;;  %v1730_v43 = vmul.f32 %v1726_v46, %v5047_v9  ;;  %v2397_v4 = vmul.f32 %v2393_v27, %v5034_v11 }
 0x3cb   : > { %1061 = vrot.lane.b32.xlu1 %v1042_v36, %s4287_s15  ;;  %v2359_v36 = vmax.f32 %v5278_v18, 0.0 }
 0x3cd   : > { %v2363_v29 = vmin.f32 %v2359_v36, 1.0 }
 0x3cf   : > { %1063 = vrot.lane.b32.xlu1 %v1043_v50, %s4287_s15  ;;  %v2391_v62 = vsub.f32 %v2363_v29, %v4551_v26  ;;  %v2375_v50 = vmax.f32 %v5293_v56, 0.0 }
 0x3d1   : > { %v2395_v18 = vmul.f32 %v2391_v62, %v5034_v11  ;;  %v2379_v31 = vmin.f32 %v2375_v50, 1.0  ;;  %v2930_v62 = vstv %s2461_s11 }
 0x3d2   : > { %v2933_v0 = vmul.f32 %v2930_v62, %v5211_v7  ;;  %v2931_v50 = vmul.f32 %v2930_v62, %v5215_v51  ;;  %v2932_v27 = vmul.f32 %v2930_v62, %v5225_v15  ;;  %v2968_v7 = vmul.f32 %v2930_v62, %v5265_v55 }
 0x3d3   : > { %1065 = vrot.lane.b32.xlu1 %v1044_v37, %s4287_s15  ;;  %v2399_v48 = vsub.f32 %v2379_v31, %v4579_v60  ;;  %v2381_v37 = vmin.f32 %v2377_v54, 1.0  ;;  %v2952_v31 = vmul.f32 %v2930_v62, %v5239_v53  ;;  %v2950_v54 = vmul.f32 %v2930_v62, %v5242_v5 }
 0x3d4   : > { %v1060_v2 = vpop.permute.xlu0 %1059  ;;  %v2966_v51 = vmul.f32 %v2930_v62, %v5270_v1 }
 0x3d5   : > { %v1087_v25 = vsel %vm878_vm2, %v1031_v35, %v1060_v2  ;;  %v2403_v56 = vmul.f32 %v2399_v48, %v5047_v9  ;;  %v2401_v12 = vsub.f32 %v2381_v37, %v4579_v60  ;;  %v990_v35 = vmin.f32 %v986_v3, 1.0  ;;  %v5694_v37 = vld [vmem:[#allocation25_spill] sm:$0xff] }
 0x3d6   : > { %v987_v2 = vmax.f32 %v5067_v40, 0.0 }
 0x3d7   : > { %1077 = vrot.lane.b32.xlu1 %v1052_v33, %s4288_s20  ;;  %v2405_v44 = vmul.f32 %v2401_v12, %v5047_v9  ;;  %v1026_v57 = vsub.f32 %v990_v35, %v5692_v22  ;;  %v988_v33 = vmax.f32 %v5069_v19, 0.0  ;;  %v2967_v12 = vmul.f32 %v2930_v62, %v5281_v16 }
 0x3d8   : > { %v1076_v52 = vpop.permute.xlu0 %1075 }
 0x3d9   : > { %v5350_v58 = vsel %vm1091_vm3, %v1087_v25, %v1076_v52  ;;  %v991_v25 = vmin.f32 %v987_v2, 1.0  ;;  %v992_v59 = vmin.f32 %v988_v33, 1.0 }
 0x3db   : > { %1081 = vrot.lane.b32.xlu1 %v1054_v45, %s4288_s20  ;;  %v1032_v45 = vmul.f32 %v5336_v63, %v1026_v57  ;;  %v1027_v32 = vsub.f32 %v991_v25, %v5692_v22  ;;  %v1028_v10 = vsub.f32 %v992_v59, %v5692_v22 }
 0x3dd   : > { %v1033_v40 = vmul.f32 %v5336_v63, %v1027_v32  ;;  %v1034_v41 = vmul.f32 %v5336_v63, %v1028_v10 }
 0x3df   : > { %1737 = vrot.lane.b32.xlu1 %v1720_v28, %s4287_s15 }
 0x3e3   : > { %1741 = vrot.lane.b32.xlu1 %v1722_v21, %s4287_s15 }
 0x3e7   : > { %1753 = vrot.lane.b32.xlu1 %v1728_v39, %s4288_s20 }
 0x3eb   : > { %1757 = vrot.lane.b32.xlu1 %v1730_v43, %s4288_s20 }
 0x3ef   : > { %2412 = vrot.lane.b32.xlu1 %v2395_v18, %s4287_s15  ;;  %v2934_v18 = vmul.f32 %v2930_v62, %v5219_v61  ;;  %v5419_v61 = vstv %s5405_s14 }
 0x3f3   : > { %2416 = vrot.lane.b32.xlu1 %v2397_v4, %s4287_s15  ;;  %v5693_v4 = vld [vmem:[#allocation24_spill] sm:$0xff] }
 0x3f4   : > { %v2953_v48 = vmul.f32 %v2930_v62, %v5693_v4 }
 0x3f7   : > { %2428 = vrot.lane.b32.xlu1 %v2403_v56, %s4288_s20  ;;  %v2951_v56 = vmul.f32 %v2930_v62, %v5694_v37 }
 0x3fb   : > { %2432 = vrot.lane.b32.xlu1 %v2405_v44, %s4288_s20 }
 0x447   : > { %v2919_v17 = vpop.xlane.xlu1 %2918 }
 0x448   : > { %v2920_v42 = vrot.slane %v2919_v17, 4 }
 0x44a   : > { %v2921_v52 = vadd.f32 %v2920_v42, %v2919_v17 }
 0x44b   : > { %v1062_v34 = vpop.permute.xlu1 %1061 }
 0x44c   : > { %v2922_v28 = vrot.slane %v2921_v52, 2  ;;  %v1088_v13 = vsel %vm878_vm2, %v1032_v45, %v1062_v34 }
 0x44e   : > { %v2923_v38 = vadd.f32 %v2922_v28, %v2921_v52 }
 0x44f   : > { %v1064_v19 = vpop.permute.xlu1 %1063 }
 0x450   : > { %v5393_v24 = vsel %vm878_vm2, %v1033_v40, %v1064_v19  ;;  %v2924_v21 = vrot.slane %v2923_v38, 1  ;;  %v2969_v19 = vmul.f32 %v2930_v62, %v5276_v8 }
 0x452   : > { %v2925_v20 = vadd.f32 %v2924_v21, %v2923_v38 }
 0x453   : > { %v1066_v36 = vpop.permute.xlu1 %1065 }
 0x454   : > { %v1090_v39 = vsel %vm878_vm2, %v1034_v41, %v1066_v36  ;;  %3993 = vpush %v2925_v20  ;;  %v3008_v20 = vstv %s3007_s30 }
 0x457   : > { %v1078_v46 = vpop.permute.xlu1 %1077 }
 0x458   : > { %v5398_v29 = vsel %vm1091_vm3, %v1088_v13, %v1078_v46 }
 0x45b   : > { %v1082_v23 = vpop.permute.xlu1 %1081 }
 0x45c   : > { %v5401_v43 = vsel %vm1091_vm3, %v1090_v39, %v1082_v23 }
 0x485   : > { %s3994_s18 = spop %3993 }
 0x486   : > { %s2929_s12 = smul.f32 0.0009765625, %s3994_s18 }
 0x488   : > { %s2936_s21 = smul.f32 %s2935_s3, %s2929_s12  ;;  %s4290_s3 = smov [#allocation12]  }
 0x489   : > { %s4204_s18 = sshll.u32 %s4290_s3, 4  ;;  %s4205_s18 = int_to_ptr.vmem [resolvable:$false] %s4204_s18 }
 0x48a   : > { %v2937_v44 = vstv %s2936_s21  ;;  %s4206_s12 = scalar_lea.vmem %s4205_s18, 3072 }
 0x48b   : > { %v2939_v15 = vadd.f32 %v2937_v44, %v2932_v27  ;;  %v2955_v3 = vadd.f32 %v2951_v56, %v2937_v44  ;;  %v2971_v53 = vadd.f32 %v2967_v12, %v2937_v44  ;;  %v2938_v35 = vadd.f32 %v2937_v44, %v2931_v50  ;;  %v5429_v50 = vpop.permute.xlu1 %1737 }
 0x48c   : > { %v2954_v2 = vadd.f32 %v2950_v54, %v2937_v44  ;;  %v2970_v5 = vadd.f32 %v2966_v51, %v2937_v44  ;;  %v2941_v57 = vadd.f32 %v2937_v44, %v2934_v18  ;;  %v2957_v25 = vadd.f32 %v2953_v48, %v2937_v44  ;;  %v5432_v48 = vpop.permute.xlu0 %1079 }
 0x48d   : > { %v2943_v33 = vmax.f32 %v2939_v15, 0.0  ;;  %v2959_v17 = vmax.f32 %v2955_v3, 0.0  ;;  %v2975_v42 = vmax.f32 %v2971_v53, 0.0  ;;  %v2942_v16 = vmax.f32 %v2938_v35, 0.0 }
 0x48e   : > { %v2958_v52 = vmax.f32 %v2954_v2, 0.0  ;;  %v2974_v55 = vmax.f32 %v2970_v5, 0.0  ;;  %v2945_v45 = vmax.f32 %v2941_v57, 0.0  ;;  %v2961_v1 = vmax.f32 %v2957_v25, 0.0 }
 0x48f   : > { %v2947_v32 = vmin.f32 %v2943_v33, 1.0  ;;  %v2963_v59 = vmin.f32 %v2959_v17, 1.0  ;;  %v2979_v34 = vmin.f32 %v2975_v42, 1.0  ;;  %v5422_v28 = vmin.f32 %v2942_v16, 1.0 }
 0x490   : > { %v2962_v13 = vmin.f32 %v2958_v52, 1.0  ;;  %v2978_v40 = vmin.f32 %v2974_v55, 1.0  ;;  %v5424_v10 = vmin.f32 %v2945_v45, 1.0  ;;  %v2965_v38 = vmin.f32 %v2961_v1, 1.0  ;;  %v5436_v42 = vpop.permute.xlu0 %1735  ;;  %v5439_v55 = vpop.permute.xlu1 %1741 }
 0x491   : > { %v2983_v21 = vmul.f32 0.299, %v2947_v32  ;;  %v2987_v41 = vmul.f32 0.587, %v2963_v59  ;;  %v2995_v36 = vmul.f32 0.114, %v2979_v34  ;;  %v3026_v39 = vmul.f32 %v5419_v61, %v2963_v59 }
 0x492   : > { %v2982_v46 = vmul.f32 0.299, %v5422_v28  ;;  %v2986_v23 = vmul.f32 0.587, %v2962_v13  ;;  %v2973_v27 = vadd.f32 %v2969_v19, %v2937_v44  ;;  %v2985_v54 = vmul.f32 0.299, %v5424_v10 }
 0x493   : > { %v2991_v18 = vadd.f32 %v2987_v41, %v2983_v21  ;;  %v2989_v4 = vmul.f32 0.587, %v2965_v38  ;;  %v2994_v8 = vmul.f32 0.114, %v2978_v40  ;;  %v2940_v62 = vadd.f32 %v2937_v44, %v2933_v0 }
 0x494   : > { %v2990_v37 = vadd.f32 %v2986_v23, %v2982_v46  ;;  %v2956_v56 = vadd.f32 %v2952_v31, %v2937_v44  ;;  %v2977_v51 = vmax.f32 %v2973_v27, 0.0  ;;  %v2972_v3 = vadd.f32 %v2968_v7, %v2937_v44 }
 0x495   : > { %v2999_v12 = vadd.f32 %v2995_v36, %v2991_v18  ;;  %v2993_v15 = vadd.f32 %v2989_v4, %v2985_v54  ;;  %v3025_v35 = vmul.f32 %v5419_v61, %v2962_v13  ;;  %v2944_v2 = vmax.f32 %v2940_v62, 0.0  ;;  %v5444_v4 = vpop.permute.xlu0 %1739 }
 0x496   : > { %v2998_v53 = vadd.f32 %v2994_v8, %v2990_v37  ;;  %v2960_v5 = vmax.f32 %v2956_v56, 0.0  ;;  %v2981_v25 = vmin.f32 %v2977_v51, 1.0  ;;  %v2976_v33 = vmax.f32 %v2972_v3, 0.0  ;;  %v5448_v56 = vpop.permute.xlu1 %1753 }
 0x497   : > { %v3010_v57 = vmul.f32 %v3008_v20, %v2999_v12  ;;  %v3042_v17 = vmul.f32 %v5419_v61, %v2979_v34  ;;  %v2948_v52 = vmin.f32 %v2944_v2, 1.0  ;;  %v3004_v31 = vmul.f32 %v5419_v61, %v2947_v32 }
 0x498   : > { %v3009_v16 = vmul.f32 %v3008_v20, %v2998_v53  ;;  %v2964_v0 = vmin.f32 %v2960_v5, 1.0  ;;  %v2997_v44 = vmul.f32 0.114, %v2981_v25  ;;  %v2980_v45 = vmin.f32 %v2976_v33, 1.0 }
 0x499   : > { %v3030_v7 = vadd.f32 %v3026_v39, %v3010_v57  ;;  %v3046_v1 = vadd.f32 %v3042_v17, %v3010_v57  ;;  %v2984_v13 = vmul.f32 0.299, %v2948_v52  ;;  %v3041_v21 = vmul.f32 %v5419_v61, %v2978_v40 }
 0x49a   : > { %v3029_v59 = vadd.f32 %v3025_v35, %v3009_v16  ;;  %v2988_v19 = vmul.f32 0.587, %v2964_v0  ;;  %v3001_v34 = vadd.f32 %v2997_v44, %v2993_v15  ;;  %v2996_v23 = vmul.f32 0.114, %v2980_v45 }
 0x49b   : > { %v3034_v41 = vmax.f32 %v3030_v7, 0.0  ;;  %v3045_v18 = vadd.f32 %v3041_v21, %v3009_v16  ;;  %v3028_v32 = vmul.f32 %v5419_v61, %v2965_v38  ;;  %v3044_v39 = vmul.f32 %v5419_v61, %v2981_v25 }
 0x49c   : > { %v3033_v36 = vmax.f32 %v3029_v59, 0.0  ;;  %v2992_v46 = vadd.f32 %v2988_v19, %v2984_v13  ;;  %v3012_v54 = vmul.f32 %v3008_v20, %v3001_v34  ;;  %v5446_v62 = vadd.f32 %v3010_v57, %v3004_v31  ;;  %v5695_v59 = vld [vmem:[#allocation23_spill] sm:$0xff]  ;;  %v5465_v19 = vpop.permute.xlu1 %1757 }
 0x49d   : > { %v3038_v27 = vmin.f32 %v3034_v41, 1.0  ;;  %v3050_v51 = vmax.f32 %v3046_v1, 0.0  ;;  %v3027_v38 = vmul.f32 %v5419_v61, %v2964_v0  ;;  %v3043_v35 = vmul.f32 %v5419_v61, %v2980_v45  ;;  %v5459_v1 = vpop.permute.xlu0 %1751 }
 0x49e   : > { %v3037_v37 = vmin.f32 %v3033_v36, 1.0  ;;  %v3000_v8 = vadd.f32 %v2996_v23, %v2992_v46  ;;  %v3032_v12 = vadd.f32 %v3028_v32, %v3012_v54  ;;  %v3048_v15 = vadd.f32 %v3044_v39, %v3012_v54 }
 0x49f   : > { %v3066_v40 = vsub.f32 %v3038_v27, %v4551_v26  ;;  %v3049_v25 = vmax.f32 %v3045_v18, 0.0  ;;  %v3054_v7 = vmin.f32 %v3050_v51, 1.0  ;;  %v3006_v45 = vmul.f32 %v5419_v61, %v5424_v10  ;;  %v5696_v18 = vld [vmem:[#allocation21_spill] sm:$0xff] }
 0x4a0   : > { %v3065_v3 = vsub.f32 %v3037_v37, %v4551_v26  ;;  %v3011_v53 = vmul.f32 %v3008_v20, %v3000_v8  ;;  %v3036_v5 = vmax.f32 %v3032_v12, 0.0  ;;  %v3052_v44 = vmax.f32 %v3048_v15, 0.0  ;;  %v2413_v15 = vpop.permute.xlu1 %2412 }
 0x4a1   : > { %v3070_v2 = vmul.f32 %v3066_v40, %v5034_v11  ;;  %v3003_v20 = vmul.f32 %v5419_v61, %v5422_v28  ;;  %v1668_v13 = vmax.f32 %v5695_v59, 0.0  ;;  %v3053_v41 = vmin.f32 %v3049_v25, 1.0 }
 0x4a2   : > { %v3069_v57 = vmul.f32 %v3065_v3, %v5034_v11  ;;  %v3031_v33 = vadd.f32 %v3027_v38, %v3011_v53  ;;  %v3047_v17 = vadd.f32 %v3043_v35, %v3011_v53  ;;  %v3040_v31 = vmin.f32 %v3036_v5, 1.0 }
 0x4a3   : > { %3087 = vrot.lane.b32.xlu1 %v3070_v2, %s4287_s15  ;;  %v5468_v34 = vadd.f32 %v3009_v16, %v3003_v20  ;;  %v5470_v28 = vadd.f32 %v3012_v54, %v3006_v45  ;;  %v3005_v23 = vmul.f32 %v5419_v61, %v2948_v52  ;;  %v1667_v27 = vmax.f32 %v5696_v18, 0.0  ;;  %v1756_v54 = vpop.permute.xlu0 %1755 }
 0x4a4   : > { %3085 = vrot.lane.b32.xlu0 %v3069_v57, %s4287_s15  ;;  %v3035_v0 = vmax.f32 %v3031_v33, 0.0  ;;  %v3068_v21 = vsub.f32 %v3040_v31, %v4551_v26  ;;  %v3051_v46 = vmax.f32 %v3047_v17, 0.0  ;;  %v3074_v10 = vsub.f32 %v3054_v7, %v4579_v60 }
 0x4a5   : > { %v3056_v39 = vmin.f32 %v3052_v44, 1.0  ;;  %v5477_v8 = vadd.f32 %v3011_v53, %v3005_v23  ;;  %v1672_v40 = vmin.f32 %v1668_v13, 1.0  ;;  %v1670_v16 = vmax.f32 %v5305_v6, 0.0 }
 0x4a6   : > { %v3039_v36 = vmin.f32 %v3035_v0, 1.0  ;;  %v3072_v32 = vmul.f32 %v3068_v21, %v5034_v11  ;;  %v3073_v61 = vsub.f32 %v3053_v41, %v4579_v60  ;;  %v3055_v52 = vmin.f32 %v3051_v46, 1.0  ;;  %v2417_v0 = vpop.permute.xlu1 %2416 }
 0x4a7   : > { %v1671_v51 = vmin.f32 %v1667_v27, 1.0  ;;  %v3078_v3 = vmul.f32 %v3074_v10, %v5047_v9  ;;  %v3076_v38 = vsub.f32 %v3056_v39, %v4579_v60  ;;  %v1708_v6 = vsub.f32 %v1672_v40, %v5692_v22 }
 0x4a8   : > { %v3067_v37 = vsub.f32 %v3039_v36, %v4551_v26  ;;  %3091 = vrot.lane.b32.xlu1 %v3072_v32, %s4287_s15  ;;  %v5697_v26 = vld [vmem:[#allocation22_spill] sm:$0xff]  ;;  %v1674_v35 = vmin.f32 %v1670_v16, 1.0  ;;  %v2343_v2 = vmax.f32 %v5318_v30, 0.0  ;;  %v3077_v5 = vmul.f32 %v3073_v61, %v5047_v9 }
 0x4a9   : > { %v1669_v53 = vmax.f32 %v5697_v26, 0.0  ;;  %v3075_v25 = vsub.f32 %v3055_v52, %v4579_v60  ;;  %v1707_v57 = vsub.f32 %v1671_v51, %v5692_v22  ;;  %v3080_v33 = vmul.f32 %v3076_v38, %v5047_v9 }
 0x4aa   : > { %v3071_v12 = vmul.f32 %v3067_v37, %v5034_v11  ;;  %v2411_v11 = vpop.permute.xlu0 %2410  ;;  %v2342_v31 = vmax.f32 %v5301_v49, 0.0  ;;  %v1712_v7 = vmul.f32 %v1708_v6, %v5336_v63  ;;  %v1710_v30 = vsub.f32 %v1674_v35, %v5692_v22 }
 0x4ab   : > { %v1673_v17 = vmin.f32 %v1669_v53, 1.0  ;;  %v2347_v44 = vmin.f32 %v2343_v2, 1.0  ;;  %v2345_v20 = vmax.f32 %v5321_v47, 0.0  ;;  %v3079_v60 = vmul.f32 %v3075_v25, %v5047_v9 }
 0x4ac   : > { %3089 = vrot.lane.b32.xlu0 %v3071_v12, %s4287_s15  ;;  %3103 = vrot.lane.b32.xlu1 %v3078_v3, %s4288_s20  ;;  %v1711_v45 = vmul.f32 %v1707_v57, %v5336_v63  ;;  %v1764_v59 = vsel %vm878_vm2, %v1712_v7, %v5429_v50  ;;  %v2346_v13 = vmin.f32 %v2342_v31, 1.0  ;;  %v2344_v21 = vmax.f32 %v5309_v14, 0.0  ;;  %v2429_v14 = vpop.permute.xlu1 %2428 }
 0x4ad   : > { %v1709_v49 = vsub.f32 %v1673_v17, %v5692_v22  ;;  %v1768_v47 = vsel %vm1091_vm3, %v1764_v59, %v5448_v56  ;;  %v1714_v36 = vmul.f32 %v1710_v30, %v5336_v63  ;;  %v2383_v9 = vsub.f32 %v2347_v44, %v5692_v22 }
 0x4ae   : > { %v2415_v41 = vpop.permute.xlu0 %2414  ;;  %v2349_v46 = vmin.f32 %v2345_v20, 1.0  ;;  %v1763_v50 = vsel %vm878_vm2, %v1711_v45, %v5436_v42  ;;  %v2382_v56 = vsub.f32 %v2346_v13, %v5692_v22  ;;  %v2348_v32 = vmin.f32 %v2344_v21, 1.0 }
 0x4af   : > { %v1766_v23 = vsel %vm878_vm2, %v1714_v36, %v5439_v55  ;;  %v1767_v18 = vsel %vm1091_vm3, %v1763_v50, %v5459_v1  ;;  %v1713_v27 = vmul.f32 %v1709_v49, %v5336_v63  ;;  %v2387_v39 = vmul.f32 %v2383_v9, %v5336_v63 }
 0x4b0   : > { %3101 = vrot.lane.b32.xlu0 %v3077_v5, %s4288_s20  ;;  %3107 = vrot.lane.b32.xlu1 %v3080_v33, %s4288_s20  ;;  %v1770_v10 = vsel %vm1091_vm3, %v1766_v23, %v5465_v19  ;;  %v2385_v42 = vsub.f32 %v2349_v46, %v5692_v22  ;;  %v2386_v16 = vmul.f32 %v2382_v56, %v5336_v63  ;;  %v2433_v52 = vpop.permute.xlu1 %2432  ;;  %v3018_v6 = vmax.f32 %v5446_v62, 0.0 }
 0x4b1   : > { %v1765_v55 = vsel %vm878_vm2, %v1713_v27, %v5444_v4  ;;  %v2439_v1 = vsel %vm878_vm2, %v2387_v39, %v2413_v15  ;;  %v2384_v12 = vsub.f32 %v2348_v32, %v5692_v22  ;;  %v3017_v35 = vmax.f32 %v5468_v34, 0.0 }
 0x4b2   : > { %v2427_v37 = vpop.permute.xlu0 %2426  ;;  %v1769_v40 = vsel %vm1091_vm3, %v1765_v55, %v1756_v54  ;;  %v2443_v19 = vsel %vm1091_vm3, %v2439_v1, %v2429_v14  ;;  %v2389_v61 = vmul.f32 %v2385_v42, %v5336_v63  ;;  %v2438_v51 = vsel %vm878_vm2, %v2386_v16, %v2411_v11 }
 0x4b3   : > { %v2442_v15 = vsel %vm1091_vm3, %v2438_v51, %v2427_v37  ;;  %v2388_v54 = vmul.f32 %v2384_v12, %v5336_v63  ;;  %v3022_v2 = vmin.f32 %v3018_v6, 1.0  ;;  %v3020_v5 = vmax.f32 %v5470_v28, 0.0 }
 0x4b4   : > { %3105 = vrot.lane.b32.xlu0 %v3079_v60, %s4288_s20  ;;  %3127 = vrot.lane.b32.xlu1 %v1768_v47, %s4289_s13  ;;  %v2441_v4 = vsel %vm878_vm2, %v2389_v61, %v2417_v0  ;;  %v3021_v25 = vmin.f32 %v3017_v35, 1.0  ;;  %v3019_v33 = vmax.f32 %v5477_v8, 0.0 }
 0x4b5   : > { %v2445_v38 = vsel %vm1091_vm3, %v2441_v4, %v2433_v52  ;;  %v2440_v26 = vsel %vm878_vm2, %v2388_v54, %v2415_v41  ;;  %v3058_v17 = vsub.f32 %v3022_v2, %v5692_v22  ;;  %v3024_v31 = vmin.f32 %v3020_v5, 1.0 }
 0x4b6   : > { %v2431_v3 = vpop.permute.xlu0 %2430  ;;  %v3057_v30 = vsub.f32 %v3021_v25, %v5692_v22  ;;  %v3023_v44 = vmin.f32 %v3019_v33, 1.0 }
 0x4b7   : > { %v2444_v53 = vsel %vm1091_vm3, %v2440_v26, %v2431_v3  ;;  %v3062_v62 = vmul.f32 %v3058_v17, %v5336_v63  ;;  %v3060_v34 = vsub.f32 %v3024_v31, %v5692_v22 }
 0x4b8   : > { %3125 = vrot.lane.b32.xlu0 %v1767_v18, %s4289_s13  ;;  %3131 = vrot.lane.b32.xlu1 %v1770_v10, %s4289_s13  ;;  %v3061_v60 = vmul.f32 %v3057_v30, %v5336_v63  ;;  %v3059_v8 = vsub.f32 %v3023_v44, %v5692_v22 }
 0x4b9   : > { %v3064_v59 = vmul.f32 %v3060_v34, %v5336_v63 }
 0x4ba   : > { %v3063_v36 = vmul.f32 %v3059_v8, %v5336_v63 }
 0x4bc   : > { %3129 = vrot.lane.b32.xlu0 %v1769_v40, %s4289_s13  ;;  %3143 = vrot.lane.b32.xlu1 %v2443_v19, %s4288_s20 }
 0x4c0   : > { %3141 = vrot.lane.b32.xlu0 %v2442_v15, %s4288_s20  ;;  %3147 = vrot.lane.b32.xlu1 %v2445_v38, %s4288_s20 }
 0x4c4   : > { %3145 = vrot.lane.b32.xlu0 %v2444_v53, %s4288_s20  ;;  %s3985_s20 = smul.u32 96, %s4494_s22 }
 0x4c6   : > { %s5569_s10 = scalar_lea.vmem [#allocation12], %s3985_s20 }
 0x4c7   : > { %s3208_s29 = sshll.u32 %s5569_s10, 4  ;;  %s5604_s29 = int_to_ptr.vmem [resolvable:$true] %s3208_s29 }
 0x4c8   : > { %s4200_s14 = scalar_lea.vmem %s5604_s29, 1536  ;;  %p4207_p13 = scmp.lt.s32.totalorder %s5604_s29, %s4205_s18 }
 0x4c9   : > { %p4201_p12 = scmp.ne.s32.totalorder %s5604_s29, %s4200_s14  ;;  %p4208_p10 = scmp.lt.s32.totalorder %s4206_s12, %s4200_s14 }
 0x4cb   : > { %p4202_p9 = pnand %p4201_p12, %p4445_p6  ;;  %p4209_p0 = por %p4208_p10, %p4207_p13 }
 0x4cd   : > { %p4203_p3 = pneg %p4202_p9 }
 0x4cf   : > { %p4210_p11 = pnand %p4209_p0, %p4203_p3 }
 0x515   : > { %v3088_v11 = vpop.permute.xlu1 %3087 }
 0x516   : > { %v3086_v57 = vpop.permute.xlu0 %3085  ;;  %v3114_v0 = vsel %vm878_vm2, %v3062_v62, %v3088_v11 }
 0x517   : > { %v3113_v49 = vsel %vm878_vm2, %v3061_v60, %v3086_v57 }
 0x51a   : > { %v3092_v7 = vpop.permute.xlu1 %3091 }
 0x51b   : > { %v3116_v21 = vsel %vm878_vm2, %v3064_v59, %v3092_v7 }
 0x51e   : > { %v3090_v20 = vpop.permute.xlu0 %3089  ;;  %v3104_v28 = vpop.permute.xlu1 %3103 }
 0x51f   : > { %v3118_v45 = vsel %vm1091_vm3, %v3114_v0, %v3104_v28  ;;  %v3115_v9 = vsel %vm878_vm2, %v3063_v36, %v3090_v20 }
 0x520   : > { %3159 = vrot.lane.b32.xlu1 %v3118_v45, %s4287_s15 }
 0x522   : > { %v3102_v13 = vpop.permute.xlu0 %3101  ;;  %v3108_v47 = vpop.permute.xlu1 %3107 }
 0x523   : > { %v3117_v41 = vsel %vm1091_vm3, %v3113_v49, %v3102_v13  ;;  %v3120_v22 = vsel %vm1091_vm3, %v3116_v21, %v3108_v47 }
 0x524   : > { %3157 = vrot.lane.b32.xlu0 %v3117_v41, %s4287_s15  ;;  %3163 = vrot.lane.b32.xlu1 %v3120_v22, %s4287_s15 }
 0x526   : > { %v3106_v46 = vpop.permute.xlu0 %3105  ;;  %v3128_v23 = vpop.permute.xlu1 %3127 }
 0x527   : > { %v3119_v50 = vsel %vm1091_vm3, %v3115_v9, %v3106_v46  ;;  %v3171_v14 = vsel %vm3169_vm4, %v5398_v29, %v3128_v23  ;;  %v1094_v29 = vsel %vm1091_vm3, %v5393_v24, %v5432_v48 }
 0x528   : > { %3161 = vrot.lane.b32.xlu0 %v3119_v50, %s4287_s15  ;;  %3185 = vst [vmem:[%s5569_s10 + $0x18] sm:$0xff] %v3171_v14  ;;  %s3995_s15 = smul.u32 1536, %s4354_s28  ;;  %s3195_s28 = scalar_lea.sflag [#allocation4], %s4494_s22 }
 0x52a   : > { %v3126_v63 = vpop.permute.xlu0 %3125  ;;  %v3132_v27 = vpop.permute.xlu1 %3131  ;;  %s5602_s17 = scalar_lea.hbm %s5657_s7, %s3995_s15 }
 0x52b   : > { %v3170_v18 = vsel %vm3169_vm4, %v5350_v58, %v3126_v63  ;;  %v3173_v56 = vsel %vm3169_vm4, %v5401_v43, %v3132_v27 }
 0x52c   : > { %3182 = vst [vmem:[%s5569_s10] sm:$0xff] %v3170_v18  ;;  %3191 = vst [vmem:[%s5569_s10 + $0x48] sm:$0xff] %v3173_v56 }
 0x52e   : > { %v3130_v32 = vpop.permute.xlu0 %3129  ;;  %v3144_v39 = vpop.permute.xlu1 %3143 }
 0x52f   : > { %v3172_v10 = vsel %vm3169_vm4, %v1094_v29, %v3130_v32  ;;  %v3175_v58 = vsel %vm1091_vm3, %v3128_v23, %v3144_v39 }
 0x530   : > { %3188 = vst [vmem:[%s5569_s10 + $0x30] sm:$0xff] %v3172_v10  ;;  %3186 = vst [vmem:[%s5569_s10 + $0x20] sm:$0xff] %v3175_v58 }
 0x532   : > { %v3142_v42 = vpop.permute.xlu0 %3141  ;;  %v3148_v55 = vpop.permute.xlu1 %3147 }
 0x533   : > { %v3174_v43 = vsel %vm1091_vm3, %v3126_v63, %v3142_v42  ;;  %v3177_v24 = vsel %vm1091_vm3, %v3132_v27, %v3148_v55 }
 0x534   : > { %3183 = vst [vmem:[%s5569_s10 + $0x8] sm:$0xff] %v3174_v43  ;;  %3192 = vst [vmem:[%s5569_s10 + $0x50] sm:$0xff] %v3177_v24 }
 0x536   : > { %v3146_v48 = vpop.permute.xlu0 %3145 }
 0x537   : > { %v3176_v37 = vsel %vm1091_vm3, %v3130_v32, %v3146_v48 }
 0x538   : > { %3189 = vst [vmem:[%s5569_s10 + $0x38] sm:$0xff] %v3176_v37 }
 0x592   : > { %v3160_v1 = vpop.permute.xlu1 %3159 }
 0x593   : > { %v3179_v40 = vsel %vm878_vm2, %v3144_v39, %v3160_v1 }
 0x594   : > { %3187 = vst [vmem:[%s5569_s10 + $0x28] sm:$0xff] %v3179_v40 }
 0x596   : > { %v3158_v16 = vpop.permute.xlu0 %3157  ;;  %v3164_v19 = vpop.permute.xlu1 %3163 }
 0x597   : > { %v3178_v12 = vsel %vm878_vm2, %v3142_v42, %v3158_v16  ;;  %v3181_v61 = vsel %vm878_vm2, %v3148_v55, %v3164_v19 }
 0x598   : > { %3184 = vst [vmem:[%s5569_s10 + $0x10] sm:$0xff] %v3178_v12  ;;  %3193 = vst [vmem:[%s5569_s10 + $0x58] sm:$0xff] %v3181_v61 }
 0x59a   : > { %v3162_v52 = vpop.permute.xlu0 %3161 }
 0x59b   : > { %v3180_v51 = vsel %vm878_vm2, %v3146_v48, %v3162_v52 }
 0x59c   : > { %3190 = vst [vmem:[%s5569_s10 + $0x40] sm:$0xff] %v3180_v51 }
 0x59d   : > { %4213 = shalt.err (!%p4210_p11)
}
 0x59e   : > { %s4214_s21 = scalar_lea.hbm %s5602_s17, 1536  ;;  %s4218_s20 = scalar_lea.hbm %s5657_s7, 3072 }
 0x59f   : > { %p4215_p1 = scmp.ne.s32.totalorder %s5602_s17, %s4214_s21  ;;  %p4219_p4 = scmp.lt.u32.totalorder %s5602_s17, %s5657_s7 }
 0x5a0   : > { %p4220_p8 = scmp.lt.u32.totalorder %s4218_s20, %s4214_s21  ;;  %p4222_p12 = scmp.lt.u32.totalorder %s4214_s21, %s5602_s17 }
 0x5a1   : > { %p4216_p2 = pnand %p4215_p1, %p4445_p6 }
 0x5a2   : > { %p4221_p7 = por %p4220_p8, %p4219_p4 }
 0x5a3   : > { %p4217_p5 = pneg %p4216_p2 }
 0x5a4   : > { %p4223_p9 = por %p4222_p12, %p4221_p7 }
 0x5a6   : > { %p4224_p3 = pnand %p4223_p9, %p4217_p5 }
 0x5a8   : > { %4227 = shalt.err (!%p4224_p3)
}
 0x5a9   : > { %s4291_s9 = smov 384   ;;  %s4292_s11 = smov 24  }
 0x5aa   : > { %4014 = dma.vmem_to_hbm [thread:$0]  (%p4445_p6), %s5604_s29, 1536, %s5602_s17, %s3195_s28, %s4291_s9, %s4291_s9, %s4292_s11  }
 0x5ab PF: > { %s3223_s14 = sand.u32 1, %s4266_s24   ;;  %p5698_p13 = scmp.ne.s32.totalorder %s5667_s8, 0 }
 0x5ac   : > { %p5699_p10 = scmp.ge.s32.totalorder %s4278_s27, 2  ;;  %s3224_s3 = scalar_lea.sflag [#allocation4], %s3223_s14 }
 0x5ae   : > { %p4034_p0 = pnand %p5699_p10, %p5698_p13 }
 0x5b0   : > { %4261 = dma.done.wait (!%p4034_p0), %s3224_s3, 1536  }
 0x5b1   : > { %4263 = vsyncadd (!%p4034_p0), %s3224_s3, 4294965760  ;;  %p23_p11 = scmp.ge.s32.totalorder %s4432_s19, 4   ;;  %s5700_s24 = smov %s4270_s25 }
 0x5b2   : > { %s5701_s25 = smov %s4274_s26  ;;  %s5702_s26 = smov %s4441_s16 }
 0x5b3   : > { %s5703_s27 = smov %s4432_s19  ;;  %25 = sbr.rel (!%p23_p11) target bundleno = 10 (0xa), region = 133 }
 0x5ba   :  { %3229 = vsyncpa [#allocation3], 1 }
 0x5bb   :  { %3231 = vsyncpa [#allocation3 + $0x1], 1 }
 0x5bc   :  { %3232 = vsyncpa [#allocation4], 1 }
 0x5bd   :  { %3234 = vsyncpa [#allocation4 + $0x1], 1 }
 0x5be   :  { %3235 = vsyncpa [#allocation5], 1 }
 0x5bf   :  { %3237 = vsyncpa [#allocation5 + $0x1], 1 }
 0x5c0   :  { %3238 = vsyncpa [#allocation8], 1 }
 0x5c1   :  { %3239 = vsyncpa [#allocation11], 1 }

</bundles_post_ra>
